<compile_context>
chip_gen: v7x
topology: tpu7x:2x2x1
jax: 0.10.0
libtpu: 0.0.40
codegen_flags: <defaults>
</compile_context>

<pallas_src>
import functools
import math

import jax
import jax.numpy as jnp
from jax.experimental import pallas as pl
from jax.experimental.pallas import tpu as pltpu

EPS = 1e-5  # PyTorch InstanceNorm2d default eps (affine=False)


def _round_up(x, m):
    return (x + m - 1) // m * m


# ------------------------------------------------------------ matmul kernel

def _matmul_kernel(a_ref, b_ref, o_ref, acc_ref):
    @pl.when(pl.program_id(2) == 0)
    def _():
        acc_ref[...] = jnp.zeros_like(acc_ref)

    acc_ref[...] += jnp.dot(a_ref[...], b_ref[...],
                            preferred_element_type=jnp.float32)

    @pl.when(pl.program_id(2) == pl.num_programs(2) - 1)
    def _():
        o_ref[...] = acc_ref[...]


def pallas_matmul(a, b, tm=256, tk=512, tn=256):
    """(M,K) bf16 @ (K,N) bf16 -> (M,N) f32, tiled & double-buffered."""
    M, K = a.shape
    K2, N = b.shape
    assert K == K2
    # Adapt tiles to the problem; keep lane/sublane-dense blocks.
    tm = min(tm, _round_up(M, 16))
    tk = min(tk, _round_up(K, 128))
    tn = min(tn, _round_up(N, 128))
    Mp, Kp, Np = _round_up(M, tm), _round_up(K, tk), _round_up(N, tn)
    if (Mp, Kp) != (M, K):
        a = jnp.pad(a, ((0, Mp - M), (0, Kp - K)))
    if (Kp, Np) != (K, N):
        b = jnp.pad(b, ((0, Kp - K), (0, Np - N)))

    out = pl.pallas_call(
        _matmul_kernel,
        out_shape=jax.ShapeDtypeStruct((Mp, Np), jnp.float32),
        grid=(Mp // tm, Np // tn, Kp // tk),
        in_specs=[pl.BlockSpec((tm, tk), lambda i, j, k: (i, k)),
                  pl.BlockSpec((tk, tn), lambda i, j, k: (k, j))],
        out_specs=pl.BlockSpec((tm, tn), lambda i, j, k: (i, j)),
        scratch_shapes=[pltpu.VMEM((tm, tn), jnp.float32)],
        compiler_params=pltpu.CompilerParams(
            dimension_semantics=("parallel", "parallel", "arbitrary")),
    )(a, b)
    if (Mp, Np) != (M, N):
        out = out[:M, :N]
    return out


# ------------------------------------------------------ elementwise kernels

def _inorm_kernel(x_ref, o_ref, *, relu):
    x = x_ref[...]                                    # (1, HW, Ct)
    mu = jnp.mean(x, axis=1, keepdims=True)
    xc = x - mu
    var = jnp.mean(xc * xc, axis=1, keepdims=True)
    y = xc * jax.lax.rsqrt(var + EPS)
    if relu:
        y = jnp.maximum(y, 0.0)
    o_ref[...] = y


def _inorm_add_kernel(x_ref, r_ref, o_ref):
    x = x_ref[...]
    mu = jnp.mean(x, axis=1, keepdims=True)
    xc = x - mu
    var = jnp.mean(xc * xc, axis=1, keepdims=True)
    o_ref[...] = xc * jax.lax.rsqrt(var + EPS) + r_ref[...]


def _inorm_add_gate_kernel(x_ref, r_ref, g_ref, o_ref):
    # InstanceNorm(x) + residual, then * sigmoid(gate)  (fused epilogue)
    x = x_ref[...]
    mu = jnp.mean(x, axis=1, keepdims=True)
    xc = x - mu
    var = jnp.mean(xc * xc, axis=1, keepdims=True)
    y = xc * jax.lax.rsqrt(var + EPS) + r_ref[...]
    o_ref[...] = y * jax.nn.sigmoid(g_ref[...])


def _conv1x1_tanh_kernel(x_ref, w_ref, o_ref):
    y = jnp.dot(x_ref[0, :, :], w_ref[...], preferred_element_type=jnp.float32)
    o_ref[0, :, :] = jnp.tanh(y)


def _ew_call(kernel, shape, *ins):
    """Run an elementwise/norm kernel over (N, HW, C) with per-sample blocks,
    channel-tiled when C is a multiple of 128 (keeps full HW for exact
    InstanceNorm statistics)."""
    N, HW, C = shape
    tc = 128 if (C % 128 == 0) else C
    spec = pl.BlockSpec((1, HW, tc), lambda n, c: (n, 0, c))
    return pl.pallas_call(
        kernel,
        out_shape=jax.ShapeDtypeStruct((N, HW, C), jnp.float32),
        grid=(N, C // tc),
        in_specs=[spec] * len(ins),
        out_specs=spec,
        compiler_params=pltpu.CompilerParams(
            dimension_semantics=("parallel", "parallel")),
    )(*ins)


# --------------------------------------------------------------- op wrappers

def inorm_nhwc(x, relu=False):
    N, H, W, C = x.shape
    y = _ew_call(functools.partial(_inorm_kernel, relu=relu),
                 (N, H * W, C), x.reshape(N, H * W, C))
    return y.reshape(N, H, W, C)


def inorm_add_nhwc(x, res):
    N, H, W, C = x.shape
    y = _ew_call(_inorm_add_kernel, (N, H * W, C),
                 x.reshape(N, H * W, C), res.reshape(N, H * W, C))
    return y.reshape(N, H, W, C)


def inorm_add_gate_nhwc(x, res, gate):
    N, H, W, C = x.shape
    y = _ew_call(_inorm_add_gate_kernel, (N, H * W, C),
                 x.reshape(N, H * W, C), res.reshape(N, H * W, C),
                 gate.reshape(N, H * W, C))
    return y.reshape(N, H, W, C)


def conv1x1_tanh(x, w):
    """Final 1x1 conv (bias=False) fused with tanh.  w: (Cin, Cout) f32."""
    N, H, W, C = x.shape
    Cout = w.shape[1]
    HW = H * W
    y = pl.pallas_call(
        _conv1x1_tanh_kernel,
        out_shape=jax.ShapeDtypeStruct((N, HW, Cout), jnp.float32),
        grid=(N,),
        in_specs=[pl.BlockSpec((1, HW, C), lambda n: (n, 0, 0)),
                  pl.BlockSpec((C, Cout), lambda n: (0, 0))],
        out_specs=pl.BlockSpec((1, HW, Cout), lambda n: (n, 0, 0)),
        compiler_params=pltpu.CompilerParams(
            dimension_semantics=("parallel",)),
    )(x.reshape(N, HW, C), w)
    return y.reshape(N, H, W, Cout)


def _extract_patches(x, k, stride, pad):
    """x: (N,H,W,C) -> (N,Ho,Wo,k*k*C), ordering (di,dj) outer, channel inner."""
    N, H, W, C = x.shape
    xp = jnp.pad(x, ((0, 0), (pad, pad), (pad, pad), (0, 0)))
    Ho = (H + 2 * pad - k) // stride + 1
    Wo = (W + 2 * pad - k) // stride + 1
    cols = []
    for di in range(k):
        for dj in range(k):
            cols.append(xp[:, di:di + Ho * stride:stride,
                           dj:dj + Wo * stride:stride, :])
    return jnp.concatenate(cols, axis=-1), Ho, Wo


def conv2d(x, wm, k, stride, pad):
    """x NHWC f32; wm: prepped (k*k*Cin, Cout) bf16 weight (bias=False)."""
    N, H, W, Cin = x.shape
    Cout = wm.shape[1]
    # TODO(synk): fuse patch extraction into the matmul kernel (halo tiles)
    # to remove the k*k HBM expansion; bf16 patches halve it for now.
    patches, Ho, Wo = _extract_patches(x.astype(jnp.bfloat16), k, stride, pad)
    a = patches.reshape(N * Ho * Wo, k * k * Cin)
    y = pallas_matmul(a, wm)
    return y.reshape(N, Ho, Wo, Cout)


def conv_transpose2x(x, wm):
    """ConvTranspose2d(k=4, s=2, p=1, bias=False) via sub-pixel decomposition.
    x NHWC f32; wm: prepped (2*2*Cin, 4*Cout) bf16 phase-packed weight."""
    N, H, W, Cin = x.shape
    Cout = wm.shape[1] // 4
    patches, Hp, Wp = _extract_patches(x.astype(jnp.bfloat16), 2, 1, 1)
    a = patches.reshape(N * Hp * Wp, 4 * Cin)            # Hp=H+1, Wp=W+1
    y = pallas_matmul(a, wm).reshape(N, Hp, Wp, 4, Cout)
    phases = [y[:, r:r + H, s:s + W, 2 * r + s, :]
              for r in range(2) for s in range(2)]       # each (N,H,W,Cout)
    out = jnp.stack(phases, axis=3).reshape(N, H, W, 2, 2, Cout)
    out = out.transpose(0, 1, 3, 2, 4, 5).reshape(N, 2 * H, 2 * W, Cout)
    return out


# ------------------------------------------------------------- network blocks

def res_block(x, p, gate=None):
    h = conv2d(x, p['conv1'], 3, 1, 1)
    h = inorm_nhwc(h, relu=True)
    h = conv2d(h, p['conv2'], 3, 1, 1)
    if gate is None:
        return inorm_add_nhwc(h, x)
    return inorm_add_gate_nhwc(h, x, gate)


def inconv_apply(x, wm):
    return inorm_nhwc(conv2d(x, wm, 3, 1, 1), relu=True)


def down_apply(x, p, gate=None):
    h = conv2d(x, p['conv'], 4, 2, 1)
    h = inorm_nhwc(h, relu=True)
    return res_block(h, p['res'], gate=gate)


def up_apply(x, p, gate=None):
    h = conv_transpose2x(x, p['deconv'])
    h = inorm_nhwc(h, relu=True)
    return res_block(h, p['res'], gate=gate)


def outconv_apply(x, p):
    for i in range(1, 5):
        x = res_block(x, p['res%d' % i])
    return conv1x1_tanh(x, p['conv'])


def edge_content_encoder(params, input_EP1, source_B, target_B):
    # NCHW -> NHWC
    x1 = jnp.transpose(input_EP1, (0, 2, 3, 1)).astype(jnp.float32)
    x2 = jnp.concatenate([source_B, target_B], axis=1)      # channel concat
    x2 = jnp.transpose(x2, (0, 2, 3, 1)).astype(jnp.float32)

    # Structure branch first so its features can be fused in as gates.
    x2_c1 = inconv_apply(x2, params['in2_conv1'])
    x2_d1 = down_apply(x2_c1, params['in2_down1'])
    x2_d2 = down_apply(x2_d1, params['in2_down2'])
    x2_d3 = down_apply(x2_d2, params['in2_down3'])

    x1_c1 = inconv_apply(x1, params['in1_conv1'])
    x1_d1 = down_apply(x1_c1, params['in1_down1'])
    x1_d2 = down_apply(x1_d1, params['in1_down2'])
    # y = x1_d3 * sigmoid(x2_d3)   (gate fused into final norm+add)
    y = down_apply(x1_d2, params['in1_down3'], gate=x2_d3)

    y = up_apply(y, params['out_up2'], gate=x2_d2)   # (* sigmoid(x2_d2)) fused
    y = up_apply(y, params['out_up3'], gate=x2_d1)   # (* sigmoid(x2_d1)) fused
    y = up_apply(y, params['out_up4'])
    y = outconv_apply(y, params['out_conv1'])

    return jnp.transpose(y, (0, 3, 1, 2))   # back to NCHW


# --------------------------------------------------------------- param init

def init_params(key, input_nc=1, output_nc=1, structure_nc=18, ngf=64):
    """Deterministic synthetic weights in PyTorch layouts."""
    keys = iter(jax.random.split(key, 64))

    def conv_w(cout, cin, k):
        scale = 1.0 / math.sqrt(cin * k * k)
        return jax.random.normal(next(keys), (cout, cin, k, k),
                                 jnp.float32) * scale

    def deconv_w(cin, cout, k):
        scale = 1.0 / math.sqrt(cin * k * k)
        return jax.random.normal(next(keys), (cin, cout, k, k),
                                 jnp.float32) * scale

    def resblk(c):
        return {'conv1': conv_w(c, c, 3), 'conv2': conv_w(c, c, 3)}

    def down(cin, cout):
        return {'conv': conv_w(cout, cin, 4), 'res': resblk(cout)}

    def up(cin, cout):
        return {'deconv': deconv_w(cin, cout, 4), 'res': resblk(cout)}

    return {
        'in1_conv1': conv_w(ngf, input_nc, 3),
        'in1_down1': down(ngf, ngf * 2),
        'in1_down2': down(ngf * 2, ngf * 4),
        'in1_down3': down(ngf * 4, ngf * 8),
        'in2_conv1': conv_w(ngf, structure_nc * 2, 3),
        'in2_down1': down(ngf, ngf * 2),
        'in2_down2': down(ngf * 2, ngf * 4),
        'in2_down3': down(ngf * 4, ngf * 8),
        'out_up2': up(ngf * 8, ngf * 4),
        'out_up3': up(ngf * 4, ngf * 2),
        'out_up4': up(ngf * 2, ngf),
        'out_conv1': {'res1': resblk(ngf), 'res2': resblk(ngf),
                      'res3': resblk(ngf), 'res4': resblk(ngf),
                      'conv': conv_w(output_nc, ngf, 1)},
    }


# ----------------------------------------------- one-time weight preparation

def _prep_conv(w):
    """(Cout, Cin, k, k) -> (k*k*Cin, Cout) bf16, im2col layout (di,dj,ci)."""
    Cout, Cin, k, _ = w.shape
    wm = jnp.transpose(w, (2, 3, 1, 0)).reshape(k * k * Cin, Cout)
    return wm.astype(jnp.bfloat16)


def _prep_deconv(w):
    """(Cin, Cout, 4, 4) ConvTranspose weight -> (2*2*Cin, 4*Cout) bf16
    sub-pixel matrix.  Rows: (dr, dc, ci) matching 2x2/pad-1 im2col patches;
    columns: output phase (r, s) outer, co inner."""
    Cin, Cout, _, _ = w.shape
    blocks = []
    for dr in range(2):
        for dc in range(2):
            cols = []
            for r in range(2):
                for s in range(2):
                    kh = 3 - r - 2 * dr
                    kw = 3 - s - 2 * dc
                    cols.append(w[:, :, kh, kw])              # (Cin, Cout)
            blocks.append(jnp.concatenate(cols, axis=1))      # (Cin, 4*Cout)
    return jnp.concatenate(blocks, axis=0).astype(jnp.bfloat16)


def prepare_params(p):
    def resblk(q):
        return {'conv1': _prep_conv(q['conv1']), 'conv2': _prep_conv(q['conv2'])}

    def down(q):
        return {'conv': _prep_conv(q['conv']), 'res': resblk(q['res'])}

    def up(q):
        return {'deconv': _prep_deconv(q['deconv']), 'res': resblk(q['res'])}

    oc = p['out_conv1']
    cout, cin = oc['conv'].shape[0], oc['conv'].shape[1]
    final_w = jnp.transpose(oc['conv'], (2, 3, 1, 0)).reshape(cin, cout)  # f32

    return {
        'in1_conv1': _prep_conv(p['in1_conv1']),
        'in1_down1': down(p['in1_down1']),
        'in1_down2': down(p['in1_down2']),
        'in1_down3': down(p['in1_down3']),
        'in2_conv1': _prep_conv(p['in2_conv1']),
        'in2_down1': down(p['in2_down1']),
        'in2_down2': down(p['in2_down2']),
        'in2_down3': down(p['in2_down3']),
        'out_up2': up(p['out_up2']),
        'out_up3': up(p['out_up3']),
        'out_up4': up(p['out_up4']),
        'out_conv1': {'res1': resblk(oc['res1']), 'res2': resblk(oc['res2']),
                      'res3': resblk(oc['res3']), 'res4': resblk(oc['res4']),
                      'conv': final_w},
    }


# --------------------------------------------------------------------- main

if __name__ == "__main__":
    # small shapes: batch=2, input_dim=1, output_dim=1, structure_nc=3,
    # ngf=8, spatial=16 (16 -> 8 -> 4 -> 2 -> back up to 16)
    key = jax.random.PRNGKey(0)
    k1, k2, k3 = jax.random.split(key, 3)
    input_EP1 = jax.random.normal(k1, (2, 1, 16, 16), jnp.float32)
    source_B = jax.random.normal(k2, (2, 3, 16, 16), jnp.float32)
    target_B = jax.random.normal(k3, (2, 3, 16, 16), jnp.float32)

    raw_params = init_params(jax.random.PRNGKey(42),
                             input_nc=1, output_nc=1, structure_nc=3, ngf=8)
    params = prepare_params(raw_params)   # one-time: matmul layout + bf16

    fwd = jax.jit(edge_content_encoder)
    out = fwd(params, input_EP1, source_B, target_B)
    out = jax.block_until_ready(out)

    assert out.shape == (2, 1, 16, 16), out.shape
    assert out.dtype == jnp.float32
    assert bool(jnp.all(jnp.isfinite(out)))
    assert bool(jnp.all(jnp.abs(out) <= 1.0 + 1e-5))   # tanh output range
    print("KERNEL_OK")
</pallas_src>

<mosaic_0001>
module attributes {stable_mosaic.version = 11 : i64} {
  func.func @_inorm_kernel(%arg0: i32, %arg1: i32, %arg2: memref<1x256x8xf32, #tpu.memory_space<vmem>>, %arg3: memref<1x256x8xf32, #tpu.memory_space<vmem>>) attributes {dimension_semantics = [#tpu.dimension_semantics<parallel>, #tpu.dimension_semantics<parallel>], iteration_bounds = array<i64: 2, 1>, scalar_prefetch = 0 : i64, scratch_operands = 0 : i64, tpu.core_type = #tpu.core_type<tc>, window_params = [{transform_indices = @transform_0, window_bounds = array<i64: 1, 256, 8>}, {transform_indices = @transform_1, window_bounds = array<i64: 1, 256, 8>}]} {
    %c0 = arith.constant 0 : index
    %c0_0 = arith.constant 0 : index
    %c0_1 = arith.constant 0 : index
    %0 = vector.load %arg2[%c0, %c0_0, %c0_1] : memref<1x256x8xf32, #tpu.memory_space<vmem>>, vector<1x256x8xf32>
    %cst = arith.constant dense<0.000000e+00> : vector<1x8xf32>
    %1 = vector.multi_reduction <add>, %0, %cst [1] : vector<1x256x8xf32> to vector<1x8xf32>
    %2 = vector.shape_cast %1 : vector<1x8xf32> to vector<1x1x8xf32>
    %cst_2 = arith.constant 2.560000e+02 : f32
    %3 = vector.broadcast %cst_2 : f32 to vector<1x1x8xf32>
    %4 = arith.divf %2, %3 : vector<1x1x8xf32>
    %5 = vector.broadcast %4 : vector<1x1x8xf32> to vector<1x256x8xf32>
    %6 = arith.subf %0, %5 : vector<1x256x8xf32>
    %7 = arith.mulf %6, %6 : vector<1x256x8xf32>
    %cst_3 = arith.constant dense<0.000000e+00> : vector<1x8xf32>
    %8 = vector.multi_reduction <add>, %7, %cst_3 [1] : vector<1x256x8xf32> to vector<1x8xf32>
    %9 = vector.shape_cast %8 : vector<1x8xf32> to vector<1x1x8xf32>
    %cst_4 = arith.constant 2.560000e+02 : f32
    %10 = vector.broadcast %cst_4 : f32 to vector<1x1x8xf32>
    %11 = arith.divf %9, %10 : vector<1x1x8xf32>
    %cst_5 = arith.constant 9.99999974E-6 : f32
    %12 = vector.broadcast %cst_5 : f32 to vector<1x1x8xf32>
    %13 = arith.addf %11, %12 : vector<1x1x8xf32>
    %14 = math.rsqrt %13 : vector<1x1x8xf32>
    %15 = vector.broadcast %14 : vector<1x1x8xf32> to vector<1x256x8xf32>
    %16 = arith.mulf %6, %15 : vector<1x256x8xf32>
    %cst_6 = arith.constant 0.000000e+00 : f32
    %17 = vector.broadcast %cst_6 : f32 to vector<1x256x8xf32>
    %18 = arith.maximumf %16, %17 : vector<1x256x8xf32>
    %c0_7 = arith.constant 0 : index
    %c0_8 = arith.constant 0 : index
    %c0_9 = arith.constant 0 : index
    %19 = vector.load %arg3[%c0_7, %c0_8, %c0_9] : memref<1x256x8xf32, #tpu.memory_space<vmem>>, vector<1x256x8xf32>
    tpu.vector_store %arg3[%c0_7, %c0_8, %c0_9], %18 {strides = array<i32>} : memref<1x256x8xf32, #tpu.memory_space<vmem>>, vector<1x256x8xf32>,
    return
  }
  func.func @transform_0(%arg0: i32, %arg1: i32) -> (i32, i32, i32) {
    %c0_i32 = arith.constant 0 : i32
    %c0_i32_0 = arith.constant 0 : i32
    return %arg0, %c0_i32, %arg1 : i32, i32, i32
  }
  func.func @transform_1(%arg0: i32, %arg1: i32) -> (i32, i32, i32) {
    %c0_i32 = arith.constant 0 : i32
    %c0_i32_0 = arith.constant 0 : i32
    return %arg0, %c0_i32, %arg1 : i32, i32, i32
  }
}

module attributes {stable_mosaic.version = 11 : i64} {
  func.func @_matmul_kernel(%arg0: i32, %arg1: i32, %arg2: i32, %arg3: memref<256x128xbf16, #tpu.memory_space<vmem>>, %arg4: memref<128x128xbf16, #tpu.memory_space<vmem>>, %arg5: memref<256x128xf32, #tpu.memory_space<vmem>>, %arg6: memref<256x128xf32, #tpu.memory_space<vmem>>) attributes {dimension_semantics = [#tpu.dimension_semantics<parallel>, #tpu.dimension_semantics<parallel>, #tpu.dimension_semantics<arbitrary>], iteration_bounds = array<i64: 2, 1, 1>, scalar_prefetch = 0 : i64, scratch_operands = 1 : i64, tpu.core_type = #tpu.core_type<tc>, window_params = [{transform_indices = @transform_0, window_bounds = array<i64: 256, 128>}, {transform_indices = @transform_1, window_bounds = array<i64: 128, 128>}, {transform_indices = @transform_2, window_bounds = array<i64: 256, 128>}]} {
    %c0_i32 = arith.constant 0 : i32
    %0 = arith.cmpi eq, %arg2, %c0_i32 : i32
    %1 = arith.extui %0 : i1 to i32
    %c0_i32_0 = arith.constant 0 : i32
    %2 = arith.cmpi ne, %1, %c0_i32_0 : i32
    scf.if %2 {
      %cst_10 = arith.constant 0.000000e+00 : f32
      %12 = vector.broadcast %cst_10 : f32 to vector<256x128xf32>
      %c0_11 = arith.constant 0 : index
      %c0_12 = arith.constant 0 : index
      %13 = vector.load %arg6[%c0_11, %c0_12] : memref<256x128xf32, #tpu.memory_space<vmem>>, vector<256x128xf32>
      tpu.vector_store %arg6[%c0_11, %c0_12], %12 {strides = array<i32>} : memref<256x128xf32, #tpu.memory_space<vmem>>, vector<256x128xf32>,
    } else {
    }
    %c0 = arith.constant 0 : index
    %c0_1 = arith.constant 0 : index
    %3 = vector.load %arg6[%c0, %c0_1] : memref<256x128xf32, #tpu.memory_space<vmem>>, vector<256x128xf32>
    %c0_2 = arith.constant 0 : index
    %c0_3 = arith.constant 0 : index
    %4 = vector.load %arg3[%c0_2, %c0_3] : memref<256x128xbf16, #tpu.memory_space<vmem>>, vector<256x128xbf16>
    %c0_4 = arith.constant 0 : index
    %c0_5 = arith.constant 0 : index
    %5 = vector.load %arg4[%c0_4, %c0_5] : memref<128x128xbf16, #tpu.memory_space<vmem>>, vector<128x128xbf16>
    %cst = arith.constant dense<0.000000e+00> : vector<256x128xf32>
    %6 = tpu.matmul %4, %5, %cst {dimension_numbers = #tpu.dot_dimension_numbers<[1], [0], [0], [1], [0, 0, 1, 1], [], []>} : vector<256x128xbf16>, vector<128x128xbf16>, vector<256x128xf32> -> vector<256x128xf32>
    %7 = arith.addf %3, %6 : vector<256x128xf32>
    %c0_6 = arith.constant 0 : index
    %c0_7 = arith.constant 0 : index
    %8 = vector.load %arg6[%c0_6, %c0_7] : memref<256x128xf32, #tpu.memory_space<vmem>>, vector<256x128xf32>
    tpu.vector_store %arg6[%c0_6, %c0_7], %7 {strides = array<i32>} : memref<256x128xf32, #tpu.memory_space<vmem>>, vector<256x128xf32>,
    %c0_i32_8 = arith.constant 0 : i32
    %9 = arith.cmpi eq, %arg2, %c0_i32_8 : i32
    %10 = arith.extui %9 : i1 to i32
    %c0_i32_9 = arith.constant 0 : i32
    %11 = arith.cmpi ne, %10, %c0_i32_9 : i32
    scf.if %11 {
      %c0_10 = arith.constant 0 : index
      %c0_11 = arith.constant 0 : index
      %12 = vector.load %arg6[%c0_10, %c0_11] : memref<256x128xf32, #tpu.memory_space<vmem>>, vector<256x128xf32>
      %c0_12 = arith.constant 0 : index
      %c0_13 = arith.constant 0 : index
      %13 = vector.load %arg5[%c0_12, %c0_13] : memref<256x128xf32, #tpu.memory_space<vmem>>, vector<256x128xf32>
      tpu.vector_store %arg5[%c0_12, %c0_13], %12 {strides = array<i32>} : memref<256x128xf32, #tpu.memory_space<vmem>>, vector<256x128xf32>,
    } else {
    }
    return
  }
  func.func @transform_0(%arg0: i32, %arg1: i32, %arg2: i32) -> (i32, i32) {
    %c0_i32 = arith.constant 0 : i32
    return %arg0, %arg2 : i32, i32
  }
  func.func @transform_1(%arg0: i32, %arg1: i32, %arg2: i32) -> (i32, i32) {
    %c0_i32 = arith.constant 0 : i32
    return %arg2, %arg1 : i32, i32
  }
  func.func @transform_2(%arg0: i32, %arg1: i32, %arg2: i32) -> (i32, i32) {
    %c0_i32 = arith.constant 0 : i32
    return %arg0, %arg1 : i32, i32
  }
}

module attributes {stable_mosaic.version = 11 : i64} {
  func.func @_inorm_kernel(%arg0: i32, %arg1: i32, %arg2: memref<1x64x16xf32, #tpu.memory_space<vmem>>, %arg3: memref<1x64x16xf32, #tpu.memory_space<vmem>>) attributes {dimension_semantics = [#tpu.dimension_semantics<parallel>, #tpu.dimension_semantics<parallel>], iteration_bounds = array<i64: 2, 1>, scalar_prefetch = 0 : i64, scratch_operands = 0 : i64, tpu.core_type = #tpu.core_type<tc>, window_params = [{transform_indices = @transform_0, window_bounds = array<i64: 1, 64, 16>}, {transform_indices = @transform_1, window_bounds = array<i64: 1, 64, 16>}]} {
    %c0 = arith.constant 0 : index
    %c0_0 = arith.constant 0 : index
    %c0_1 = arith.constant 0 : index
    %0 = vector.load %arg2[%c0, %c0_0, %c0_1] : memref<1x64x16xf32, #tpu.memory_space<vmem>>, vector<1x64x16xf32>
    %cst = arith.constant dense<0.000000e+00> : vector<1x16xf32>
    %1 = vector.multi_reduction <add>, %0, %cst [1] : vector<1x64x16xf32> to vector<1x16xf32>
    %2 = vector.shape_cast %1 : vector<1x16xf32> to vector<1x1x16xf32>
    %cst_2 = arith.constant 6.400000e+01 : f32
    %3 = vector.broadcast %cst_2 : f32 to vector<1x1x16xf32>
    %4 = arith.divf %2, %3 : vector<1x1x16xf32>
    %5 = vector.broadcast %4 : vector<1x1x16xf32> to vector<1x64x16xf32>
    %6 = arith.subf %0, %5 : vector<1x64x16xf32>
    %7 = arith.mulf %6, %6 : vector<1x64x16xf32>
    %cst_3 = arith.constant dense<0.000000e+00> : vector<1x16xf32>
    %8 = vector.multi_reduction <add>, %7, %cst_3 [1] : vector<1x64x16xf32> to vector<1x16xf32>
    %9 = vector.shape_cast %8 : vector<1x16xf32> to vector<1x1x16xf32>
    %cst_4 = arith.constant 6.400000e+01 : f32
    %10 = vector.broadcast %cst_4 : f32 to vector<1x1x16xf32>
    %11 = arith.divf %9, %10 : vector<1x1x16xf32>
    %cst_5 = arith.constant 9.99999974E-6 : f32
    %12 = vector.broadcast %cst_5 : f32 to vector<1x1x16xf32>
    %13 = arith.addf %11, %12 : vector<1x1x16xf32>
    %14 = math.rsqrt %13 : vector<1x1x16xf32>
    %15 = vector.broadcast %14 : vector<1x1x16xf32> to vector<1x64x16xf32>
    %16 = arith.mulf %6, %15 : vector<1x64x16xf32>
    %cst_6 = arith.constant 0.000000e+00 : f32
    %17 = vector.broadcast %cst_6 : f32 to vector<1x64x16xf32>
    %18 = arith.maximumf %16, %17 : vector<1x64x16xf32>
    %c0_7 = arith.constant 0 : index
    %c0_8 = arith.constant 0 : index
    %c0_9 = arith.constant 0 : index
    %19 = vector.load %arg3[%c0_7, %c0_8, %c0_9] : memref<1x64x16xf32, #tpu.memory_space<vmem>>, vector<1x64x16xf32>
    tpu.vector_store %arg3[%c0_7, %c0_8, %c0_9], %18 {strides = array<i32>} : memref<1x64x16xf32, #tpu.memory_space<vmem>>, vector<1x64x16xf32>,
    return
  }
  func.func @transform_0(%arg0: i32, %arg1: i32) -> (i32, i32, i32) {
    %c0_i32 = arith.constant 0 : i32
    %c0_i32_0 = arith.constant 0 : i32
    return %arg0, %c0_i32, %arg1 : i32, i32, i32
  }
  func.func @transform_1(%arg0: i32, %arg1: i32) -> (i32, i32, i32) {
    %c0_i32 = arith.constant 0 : i32
    %c0_i32_0 = arith.constant 0 : i32
    return %arg0, %c0_i32, %arg1 : i32, i32, i32
  }
}

module attributes {stable_mosaic.version = 11 : i64} {
  func.func @_matmul_kernel(%arg0: i32, %arg1: i32, %arg2: i32, %arg3: memref<128x128xbf16, #tpu.memory_space<vmem>>, %arg4: memref<128x128xbf16, #tpu.memory_space<vmem>>, %arg5: memref<128x128xf32, #tpu.memory_space<vmem>>, %arg6: memref<128x128xf32, #tpu.memory_space<vmem>>) attributes {dimension_semantics = [#tpu.dimension_semantics<parallel>, #tpu.dimension_semantics<parallel>, #tpu.dimension_semantics<arbitrary>], iteration_bounds = array<i64: 1, 1, 1>, scalar_prefetch = 0 : i64, scratch_operands = 1 : i64, tpu.core_type = #tpu.core_type<tc>, window_params = [{transform_indices = @transform_0, window_bounds = array<i64: 128, 128>}, {transform_indices = @transform_1, window_bounds = array<i64: 128, 128>}, {transform_indices = @transform_2, window_bounds = array<i64: 128, 128>}]} {
    %c0_i32 = arith.constant 0 : i32
    %0 = arith.cmpi eq, %arg2, %c0_i32 : i32
    %1 = arith.extui %0 : i1 to i32
    %c0_i32_0 = arith.constant 0 : i32
    %2 = arith.cmpi ne, %1, %c0_i32_0 : i32
    scf.if %2 {
      %cst_10 = arith.constant 0.000000e+00 : f32
      %12 = vector.broadcast %cst_10 : f32 to vector<128x128xf32>
      %c0_11 = arith.constant 0 : index
      %c0_12 = arith.constant 0 : index
      %13 = vector.load %arg6[%c0_11, %c0_12] : memref<128x128xf32, #tpu.memory_space<vmem>>, vector<128x128xf32>
      tpu.vector_store %arg6[%c0_11, %c0_12], %12 {strides = array<i32>} : memref<128x128xf32, #tpu.memory_space<vmem>>, vector<128x128xf32>,
    } else {
    }
    %c0 = arith.constant 0 : index
    %c0_1 = arith.constant 0 : index
    %3 = vector.load %arg6[%c0, %c0_1] : memref<128x128xf32, #tpu.memory_space<vmem>>, vector<128x128xf32>
    %c0_2 = arith.constant 0 : index
    %c0_3 = arith.constant 0 : index
    %4 = vector.load %arg3[%c0_2, %c0_3] : memref<128x128xbf16, #tpu.memory_space<vmem>>, vector<128x128xbf16>
    %c0_4 = arith.constant 0 : index
    %c0_5 = arith.constant 0 : index
    %5 = vector.load %arg4[%c0_4, %c0_5] : memref<128x128xbf16, #tpu.memory_space<vmem>>, vector<128x128xbf16>
    %cst = arith.constant dense<0.000000e+00> : vector<128x128xf32>
    %6 = tpu.matmul %4, %5, %cst {dimension_numbers = #tpu.dot_dimension_numbers<[1], [0], [0], [1], [0, 0, 1, 1], [], []>} : vector<128x128xbf16>, vector<128x128xbf16>, vector<128x128xf32> -> vector<128x128xf32>
    %7 = arith.addf %3, %6 : vector<128x128xf32>
    %c0_6 = arith.constant 0 : index
    %c0_7 = arith.constant 0 : index
    %8 = vector.load %arg6[%c0_6, %c0_7] : memref<128x128xf32, #tpu.memory_space<vmem>>, vector<128x128xf32>
    tpu.vector_store %arg6[%c0_6, %c0_7], %7 {strides = array<i32>} : memref<128x128xf32, #tpu.memory_space<vmem>>, vector<128x128xf32>,
    %c0_i32_8 = arith.constant 0 : i32
    %9 = arith.cmpi eq, %arg2, %c0_i32_8 : i32
    %10 = arith.extui %9 : i1 to i32
    %c0_i32_9 = arith.constant 0 : i32
    %11 = arith.cmpi ne, %10, %c0_i32_9 : i32
    scf.if %11 {
      %c0_10 = arith.constant 0 : index
      %c0_11 = arith.constant 0 : index
      %12 = vector.load %arg6[%c0_10, %c0_11] : memref<128x128xf32, #tpu.memory_space<vmem>>, vector<128x128xf32>
      %c0_12 = arith.constant 0 : index
      %c0_13 = arith.constant 0 : index
      %13 = vector.load %arg5[%c0_12, %c0_13] : memref<128x128xf32, #tpu.memory_space<vmem>>, vector<128x128xf32>
      tpu.vector_store %arg5[%c0_12, %c0_13], %12 {strides = array<i32>} : memref<128x128xf32, #tpu.memory_space<vmem>>, vector<128x128xf32>,
    } else {
    }
    return
  }
  func.func @transform_0(%arg0: i32, %arg1: i32, %arg2: i32) -> (i32, i32) {
    %c0_i32 = arith.constant 0 : i32
    return %arg0, %arg2 : i32, i32
  }
  func.func @transform_1(%arg0: i32, %arg1: i32, %arg2: i32) -> (i32, i32) {
    %c0_i32 = arith.constant 0 : i32
    return %arg2, %arg1 : i32, i32
  }
  func.func @transform_2(%arg0: i32, %arg1: i32, %arg2: i32) -> (i32, i32) {
    %c0_i32 = arith.constant 0 : i32
    return %arg0, %arg1 : i32, i32
  }
}

module attributes {stable_mosaic.version = 11 : i64} {
  func.func @_inorm_add_kernel(%arg0: i32, %arg1: i32, %arg2: memref<1x64x16xf32, #tpu.memory_space<vmem>>, %arg3: memref<1x64x16xf32, #tpu.memory_space<vmem>>, %arg4: memref<1x64x16xf32, #tpu.memory_space<vmem>>) attributes {dimension_semantics = [#tpu.dimension_semantics<parallel>, #tpu.dimension_semantics<parallel>], iteration_bounds = array<i64: 2, 1>, scalar_prefetch = 0 : i64, scratch_operands = 0 : i64, tpu.core_type = #tpu.core_type<tc>, window_params = [{transform_indices = @transform_0, window_bounds = array<i64: 1, 64, 16>}, {transform_indices = @transform_1, window_bounds = array<i64: 1, 64, 16>}, {transform_indices = @transform_2, window_bounds = array<i64: 1, 64, 16>}]} {
    %c0 = arith.constant 0 : index
    %c0_0 = arith.constant 0 : index
    %c0_1 = arith.constant 0 : index
    %0 = vector.load %arg2[%c0, %c0_0, %c0_1] : memref<1x64x16xf32, #tpu.memory_space<vmem>>, vector<1x64x16xf32>
    %cst = arith.constant dense<0.000000e+00> : vector<1x16xf32>
    %1 = vector.multi_reduction <add>, %0, %cst [1] : vector<1x64x16xf32> to vector<1x16xf32>
    %2 = vector.shape_cast %1 : vector<1x16xf32> to vector<1x1x16xf32>
    %cst_2 = arith.constant 6.400000e+01 : f32
    %3 = vector.broadcast %cst_2 : f32 to vector<1x1x16xf32>
    %4 = arith.divf %2, %3 : vector<1x1x16xf32>
    %5 = vector.broadcast %4 : vector<1x1x16xf32> to vector<1x64x16xf32>
    %6 = arith.subf %0, %5 : vector<1x64x16xf32>
    %7 = arith.mulf %6, %6 : vector<1x64x16xf32>
    %cst_3 = arith.constant dense<0.000000e+00> : vector<1x16xf32>
    %8 = vector.multi_reduction <add>, %7, %cst_3 [1] : vector<1x64x16xf32> to vector<1x16xf32>
    %9 = vector.shape_cast %8 : vector<1x16xf32> to vector<1x1x16xf32>
    %cst_4 = arith.constant 6.400000e+01 : f32
    %10 = vector.broadcast %cst_4 : f32 to vector<1x1x16xf32>
    %11 = arith.divf %9, %10 : vector<1x1x16xf32>
    %cst_5 = arith.constant 9.99999974E-6 : f32
    %12 = vector.broadcast %cst_5 : f32 to vector<1x1x16xf32>
    %13 = arith.addf %11, %12 : vector<1x1x16xf32>
    %14 = math.rsqrt %13 : vector<1x1x16xf32>
    %15 = vector.broadcast %14 : vector<1x1x16xf32> to vector<1x64x16xf32>
    %16 = arith.mulf %6, %15 : vector<1x64x16xf32>
    %c0_6 = arith.constant 0 : index
    %c0_7 = arith.constant 0 : index
    %c0_8 = arith.constant 0 : index
    %17 = vector.load %arg3[%c0_6, %c0_7, %c0_8] : memref<1x64x16xf32, #tpu.memory_space<vmem>>, vector<1x64x16xf32>
    %18 = arith.addf %16, %17 : vector<1x64x16xf32>
    %c0_9 = arith.constant 0 : index
    %c0_10 = arith.constant 0 : index
    %c0_11 = arith.constant 0 : index
    %19 = vector.load %arg4[%c0_9, %c0_10, %c0_11] : memref<1x64x16xf32, #tpu.memory_space<vmem>>, vector<1x64x16xf32>
    tpu.vector_store %arg4[%c0_9, %c0_10, %c0_11], %18 {strides = array<i32>} : memref<1x64x16xf32, #tpu.memory_space<vmem>>, vector<1x64x16xf32>,
    return
  }
  func.func @transform_0(%arg0: i32, %arg1: i32) -> (i32, i32, i32) {
    %c0_i32 = arith.constant 0 : i32
    %c0_i32_0 = arith.constant 0 : i32
    return %arg0, %c0_i32, %arg1 : i32, i32, i32
  }
  func.func @transform_1(%arg0: i32, %arg1: i32) -> (i32, i32, i32) {
    %c0_i32 = arith.constant 0 : i32
    %c0_i32_0 = arith.constant 0 : i32
    return %arg0, %c0_i32, %arg1 : i32, i32, i32
  }
  func.func @transform_2(%arg0: i32, %arg1: i32) -> (i32, i32, i32) {
    %c0_i32 = arith.constant 0 : i32
    %c0_i32_0 = arith.constant 0 : i32
    return %arg0, %c0_i32, %arg1 : i32, i32, i32
  }
}

module attributes {stable_mosaic.version = 11 : i64} {
  func.func @_matmul_kernel(%arg0: i32, %arg1: i32, %arg2: i32, %arg3: memref<128x256xbf16, #tpu.memory_space<vmem>>, %arg4: memref<256x128xbf16, #tpu.memory_space<vmem>>, %arg5: memref<128x128xf32, #tpu.memory_space<vmem>>, %arg6: memref<128x128xf32, #tpu.memory_space<vmem>>) attributes {dimension_semantics = [#tpu.dimension_semantics<parallel>, #tpu.dimension_semantics<parallel>, #tpu.dimension_semantics<arbitrary>], iteration_bounds = array<i64: 1, 1, 1>, scalar_prefetch = 0 : i64, scratch_operands = 1 : i64, tpu.core_type = #tpu.core_type<tc>, window_params = [{transform_indices = @transform_0, window_bounds = array<i64: 128, 256>}, {transform_indices = @transform_1, window_bounds = array<i64: 256, 128>}, {transform_indices = @transform_2, window_bounds = array<i64: 128, 128>}]} {
    %c0_i32 = arith.constant 0 : i32
    %0 = arith.cmpi eq, %arg2, %c0_i32 : i32
    %1 = arith.extui %0 : i1 to i32
    %c0_i32_0 = arith.constant 0 : i32
    %2 = arith.cmpi ne, %1, %c0_i32_0 : i32
    scf.if %2 {
      %cst_10 = arith.constant 0.000000e+00 : f32
      %12 = vector.broadcast %cst_10 : f32 to vector<128x128xf32>
      %c0_11 = arith.constant 0 : index
      %c0_12 = arith.constant 0 : index
      %13 = vector.load %arg6[%c0_11, %c0_12] : memref<128x128xf32, #tpu.memory_space<vmem>>, vector<128x128xf32>
      tpu.vector_store %arg6[%c0_11, %c0_12], %12 {strides = array<i32>} : memref<128x128xf32, #tpu.memory_space<vmem>>, vector<128x128xf32>,
    } else {
    }
    %c0 = arith.constant 0 : index
    %c0_1 = arith.constant 0 : index
    %3 = vector.load %arg6[%c0, %c0_1] : memref<128x128xf32, #tpu.memory_space<vmem>>, vector<128x128xf32>
    %c0_2 = arith.constant 0 : index
    %c0_3 = arith.constant 0 : index
    %4 = vector.load %arg3[%c0_2, %c0_3] : memref<128x256xbf16, #tpu.memory_space<vmem>>, vector<128x256xbf16>
    %c0_4 = arith.constant 0 : index
    %c0_5 = arith.constant 0 : index
    %5 = vector.load %arg4[%c0_4, %c0_5] : memref<256x128xbf16, #tpu.memory_space<vmem>>, vector<256x128xbf16>
    %cst = arith.constant dense<0.000000e+00> : vector<128x128xf32>
    %6 = tpu.matmul %4, %5, %cst {dimension_numbers = #tpu.dot_dimension_numbers<[1], [0], [0], [1], [0, 0, 1, 1], [], []>} : vector<128x256xbf16>, vector<256x128xbf16>, vector<128x128xf32> -> vector<128x128xf32>
    %7 = arith.addf %3, %6 : vector<128x128xf32>
    %c0_6 = arith.constant 0 : index
    %c0_7 = arith.constant 0 : index
    %8 = vector.load %arg6[%c0_6, %c0_7] : memref<128x128xf32, #tpu.memory_space<vmem>>, vector<128x128xf32>
    tpu.vector_store %arg6[%c0_6, %c0_7], %7 {strides = array<i32>} : memref<128x128xf32, #tpu.memory_space<vmem>>, vector<128x128xf32>,
    %c0_i32_8 = arith.constant 0 : i32
    %9 = arith.cmpi eq, %arg2, %c0_i32_8 : i32
    %10 = arith.extui %9 : i1 to i32
    %c0_i32_9 = arith.constant 0 : i32
    %11 = arith.cmpi ne, %10, %c0_i32_9 : i32
    scf.if %11 {
      %c0_10 = arith.constant 0 : index
      %c0_11 = arith.constant 0 : index
      %12 = vector.load %arg6[%c0_10, %c0_11] : memref<128x128xf32, #tpu.memory_space<vmem>>, vector<128x128xf32>
      %c0_12 = arith.constant 0 : index
      %c0_13 = arith.constant 0 : index
      %13 = vector.load %arg5[%c0_12, %c0_13] : memref<128x128xf32, #tpu.memory_space<vmem>>, vector<128x128xf32>
      tpu.vector_store %arg5[%c0_12, %c0_13], %12 {strides = array<i32>} : memref<128x128xf32, #tpu.memory_space<vmem>>, vector<128x128xf32>,
    } else {
    }
    return
  }
  func.func @transform_0(%arg0: i32, %arg1: i32, %arg2: i32) -> (i32, i32) {
    %c0_i32 = arith.constant 0 : i32
    return %arg0, %arg2 : i32, i32
  }
  func.func @transform_1(%arg0: i32, %arg1: i32, %arg2: i32) -> (i32, i32) {
    %c0_i32 = arith.constant 0 : i32
    return %arg2, %arg1 : i32, i32
  }
  func.func @transform_2(%arg0: i32, %arg1: i32, %arg2: i32) -> (i32, i32) {
    %c0_i32 = arith.constant 0 : i32
    return %arg0, %arg1 : i32, i32
  }
}

module attributes {stable_mosaic.version = 11 : i64} {
  func.func @_inorm_kernel(%arg0: i32, %arg1: i32, %arg2: memref<1x16x32xf32, #tpu.memory_space<vmem>>, %arg3: memref<1x16x32xf32, #tpu.memory_space<vmem>>) attributes {dimension_semantics = [#tpu.dimension_semantics<parallel>, #tpu.dimension_semantics<parallel>], iteration_bounds = array<i64: 2, 1>, scalar_prefetch = 0 : i64, scratch_operands = 0 : i64, tpu.core_type = #tpu.core_type<tc>, window_params = [{transform_indices = @transform_0, window_bounds = array<i64: 1, 16, 32>}, {transform_indices = @transform_1, window_bounds = array<i64: 1, 16, 32>}]} {
    %c0 = arith.constant 0 : index
    %c0_0 = arith.constant 0 : index
    %c0_1 = arith.constant 0 : index
    %0 = vector.load %arg2[%c0, %c0_0, %c0_1] : memref<1x16x32xf32, #tpu.memory_space<vmem>>, vector<1x16x32xf32>
    %cst = arith.constant dense<0.000000e+00> : vector<1x32xf32>
    %1 = vector.multi_reduction <add>, %0, %cst [1] : vector<1x16x32xf32> to vector<1x32xf32>
    %2 = vector.shape_cast %1 : vector<1x32xf32> to vector<1x1x32xf32>
    %cst_2 = arith.constant 1.600000e+01 : f32
    %3 = vector.broadcast %cst_2 : f32 to vector<1x1x32xf32>
    %4 = arith.divf %2, %3 : vector<1x1x32xf32>
    %5 = vector.broadcast %4 : vector<1x1x32xf32> to vector<1x16x32xf32>
    %6 = arith.subf %0, %5 : vector<1x16x32xf32>
    %7 = arith.mulf %6, %6 : vector<1x16x32xf32>
    %cst_3 = arith.constant dense<0.000000e+00> : vector<1x32xf32>
    %8 = vector.multi_reduction <add>, %7, %cst_3 [1] : vector<1x16x32xf32> to vector<1x32xf32>
    %9 = vector.shape_cast %8 : vector<1x32xf32> to vector<1x1x32xf32>
    %cst_4 = arith.constant 1.600000e+01 : f32
    %10 = vector.broadcast %cst_4 : f32 to vector<1x1x32xf32>
    %11 = arith.divf %9, %10 : vector<1x1x32xf32>
    %cst_5 = arith.constant 9.99999974E-6 : f32
    %12 = vector.broadcast %cst_5 : f32 to vector<1x1x32xf32>
    %13 = arith.addf %11, %12 : vector<1x1x32xf32>
    %14 = math.rsqrt %13 : vector<1x1x32xf32>
    %15 = vector.broadcast %14 : vector<1x1x32xf32> to vector<1x16x32xf32>
    %16 = arith.mulf %6, %15 : vector<1x16x32xf32>
    %cst_6 = arith.constant 0.000000e+00 : f32
    %17 = vector.broadcast %cst_6 : f32 to vector<1x16x32xf32>
    %18 = arith.maximumf %16, %17 : vector<1x16x32xf32>
    %c0_7 = arith.constant 0 : index
    %c0_8 = arith.constant 0 : index
    %c0_9 = arith.constant 0 : index
    %19 = vector.load %arg3[%c0_7, %c0_8, %c0_9] : memref<1x16x32xf32, #tpu.memory_space<vmem>>, vector<1x16x32xf32>
    tpu.vector_store %arg3[%c0_7, %c0_8, %c0_9], %18 {strides = array<i32>} : memref<1x16x32xf32, #tpu.memory_space<vmem>>, vector<1x16x32xf32>,
    return
  }
  func.func @transform_0(%arg0: i32, %arg1: i32) -> (i32, i32, i32) {
    %c0_i32 = arith.constant 0 : i32
    %c0_i32_0 = arith.constant 0 : i32
    return %arg0, %c0_i32, %arg1 : i32, i32, i32
  }
  func.func @transform_1(%arg0: i32, %arg1: i32) -> (i32, i32, i32) {
    %c0_i32 = arith.constant 0 : i32
    %c0_i32_0 = arith.constant 0 : i32
    return %arg0, %c0_i32, %arg1 : i32, i32, i32
  }
}

module attributes {stable_mosaic.version = 11 : i64} {
  func.func @_matmul_kernel(%arg0: i32, %arg1: i32, %arg2: i32, %arg3: memref<32x256xbf16, #tpu.memory_space<vmem>>, %arg4: memref<256x128xbf16, #tpu.memory_space<vmem>>, %arg5: memref<32x128xf32, #tpu.memory_space<vmem>>, %arg6: memref<32x128xf32, #tpu.memory_space<vmem>>) attributes {dimension_semantics = [#tpu.dimension_semantics<parallel>, #tpu.dimension_semantics<parallel>, #tpu.dimension_semantics<arbitrary>], iteration_bounds = array<i64: 1, 1, 1>, scalar_prefetch = 0 : i64, scratch_operands = 1 : i64, tpu.core_type = #tpu.core_type<tc>, window_params = [{transform_indices = @transform_0, window_bounds = array<i64: 32, 256>}, {transform_indices = @transform_1, window_bounds = array<i64: 256, 128>}, {transform_indices = @transform_2, window_bounds = array<i64: 32, 128>}]} {
    %c0_i32 = arith.constant 0 : i32
    %0 = arith.cmpi eq, %arg2, %c0_i32 : i32
    %1 = arith.extui %0 : i1 to i32
    %c0_i32_0 = arith.constant 0 : i32
    %2 = arith.cmpi ne, %1, %c0_i32_0 : i32
    scf.if %2 {
      %cst_10 = arith.constant 0.000000e+00 : f32
      %12 = vector.broadcast %cst_10 : f32 to vector<32x128xf32>
      %c0_11 = arith.constant 0 : index
      %c0_12 = arith.constant 0 : index
      %13 = vector.load %arg6[%c0_11, %c0_12] : memref<32x128xf32, #tpu.memory_space<vmem>>, vector<32x128xf32>
      tpu.vector_store %arg6[%c0_11, %c0_12], %12 {strides = array<i32>} : memref<32x128xf32, #tpu.memory_space<vmem>>, vector<32x128xf32>,
    } else {
    }
    %c0 = arith.constant 0 : index
    %c0_1 = arith.constant 0 : index
    %3 = vector.load %arg6[%c0, %c0_1] : memref<32x128xf32, #tpu.memory_space<vmem>>, vector<32x128xf32>
    %c0_2 = arith.constant 0 : index
    %c0_3 = arith.constant 0 : index
    %4 = vector.load %arg3[%c0_2, %c0_3] : memref<32x256xbf16, #tpu.memory_space<vmem>>, vector<32x256xbf16>
    %c0_4 = arith.constant 0 : index
    %c0_5 = arith.constant 0 : index
    %5 = vector.load %arg4[%c0_4, %c0_5] : memref<256x128xbf16, #tpu.memory_space<vmem>>, vector<256x128xbf16>
    %cst = arith.constant dense<0.000000e+00> : vector<32x128xf32>
    %6 = tpu.matmul %4, %5, %cst {dimension_numbers = #tpu.dot_dimension_numbers<[1], [0], [0], [1], [0, 0, 1, 1], [], []>} : vector<32x256xbf16>, vector<256x128xbf16>, vector<32x128xf32> -> vector<32x128xf32>
    %7 = arith.addf %3, %6 : vector<32x128xf32>
    %c0_6 = arith.constant 0 : index
    %c0_7 = arith.constant 0 : index
    %8 = vector.load %arg6[%c0_6, %c0_7] : memref<32x128xf32, #tpu.memory_space<vmem>>, vector<32x128xf32>
    tpu.vector_store %arg6[%c0_6, %c0_7], %7 {strides = array<i32>} : memref<32x128xf32, #tpu.memory_space<vmem>>, vector<32x128xf32>,
    %c0_i32_8 = arith.constant 0 : i32
    %9 = arith.cmpi eq, %arg2, %c0_i32_8 : i32
    %10 = arith.extui %9 : i1 to i32
    %c0_i32_9 = arith.constant 0 : i32
    %11 = arith.cmpi ne, %10, %c0_i32_9 : i32
    scf.if %11 {
      %c0_10 = arith.constant 0 : index
      %c0_11 = arith.constant 0 : index
      %12 = vector.load %arg6[%c0_10, %c0_11] : memref<32x128xf32, #tpu.memory_space<vmem>>, vector<32x128xf32>
      %c0_12 = arith.constant 0 : index
      %c0_13 = arith.constant 0 : index
      %13 = vector.load %arg5[%c0_12, %c0_13] : memref<32x128xf32, #tpu.memory_space<vmem>>, vector<32x128xf32>
      tpu.vector_store %arg5[%c0_12, %c0_13], %12 {strides = array<i32>} : memref<32x128xf32, #tpu.memory_space<vmem>>, vector<32x128xf32>,
    } else {
    }
    return
  }
  func.func @transform_0(%arg0: i32, %arg1: i32, %arg2: i32) -> (i32, i32) {
    %c0_i32 = arith.constant 0 : i32
    return %arg0, %arg2 : i32, i32
  }
  func.func @transform_1(%arg0: i32, %arg1: i32, %arg2: i32) -> (i32, i32) {
    %c0_i32 = arith.constant 0 : i32
    return %arg2, %arg1 : i32, i32
  }
  func.func @transform_2(%arg0: i32, %arg1: i32, %arg2: i32) -> (i32, i32) {
    %c0_i32 = arith.constant 0 : i32
    return %arg0, %arg1 : i32, i32
  }
}

module attributes {stable_mosaic.version = 11 : i64} {
  func.func @_matmul_kernel(%arg0: i32, %arg1: i32, %arg2: i32, %arg3: memref<32x384xbf16, #tpu.memory_space<vmem>>, %arg4: memref<384x128xbf16, #tpu.memory_space<vmem>>, %arg5: memref<32x128xf32, #tpu.memory_space<vmem>>, %arg6: memref<32x128xf32, #tpu.memory_space<vmem>>) attributes {dimension_semantics = [#tpu.dimension_semantics<parallel>, #tpu.dimension_semantics<parallel>, #tpu.dimension_semantics<arbitrary>], iteration_bounds = array<i64: 1, 1, 1>, scalar_prefetch = 0 : i64, scratch_operands = 1 : i64, tpu.core_type = #tpu.core_type<tc>, window_params = [{transform_indices = @transform_0, window_bounds = array<i64: 32, 384>}, {transform_indices = @transform_1, window_bounds = array<i64: 384, 128>}, {transform_indices = @transform_2, window_bounds = array<i64: 32, 128>}]} {
    %c0_i32 = arith.constant 0 : i32
    %0 = arith.cmpi eq, %arg2, %c0_i32 : i32
    %1 = arith.extui %0 : i1 to i32
    %c0_i32_0 = arith.constant 0 : i32
    %2 = arith.cmpi ne, %1, %c0_i32_0 : i32
    scf.if %2 {
      %cst_10 = arith.constant 0.000000e+00 : f32
      %12 = vector.broadcast %cst_10 : f32 to vector<32x128xf32>
      %c0_11 = arith.constant 0 : index
      %c0_12 = arith.constant 0 : index
      %13 = vector.load %arg6[%c0_11, %c0_12] : memref<32x128xf32, #tpu.memory_space<vmem>>, vector<32x128xf32>
      tpu.vector_store %arg6[%c0_11, %c0_12], %12 {strides = array<i32>} : memref<32x128xf32, #tpu.memory_space<vmem>>, vector<32x128xf32>,
    } else {
    }
    %c0 = arith.constant 0 : index
    %c0_1 = arith.constant 0 : index
    %3 = vector.load %arg6[%c0, %c0_1] : memref<32x128xf32, #tpu.memory_space<vmem>>, vector<32x128xf32>
    %c0_2 = arith.constant 0 : index
    %c0_3 = arith.constant 0 : index
    %4 = vector.load %arg3[%c0_2, %c0_3] : memref<32x384xbf16, #tpu.memory_space<vmem>>, vector<32x384xbf16>
    %c0_4 = arith.constant 0 : index
    %c0_5 = arith.constant 0 : index
    %5 = vector.load %arg4[%c0_4, %c0_5] : memref<384x128xbf16, #tpu.memory_space<vmem>>, vector<384x128xbf16>
    %cst = arith.constant dense<0.000000e+00> : vector<32x128xf32>
    %6 = tpu.matmul %4, %5, %cst {dimension_numbers = #tpu.dot_dimension_numbers<[1], [0], [0], [1], [0, 0, 1, 1], [], []>} : vector<32x384xbf16>, vector<384x128xbf16>, vector<32x128xf32> -> vector<32x128xf32>
    %7 = arith.addf %3, %6 : vector<32x128xf32>
    %c0_6 = arith.constant 0 : index
    %c0_7 = arith.constant 0 : index
    %8 = vector.load %arg6[%c0_6, %c0_7] : memref<32x128xf32, #tpu.memory_space<vmem>>, vector<32x128xf32>
    tpu.vector_store %arg6[%c0_6, %c0_7], %7 {strides = array<i32>} : memref<32x128xf32, #tpu.memory_space<vmem>>, vector<32x128xf32>,
    %c0_i32_8 = arith.constant 0 : i32
    %9 = arith.cmpi eq, %arg2, %c0_i32_8 : i32
    %10 = arith.extui %9 : i1 to i32
    %c0_i32_9 = arith.constant 0 : i32
    %11 = arith.cmpi ne, %10, %c0_i32_9 : i32
    scf.if %11 {
      %c0_10 = arith.constant 0 : index
      %c0_11 = arith.constant 0 : index
      %12 = vector.load %arg6[%c0_10, %c0_11] : memref<32x128xf32, #tpu.memory_space<vmem>>, vector<32x128xf32>
      %c0_12 = arith.constant 0 : index
      %c0_13 = arith.constant 0 : index
      %13 = vector.load %arg5[%c0_12, %c0_13] : memref<32x128xf32, #tpu.memory_space<vmem>>, vector<32x128xf32>
      tpu.vector_store %arg5[%c0_12, %c0_13], %12 {strides = array<i32>} : memref<32x128xf32, #tpu.memory_space<vmem>>, vector<32x128xf32>,
    } else {
    }
    return
  }
  func.func @transform_0(%arg0: i32, %arg1: i32, %arg2: i32) -> (i32, i32) {
    %c0_i32 = arith.constant 0 : i32
    return %arg0, %arg2 : i32, i32
  }
  func.func @transform_1(%arg0: i32, %arg1: i32, %arg2: i32) -> (i32, i32) {
    %c0_i32 = arith.constant 0 : i32
    return %arg2, %arg1 : i32, i32
  }
  func.func @transform_2(%arg0: i32, %arg1: i32, %arg2: i32) -> (i32, i32) {
    %c0_i32 = arith.constant 0 : i32
    return %arg0, %arg1 : i32, i32
  }
}

module attributes {stable_mosaic.version = 11 : i64} {
  func.func @_inorm_add_kernel(%arg0: i32, %arg1: i32, %arg2: memref<1x16x32xf32, #tpu.memory_space<vmem>>, %arg3: memref<1x16x32xf32, #tpu.memory_space<vmem>>, %arg4: memref<1x16x32xf32, #tpu.memory_space<vmem>>) attributes {dimension_semantics = [#tpu.dimension_semantics<parallel>, #tpu.dimension_semantics<parallel>], iteration_bounds = array<i64: 2, 1>, scalar_prefetch = 0 : i64, scratch_operands = 0 : i64, tpu.core_type = #tpu.core_type<tc>, window_params = [{transform_indices = @transform_0, window_bounds = array<i64: 1, 16, 32>}, {transform_indices = @transform_1, window_bounds = array<i64: 1, 16, 32>}, {transform_indices = @transform_2, window_bounds = array<i64: 1, 16, 32>}]} {
    %c0 = arith.constant 0 : index
    %c0_0 = arith.constant 0 : index
    %c0_1 = arith.constant 0 : index
    %0 = vector.load %arg2[%c0, %c0_0, %c0_1] : memref<1x16x32xf32, #tpu.memory_space<vmem>>, vector<1x16x32xf32>
    %cst = arith.constant dense<0.000000e+00> : vector<1x32xf32>
    %1 = vector.multi_reduction <add>, %0, %cst [1] : vector<1x16x32xf32> to vector<1x32xf32>
    %2 = vector.shape_cast %1 : vector<1x32xf32> to vector<1x1x32xf32>
    %cst_2 = arith.constant 1.600000e+01 : f32
    %3 = vector.broadcast %cst_2 : f32 to vector<1x1x32xf32>
    %4 = arith.divf %2, %3 : vector<1x1x32xf32>
    %5 = vector.broadcast %4 : vector<1x1x32xf32> to vector<1x16x32xf32>
    %6 = arith.subf %0, %5 : vector<1x16x32xf32>
    %7 = arith.mulf %6, %6 : vector<1x16x32xf32>
    %cst_3 = arith.constant dense<0.000000e+00> : vector<1x32xf32>
    %8 = vector.multi_reduction <add>, %7, %cst_3 [1] : vector<1x16x32xf32> to vector<1x32xf32>
    %9 = vector.shape_cast %8 : vector<1x32xf32> to vector<1x1x32xf32>
    %cst_4 = arith.constant 1.600000e+01 : f32
    %10 = vector.broadcast %cst_4 : f32 to vector<1x1x32xf32>
    %11 = arith.divf %9, %10 : vector<1x1x32xf32>
    %cst_5 = arith.constant 9.99999974E-6 : f32
    %12 = vector.broadcast %cst_5 : f32 to vector<1x1x32xf32>
    %13 = arith.addf %11, %12 : vector<1x1x32xf32>
    %14 = math.rsqrt %13 : vector<1x1x32xf32>
    %15 = vector.broadcast %14 : vector<1x1x32xf32> to vector<1x16x32xf32>
    %16 = arith.mulf %6, %15 : vector<1x16x32xf32>
    %c0_6 = arith.constant 0 : index
    %c0_7 = arith.constant 0 : index
    %c0_8 = arith.constant 0 : index
    %17 = vector.load %arg3[%c0_6, %c0_7, %c0_8] : memref<1x16x32xf32, #tpu.memory_space<vmem>>, vector<1x16x32xf32>
    %18 = arith.addf %16, %17 : vector<1x16x32xf32>
    %c0_9 = arith.constant 0 : index
    %c0_10 = arith.constant 0 : index
    %c0_11 = arith.constant 0 : index
    %19 = vector.load %arg4[%c0_9, %c0_10, %c0_11] : memref<1x16x32xf32, #tpu.memory_space<vmem>>, vector<1x16x32xf32>
    tpu.vector_store %arg4[%c0_9, %c0_10, %c0_11], %18 {strides = array<i32>} : memref<1x16x32xf32, #tpu.memory_space<vmem>>, vector<1x16x32xf32>,
    return
  }
  func.func @transform_0(%arg0: i32, %arg1: i32) -> (i32, i32, i32) {
    %c0_i32 = arith.constant 0 : i32
    %c0_i32_0 = arith.constant 0 : i32
    return %arg0, %c0_i32, %arg1 : i32, i32, i32
  }
  func.func @transform_1(%arg0: i32, %arg1: i32) -> (i32, i32, i32) {
    %c0_i32 = arith.constant 0 : i32
    %c0_i32_0 = arith.constant 0 : i32
    return %arg0, %c0_i32, %arg1 : i32, i32, i32
  }
  func.func @transform_2(%arg0: i32, %arg1: i32) -> (i32, i32, i32) {
    %c0_i32 = arith.constant 0 : i32
    %c0_i32_0 = arith.constant 0 : i32
    return %arg0, %c0_i32, %arg1 : i32, i32, i32
  }
}

module attributes {stable_mosaic.version = 11 : i64} {
  func.func @_matmul_kernel(%arg0: i32, %arg1: i32, %arg2: i32, %arg3: memref<16x512xbf16, #tpu.memory_space<vmem>>, %arg4: memref<512x128xbf16, #tpu.memory_space<vmem>>, %arg5: memref<16x128xf32, #tpu.memory_space<vmem>>, %arg6: memref<16x128xf32, #tpu.memory_space<vmem>>) attributes {dimension_semantics = [#tpu.dimension_semantics<parallel>, #tpu.dimension_semantics<parallel>, #tpu.dimension_semantics<arbitrary>], iteration_bounds = array<i64: 1, 1, 1>, scalar_prefetch = 0 : i64, scratch_operands = 1 : i64, tpu.core_type = #tpu.core_type<tc>, window_params = [{transform_indices = @transform_0, window_bounds = array<i64: 16, 512>}, {transform_indices = @transform_1, window_bounds = array<i64: 512, 128>}, {transform_indices = @transform_2, window_bounds = array<i64: 16, 128>}]} {
    %c0_i32 = arith.constant 0 : i32
    %0 = arith.cmpi eq, %arg2, %c0_i32 : i32
    %1 = arith.extui %0 : i1 to i32
    %c0_i32_0 = arith.constant 0 : i32
    %2 = arith.cmpi ne, %1, %c0_i32_0 : i32
    scf.if %2 {
      %cst_10 = arith.constant 0.000000e+00 : f32
      %12 = vector.broadcast %cst_10 : f32 to vector<16x128xf32>
      %c0_11 = arith.constant 0 : index
      %c0_12 = arith.constant 0 : index
      %13 = vector.load %arg6[%c0_11, %c0_12] : memref<16x128xf32, #tpu.memory_space<vmem>>, vector<16x128xf32>
      tpu.vector_store %arg6[%c0_11, %c0_12], %12 {strides = array<i32>} : memref<16x128xf32, #tpu.memory_space<vmem>>, vector<16x128xf32>,
    } else {
    }
    %c0 = arith.constant 0 : index
    %c0_1 = arith.constant 0 : index
    %3 = vector.load %arg6[%c0, %c0_1] : memref<16x128xf32, #tpu.memory_space<vmem>>, vector<16x128xf32>
    %c0_2 = arith.constant 0 : index
    %c0_3 = arith.constant 0 : index
    %4 = vector.load %arg3[%c0_2, %c0_3] : memref<16x512xbf16, #tpu.memory_space<vmem>>, vector<16x512xbf16>
    %c0_4 = arith.constant 0 : index
    %c0_5 = arith.constant 0 : index
    %5 = vector.load %arg4[%c0_4, %c0_5] : memref<512x128xbf16, #tpu.memory_space<vmem>>, vector<512x128xbf16>
    %cst = arith.constant dense<0.000000e+00> : vector<16x128xf32>
    %6 = tpu.matmul %4, %5, %cst {dimension_numbers = #tpu.dot_dimension_numbers<[1], [0], [0], [1], [0, 0, 1, 1], [], []>} : vector<16x512xbf16>, vector<512x128xbf16>, vector<16x128xf32> -> vector<16x128xf32>
    %7 = arith.addf %3, %6 : vector<16x128xf32>
    %c0_6 = arith.constant 0 : index
    %c0_7 = arith.constant 0 : index
    %8 = vector.load %arg6[%c0_6, %c0_7] : memref<16x128xf32, #tpu.memory_space<vmem>>, vector<16x128xf32>
    tpu.vector_store %arg6[%c0_6, %c0_7], %7 {strides = array<i32>} : memref<16x128xf32, #tpu.memory_space<vmem>>, vector<16x128xf32>,
    %c0_i32_8 = arith.constant 0 : i32
    %9 = arith.cmpi eq, %arg2, %c0_i32_8 : i32
    %10 = arith.extui %9 : i1 to i32
    %c0_i32_9 = arith.constant 0 : i32
    %11 = arith.cmpi ne, %10, %c0_i32_9 : i32
    scf.if %11 {
      %c0_10 = arith.constant 0 : index
      %c0_11 = arith.constant 0 : index
      %12 = vector.load %arg6[%c0_10, %c0_11] : memref<16x128xf32, #tpu.memory_space<vmem>>, vector<16x128xf32>
      %c0_12 = arith.constant 0 : index
      %c0_13 = arith.constant 0 : index
      %13 = vector.load %arg5[%c0_12, %c0_13] : memref<16x128xf32, #tpu.memory_space<vmem>>, vector<16x128xf32>
      tpu.vector_store %arg5[%c0_12, %c0_13], %12 {strides = array<i32>} : memref<16x128xf32, #tpu.memory_space<vmem>>, vector<16x128xf32>,
    } else {
    }
    return
  }
  func.func @transform_0(%arg0: i32, %arg1: i32, %arg2: i32) -> (i32, i32) {
    %c0_i32 = arith.constant 0 : i32
    return %arg0, %arg2 : i32, i32
  }
  func.func @transform_1(%arg0: i32, %arg1: i32, %arg2: i32) -> (i32, i32) {
    %c0_i32 = arith.constant 0 : i32
    return %arg2, %arg1 : i32, i32
  }
  func.func @transform_2(%arg0: i32, %arg1: i32, %arg2: i32) -> (i32, i32) {
    %c0_i32 = arith.constant 0 : i32
    return %arg0, %arg1 : i32, i32
  }
}

module attributes {stable_mosaic.version = 11 : i64} {
  func.func @_inorm_kernel(%arg0: i32, %arg1: i32, %arg2: memref<1x4x64xf32, #tpu.memory_space<vmem>>, %arg3: memref<1x4x64xf32, #tpu.memory_space<vmem>>) attributes {dimension_semantics = [#tpu.dimension_semantics<parallel>, #tpu.dimension_semantics<parallel>], iteration_bounds = array<i64: 2, 1>, scalar_prefetch = 0 : i64, scratch_operands = 0 : i64, tpu.core_type = #tpu.core_type<tc>, window_params = [{transform_indices = @transform_0, window_bounds = array<i64: 1, 4, 64>}, {transform_indices = @transform_1, window_bounds = array<i64: 1, 4, 64>}]} {
    %c0 = arith.constant 0 : index
    %c0_0 = arith.constant 0 : index
    %c0_1 = arith.constant 0 : index
    %0 = vector.load %arg2[%c0, %c0_0, %c0_1] : memref<1x4x64xf32, #tpu.memory_space<vmem>>, vector<1x4x64xf32>
    %cst = arith.constant dense<0.000000e+00> : vector<1x64xf32>
    %1 = vector.multi_reduction <add>, %0, %cst [1] : vector<1x4x64xf32> to vector<1x64xf32>
    %2 = vector.shape_cast %1 : vector<1x64xf32> to vector<1x1x64xf32>
    %cst_2 = arith.constant 4.000000e+00 : f32
    %3 = vector.broadcast %cst_2 : f32 to vector<1x1x64xf32>
    %4 = arith.divf %2, %3 : vector<1x1x64xf32>
    %5 = vector.broadcast %4 : vector<1x1x64xf32> to vector<1x4x64xf32>
    %6 = arith.subf %0, %5 : vector<1x4x64xf32>
    %7 = arith.mulf %6, %6 : vector<1x4x64xf32>
    %cst_3 = arith.constant dense<0.000000e+00> : vector<1x64xf32>
    %8 = vector.multi_reduction <add>, %7, %cst_3 [1] : vector<1x4x64xf32> to vector<1x64xf32>
    %9 = vector.shape_cast %8 : vector<1x64xf32> to vector<1x1x64xf32>
    %cst_4 = arith.constant 4.000000e+00 : f32
    %10 = vector.broadcast %cst_4 : f32 to vector<1x1x64xf32>
    %11 = arith.divf %9, %10 : vector<1x1x64xf32>
    %cst_5 = arith.constant 9.99999974E-6 : f32
    %12 = vector.broadcast %cst_5 : f32 to vector<1x1x64xf32>
    %13 = arith.addf %11, %12 : vector<1x1x64xf32>
    %14 = math.rsqrt %13 : vector<1x1x64xf32>
    %15 = vector.broadcast %14 : vector<1x1x64xf32> to vector<1x4x64xf32>
    %16 = arith.mulf %6, %15 : vector<1x4x64xf32>
    %cst_6 = arith.constant 0.000000e+00 : f32
    %17 = vector.broadcast %cst_6 : f32 to vector<1x4x64xf32>
    %18 = arith.maximumf %16, %17 : vector<1x4x64xf32>
    %c0_7 = arith.constant 0 : index
    %c0_8 = arith.constant 0 : index
    %c0_9 = arith.constant 0 : index
    %19 = vector.load %arg3[%c0_7, %c0_8, %c0_9] : memref<1x4x64xf32, #tpu.memory_space<vmem>>, vector<1x4x64xf32>
    tpu.vector_store %arg3[%c0_7, %c0_8, %c0_9], %18 {strides = array<i32>} : memref<1x4x64xf32, #tpu.memory_space<vmem>>, vector<1x4x64xf32>,
    return
  }
  func.func @transform_0(%arg0: i32, %arg1: i32) -> (i32, i32, i32) {
    %c0_i32 = arith.constant 0 : i32
    %c0_i32_0 = arith.constant 0 : i32
    return %arg0, %c0_i32, %arg1 : i32, i32, i32
  }
  func.func @transform_1(%arg0: i32, %arg1: i32) -> (i32, i32, i32) {
    %c0_i32 = arith.constant 0 : i32
    %c0_i32_0 = arith.constant 0 : i32
    return %arg0, %c0_i32, %arg1 : i32, i32, i32
  }
}

module attributes {stable_mosaic.version = 11 : i64} {
  func.func @_matmul_kernel(%arg0: i32, %arg1: i32, %arg2: i32, %arg3: memref<16x512xbf16, #tpu.memory_space<vmem>>, %arg4: memref<512x128xbf16, #tpu.memory_space<vmem>>, %arg5: memref<16x128xf32, #tpu.memory_space<vmem>>, %arg6: memref<16x128xf32, #tpu.memory_space<vmem>>) attributes {dimension_semantics = [#tpu.dimension_semantics<parallel>, #tpu.dimension_semantics<parallel>, #tpu.dimension_semantics<arbitrary>], iteration_bounds = array<i64: 1, 1, 2>, scalar_prefetch = 0 : i64, scratch_operands = 1 : i64, tpu.core_type = #tpu.core_type<tc>, window_params = [{transform_indices = @transform_0, window_bounds = array<i64: 16, 512>}, {transform_indices = @transform_1, window_bounds = array<i64: 512, 128>}, {transform_indices = @transform_2, window_bounds = array<i64: 16, 128>}]} {
    %c0_i32 = arith.constant 0 : i32
    %0 = arith.cmpi eq, %arg2, %c0_i32 : i32
    %1 = arith.extui %0 : i1 to i32
    %c0_i32_0 = arith.constant 0 : i32
    %2 = arith.cmpi ne, %1, %c0_i32_0 : i32
    scf.if %2 {
      %cst_9 = arith.constant 0.000000e+00 : f32
      %12 = vector.broadcast %cst_9 : f32 to vector<16x128xf32>
      %c0_10 = arith.constant 0 : index
      %c0_11 = arith.constant 0 : index
      %13 = vector.load %arg6[%c0_10, %c0_11] : memref<16x128xf32, #tpu.memory_space<vmem>>, vector<16x128xf32>
      tpu.vector_store %arg6[%c0_10, %c0_11], %12 {strides = array<i32>} : memref<16x128xf32, #tpu.memory_space<vmem>>, vector<16x128xf32>,
    } else {
    }
    %c0 = arith.constant 0 : index
    %c0_1 = arith.constant 0 : index
    %3 = vector.load %arg6[%c0, %c0_1] : memref<16x128xf32, #tpu.memory_space<vmem>>, vector<16x128xf32>
    %c0_2 = arith.constant 0 : index
    %c0_3 = arith.constant 0 : index
    %4 = vector.load %arg3[%c0_2, %c0_3] : memref<16x512xbf16, #tpu.memory_space<vmem>>, vector<16x512xbf16>
    %c0_4 = arith.constant 0 : index
    %c0_5 = arith.constant 0 : index
    %5 = vector.load %arg4[%c0_4, %c0_5] : memref<512x128xbf16, #tpu.memory_space<vmem>>, vector<512x128xbf16>
    %cst = arith.constant dense<0.000000e+00> : vector<16x128xf32>
    %6 = tpu.matmul %4, %5, %cst {dimension_numbers = #tpu.dot_dimension_numbers<[1], [0], [0], [1], [0, 0, 1, 1], [], []>} : vector<16x512xbf16>, vector<512x128xbf16>, vector<16x128xf32> -> vector<16x128xf32>
    %7 = arith.addf %3, %6 : vector<16x128xf32>
    %c0_6 = arith.constant 0 : index
    %c0_7 = arith.constant 0 : index
    %8 = vector.load %arg6[%c0_6, %c0_7] : memref<16x128xf32, #tpu.memory_space<vmem>>, vector<16x128xf32>
    tpu.vector_store %arg6[%c0_6, %c0_7], %7 {strides = array<i32>} : memref<16x128xf32, #tpu.memory_space<vmem>>, vector<16x128xf32>,
    %c1_i32 = arith.constant 1 : i32
    %9 = arith.cmpi eq, %arg2, %c1_i32 : i32
    %10 = arith.extui %9 : i1 to i32
    %c0_i32_8 = arith.constant 0 : i32
    %11 = arith.cmpi ne, %10, %c0_i32_8 : i32
    scf.if %11 {
      %c0_9 = arith.constant 0 : index
      %c0_10 = arith.constant 0 : index
      %12 = vector.load %arg6[%c0_9, %c0_10] : memref<16x128xf32, #tpu.memory_space<vmem>>, vector<16x128xf32>
      %c0_11 = arith.constant 0 : index
      %c0_12 = arith.constant 0 : index
      %13 = vector.load %arg5[%c0_11, %c0_12] : memref<16x128xf32, #tpu.memory_space<vmem>>, vector<16x128xf32>
      tpu.vector_store %arg5[%c0_11, %c0_12], %12 {strides = array<i32>} : memref<16x128xf32, #tpu.memory_space<vmem>>, vector<16x128xf32>,
    } else {
    }
    return
  }
  func.func @transform_0(%arg0: i32, %arg1: i32, %arg2: i32) -> (i32, i32) {
    %c0_i32 = arith.constant 0 : i32
    return %arg0, %arg2 : i32, i32
  }
  func.func @transform_1(%arg0: i32, %arg1: i32, %arg2: i32) -> (i32, i32) {
    %c0_i32 = arith.constant 0 : i32
    return %arg2, %arg1 : i32, i32
  }
  func.func @transform_2(%arg0: i32, %arg1: i32, %arg2: i32) -> (i32, i32) {
    %c0_i32 = arith.constant 0 : i32
    return %arg0, %arg1 : i32, i32
  }
}

module attributes {stable_mosaic.version = 11 : i64} {
  func.func @_inorm_add_kernel(%arg0: i32, %arg1: i32, %arg2: memref<1x4x64xf32, #tpu.memory_space<vmem>>, %arg3: memref<1x4x64xf32, #tpu.memory_space<vmem>>, %arg4: memref<1x4x64xf32, #tpu.memory_space<vmem>>) attributes {dimension_semantics = [#tpu.dimension_semantics<parallel>, #tpu.dimension_semantics<parallel>], iteration_bounds = array<i64: 2, 1>, scalar_prefetch = 0 : i64, scratch_operands = 0 : i64, tpu.core_type = #tpu.core_type<tc>, window_params = [{transform_indices = @transform_0, window_bounds = array<i64: 1, 4, 64>}, {transform_indices = @transform_1, window_bounds = array<i64: 1, 4, 64>}, {transform_indices = @transform_2, window_bounds = array<i64: 1, 4, 64>}]} {
    %c0 = arith.constant 0 : index
    %c0_0 = arith.constant 0 : index
    %c0_1 = arith.constant 0 : index
    %0 = vector.load %arg2[%c0, %c0_0, %c0_1] : memref<1x4x64xf32, #tpu.memory_space<vmem>>, vector<1x4x64xf32>
    %cst = arith.constant dense<0.000000e+00> : vector<1x64xf32>
    %1 = vector.multi_reduction <add>, %0, %cst [1] : vector<1x4x64xf32> to vector<1x64xf32>
    %2 = vector.shape_cast %1 : vector<1x64xf32> to vector<1x1x64xf32>
    %cst_2 = arith.constant 4.000000e+00 : f32
    %3 = vector.broadcast %cst_2 : f32 to vector<1x1x64xf32>
    %4 = arith.divf %2, %3 : vector<1x1x64xf32>
    %5 = vector.broadcast %4 : vector<1x1x64xf32> to vector<1x4x64xf32>
    %6 = arith.subf %0, %5 : vector<1x4x64xf32>
    %7 = arith.mulf %6, %6 : vector<1x4x64xf32>
    %cst_3 = arith.constant dense<0.000000e+00> : vector<1x64xf32>
    %8 = vector.multi_reduction <add>, %7, %cst_3 [1] : vector<1x4x64xf32> to vector<1x64xf32>
    %9 = vector.shape_cast %8 : vector<1x64xf32> to vector<1x1x64xf32>
    %cst_4 = arith.constant 4.000000e+00 : f32
    %10 = vector.broadcast %cst_4 : f32 to vector<1x1x64xf32>
    %11 = arith.divf %9, %10 : vector<1x1x64xf32>
    %cst_5 = arith.constant 9.99999974E-6 : f32
    %12 = vector.broadcast %cst_5 : f32 to vector<1x1x64xf32>
    %13 = arith.addf %11, %12 : vector<1x1x64xf32>
    %14 = math.rsqrt %13 : vector<1x1x64xf32>
    %15 = vector.broadcast %14 : vector<1x1x64xf32> to vector<1x4x64xf32>
    %16 = arith.mulf %6, %15 : vector<1x4x64xf32>
    %c0_6 = arith.constant 0 : index
    %c0_7 = arith.constant 0 : index
    %c0_8 = arith.constant 0 : index
    %17 = vector.load %arg3[%c0_6, %c0_7, %c0_8] : memref<1x4x64xf32, #tpu.memory_space<vmem>>, vector<1x4x64xf32>
    %18 = arith.addf %16, %17 : vector<1x4x64xf32>
    %c0_9 = arith.constant 0 : index
    %c0_10 = arith.constant 0 : index
    %c0_11 = arith.constant 0 : index
    %19 = vector.load %arg4[%c0_9, %c0_10, %c0_11] : memref<1x4x64xf32, #tpu.memory_space<vmem>>, vector<1x4x64xf32>
    tpu.vector_store %arg4[%c0_9, %c0_10, %c0_11], %18 {strides = array<i32>} : memref<1x4x64xf32, #tpu.memory_space<vmem>>, vector<1x4x64xf32>,
    return
  }
  func.func @transform_0(%arg0: i32, %arg1: i32) -> (i32, i32, i32) {
    %c0_i32 = arith.constant 0 : i32
    %c0_i32_0 = arith.constant 0 : i32
    return %arg0, %c0_i32, %arg1 : i32, i32, i32
  }
  func.func @transform_1(%arg0: i32, %arg1: i32) -> (i32, i32, i32) {
    %c0_i32 = arith.constant 0 : i32
    %c0_i32_0 = arith.constant 0 : i32
    return %arg0, %c0_i32, %arg1 : i32, i32, i32
  }
  func.func @transform_2(%arg0: i32, %arg1: i32) -> (i32, i32, i32) {
    %c0_i32 = arith.constant 0 : i32
    %c0_i32_0 = arith.constant 0 : i32
    return %arg0, %c0_i32, %arg1 : i32, i32, i32
  }
}

module attributes {stable_mosaic.version = 11 : i64} {
  func.func @_inorm_add_gate_kernel(%arg0: i32, %arg1: i32, %arg2: memref<1x4x64xf32, #tpu.memory_space<vmem>>, %arg3: memref<1x4x64xf32, #tpu.memory_space<vmem>>, %arg4: memref<1x4x64xf32, #tpu.memory_space<vmem>>, %arg5: memref<1x4x64xf32, #tpu.memory_space<vmem>>) attributes {dimension_semantics = [#tpu.dimension_semantics<parallel>, #tpu.dimension_semantics<parallel>], iteration_bounds = array<i64: 2, 1>, scalar_prefetch = 0 : i64, scratch_operands = 0 : i64, tpu.core_type = #tpu.core_type<tc>, window_params = [{transform_indices = @transform_0, window_bounds = array<i64: 1, 4, 64>}, {transform_indices = @transform_1, window_bounds = array<i64: 1, 4, 64>}, {transform_indices = @transform_2, window_bounds = array<i64: 1, 4, 64>}, {transform_indices = @transform_3, window_bounds = array<i64: 1, 4, 64>}]} {
    %c0 = arith.constant 0 : index
    %c0_0 = arith.constant 0 : index
    %c0_1 = arith.constant 0 : index
    %0 = vector.load %arg2[%c0, %c0_0, %c0_1] : memref<1x4x64xf32, #tpu.memory_space<vmem>>, vector<1x4x64xf32>
    %cst = arith.constant dense<0.000000e+00> : vector<1x64xf32>
    %1 = vector.multi_reduction <add>, %0, %cst [1] : vector<1x4x64xf32> to vector<1x64xf32>
    %2 = vector.shape_cast %1 : vector<1x64xf32> to vector<1x1x64xf32>
    %cst_2 = arith.constant 4.000000e+00 : f32
    %3 = vector.broadcast %cst_2 : f32 to vector<1x1x64xf32>
    %4 = arith.divf %2, %3 : vector<1x1x64xf32>
    %5 = vector.broadcast %4 : vector<1x1x64xf32> to vector<1x4x64xf32>
    %6 = arith.subf %0, %5 : vector<1x4x64xf32>
    %7 = arith.mulf %6, %6 : vector<1x4x64xf32>
    %cst_3 = arith.constant dense<0.000000e+00> : vector<1x64xf32>
    %8 = vector.multi_reduction <add>, %7, %cst_3 [1] : vector<1x4x64xf32> to vector<1x64xf32>
    %9 = vector.shape_cast %8 : vector<1x64xf32> to vector<1x1x64xf32>
    %cst_4 = arith.constant 4.000000e+00 : f32
    %10 = vector.broadcast %cst_4 : f32 to vector<1x1x64xf32>
    %11 = arith.divf %9, %10 : vector<1x1x64xf32>
    %cst_5 = arith.constant 9.99999974E-6 : f32
    %12 = vector.broadcast %cst_5 : f32 to vector<1x1x64xf32>
    %13 = arith.addf %11, %12 : vector<1x1x64xf32>
    %14 = math.rsqrt %13 : vector<1x1x64xf32>
    %15 = vector.broadcast %14 : vector<1x1x64xf32> to vector<1x4x64xf32>
    %16 = arith.mulf %6, %15 : vector<1x4x64xf32>
    %c0_6 = arith.constant 0 : index
    %c0_7 = arith.constant 0 : index
    %c0_8 = arith.constant 0 : index
    %17 = vector.load %arg3[%c0_6, %c0_7, %c0_8] : memref<1x4x64xf32, #tpu.memory_space<vmem>>, vector<1x4x64xf32>
    %18 = arith.addf %16, %17 : vector<1x4x64xf32>
    %c0_9 = arith.constant 0 : index
    %c0_10 = arith.constant 0 : index
    %c0_11 = arith.constant 0 : index
    %19 = vector.load %arg4[%c0_9, %c0_10, %c0_11] : memref<1x4x64xf32, #tpu.memory_space<vmem>>, vector<1x4x64xf32>
    %20 = arith.negf %19 : vector<1x4x64xf32>
    %21 = math.exp %20 : vector<1x4x64xf32>
    %cst_12 = arith.constant 1.000000e+00 : f32
    %22 = vector.broadcast %cst_12 : f32 to vector<1x4x64xf32>
    %23 = arith.addf %22, %21 : vector<1x4x64xf32>
    %24 = arith.divf %22, %23 : vector<1x4x64xf32>
    %25 = arith.mulf %18, %24 : vector<1x4x64xf32>
    %c0_13 = arith.constant 0 : index
    %c0_14 = arith.constant 0 : index
    %c0_15 = arith.constant 0 : index
    %26 = vector.load %arg5[%c0_13, %c0_14, %c0_15] : memref<1x4x64xf32, #tpu.memory_space<vmem>>, vector<1x4x64xf32>
    tpu.vector_store %arg5[%c0_13, %c0_14, %c0_15], %25 {strides = array<i32>} : memref<1x4x64xf32, #tpu.memory_space<vmem>>, vector<1x4x64xf32>,
    return
  }
  func.func @transform_0(%arg0: i32, %arg1: i32) -> (i32, i32, i32) {
    %c0_i32 = arith.constant 0 : i32
    %c0_i32_0 = arith.constant 0 : i32
    return %arg0, %c0_i32, %arg1 : i32, i32, i32
  }
  func.func @transform_1(%arg0: i32, %arg1: i32) -> (i32, i32, i32) {
    %c0_i32 = arith.constant 0 : i32
    %c0_i32_0 = arith.constant 0 : i32
    return %arg0, %c0_i32, %arg1 : i32, i32, i32
  }
  func.func @transform_2(%arg0: i32, %arg1: i32) -> (i32, i32, i32) {
    %c0_i32 = arith.constant 0 : i32
    %c0_i32_0 = arith.constant 0 : i32
    return %arg0, %c0_i32, %arg1 : i32, i32, i32
  }
  func.func @transform_3(%arg0: i32, %arg1: i32) -> (i32, i32, i32) {
    %c0_i32 = arith.constant 0 : i32
    %c0_i32_0 = arith.constant 0 : i32
    return %arg0, %c0_i32, %arg1 : i32, i32, i32
  }
}

module attributes {stable_mosaic.version = 11 : i64} {
  func.func @_inorm_add_gate_kernel(%arg0: i32, %arg1: i32, %arg2: memref<1x16x32xf32, #tpu.memory_space<vmem>>, %arg3: memref<1x16x32xf32, #tpu.memory_space<vmem>>, %arg4: memref<1x16x32xf32, #tpu.memory_space<vmem>>, %arg5: memref<1x16x32xf32, #tpu.memory_space<vmem>>) attributes {dimension_semantics = [#tpu.dimension_semantics<parallel>, #tpu.dimension_semantics<parallel>], iteration_bounds = array<i64: 2, 1>, scalar_prefetch = 0 : i64, scratch_operands = 0 : i64, tpu.core_type = #tpu.core_type<tc>, window_params = [{transform_indices = @transform_0, window_bounds = array<i64: 1, 16, 32>}, {transform_indices = @transform_1, window_bounds = array<i64: 1, 16, 32>}, {transform_indices = @transform_2, window_bounds = array<i64: 1, 16, 32>}, {transform_indices = @transform_3, window_bounds = array<i64: 1, 16, 32>}]} {
    %c0 = arith.constant 0 : index
    %c0_0 = arith.constant 0 : index
    %c0_1 = arith.constant 0 : index
    %0 = vector.load %arg2[%c0, %c0_0, %c0_1] : memref<1x16x32xf32, #tpu.memory_space<vmem>>, vector<1x16x32xf32>
    %cst = arith.constant dense<0.000000e+00> : vector<1x32xf32>
    %1 = vector.multi_reduction <add>, %0, %cst [1] : vector<1x16x32xf32> to vector<1x32xf32>
    %2 = vector.shape_cast %1 : vector<1x32xf32> to vector<1x1x32xf32>
    %cst_2 = arith.constant 1.600000e+01 : f32
    %3 = vector.broadcast %cst_2 : f32 to vector<1x1x32xf32>
    %4 = arith.divf %2, %3 : vector<1x1x32xf32>
    %5 = vector.broadcast %4 : vector<1x1x32xf32> to vector<1x16x32xf32>
    %6 = arith.subf %0, %5 : vector<1x16x32xf32>
    %7 = arith.mulf %6, %6 : vector<1x16x32xf32>
    %cst_3 = arith.constant dense<0.000000e+00> : vector<1x32xf32>
    %8 = vector.multi_reduction <add>, %7, %cst_3 [1] : vector<1x16x32xf32> to vector<1x32xf32>
    %9 = vector.shape_cast %8 : vector<1x32xf32> to vector<1x1x32xf32>
    %cst_4 = arith.constant 1.600000e+01 : f32
    %10 = vector.broadcast %cst_4 : f32 to vector<1x1x32xf32>
    %11 = arith.divf %9, %10 : vector<1x1x32xf32>
    %cst_5 = arith.constant 9.99999974E-6 : f32
    %12 = vector.broadcast %cst_5 : f32 to vector<1x1x32xf32>
    %13 = arith.addf %11, %12 : vector<1x1x32xf32>
    %14 = math.rsqrt %13 : vector<1x1x32xf32>
    %15 = vector.broadcast %14 : vector<1x1x32xf32> to vector<1x16x32xf32>
    %16 = arith.mulf %6, %15 : vector<1x16x32xf32>
    %c0_6 = arith.constant 0 : index
    %c0_7 = arith.constant 0 : index
    %c0_8 = arith.constant 0 : index
    %17 = vector.load %arg3[%c0_6, %c0_7, %c0_8] : memref<1x16x32xf32, #tpu.memory_space<vmem>>, vector<1x16x32xf32>
    %18 = arith.addf %16, %17 : vector<1x16x32xf32>
    %c0_9 = arith.constant 0 : index
    %c0_10 = arith.constant 0 : index
    %c0_11 = arith.constant 0 : index
    %19 = vector.load %arg4[%c0_9, %c0_10, %c0_11] : memref<1x16x32xf32, #tpu.memory_space<vmem>>, vector<1x16x32xf32>
    %20 = arith.negf %19 : vector<1x16x32xf32>
    %21 = math.exp %20 : vector<1x16x32xf32>
    %cst_12 = arith.constant 1.000000e+00 : f32
    %22 = vector.broadcast %cst_12 : f32 to vector<1x16x32xf32>
    %23 = arith.addf %22, %21 : vector<1x16x32xf32>
    %24 = arith.divf %22, %23 : vector<1x16x32xf32>
    %25 = arith.mulf %18, %24 : vector<1x16x32xf32>
    %c0_13 = arith.constant 0 : index
    %c0_14 = arith.constant 0 : index
    %c0_15 = arith.constant 0 : index
    %26 = vector.load %arg5[%c0_13, %c0_14, %c0_15] : memref<1x16x32xf32, #tpu.memory_space<vmem>>, vector<1x16x32xf32>
    tpu.vector_store %arg5[%c0_13, %c0_14, %c0_15], %25 {strides = array<i32>} : memref<1x16x32xf32, #tpu.memory_space<vmem>>, vector<1x16x32xf32>,
    return
  }
  func.func @transform_0(%arg0: i32, %arg1: i32) -> (i32, i32, i32) {
    %c0_i32 = arith.constant 0 : i32
    %c0_i32_0 = arith.constant 0 : i32
    return %arg0, %c0_i32, %arg1 : i32, i32, i32
  }
  func.func @transform_1(%arg0: i32, %arg1: i32) -> (i32, i32, i32) {
    %c0_i32 = arith.constant 0 : i32
    %c0_i32_0 = arith.constant 0 : i32
    return %arg0, %c0_i32, %arg1 : i32, i32, i32
  }
  func.func @transform_2(%arg0: i32, %arg1: i32) -> (i32, i32, i32) {
    %c0_i32 = arith.constant 0 : i32
    %c0_i32_0 = arith.constant 0 : i32
    return %arg0, %c0_i32, %arg1 : i32, i32, i32
  }
  func.func @transform_3(%arg0: i32, %arg1: i32) -> (i32, i32, i32) {
    %c0_i32 = arith.constant 0 : i32
    %c0_i32_0 = arith.constant 0 : i32
    return %arg0, %c0_i32, %arg1 : i32, i32, i32
  }
}

module attributes {stable_mosaic.version = 11 : i64} {
  func.func @_matmul_kernel(%arg0: i32, %arg1: i32, %arg2: i32, %arg3: memref<64x128xbf16, #tpu.memory_space<vmem>>, %arg4: memref<128x128xbf16, #tpu.memory_space<vmem>>, %arg5: memref<64x128xf32, #tpu.memory_space<vmem>>, %arg6: memref<64x128xf32, #tpu.memory_space<vmem>>) attributes {dimension_semantics = [#tpu.dimension_semantics<parallel>, #tpu.dimension_semantics<parallel>, #tpu.dimension_semantics<arbitrary>], iteration_bounds = array<i64: 1, 1, 1>, scalar_prefetch = 0 : i64, scratch_operands = 1 : i64, tpu.core_type = #tpu.core_type<tc>, window_params = [{transform_indices = @transform_0, window_bounds = array<i64: 64, 128>}, {transform_indices = @transform_1, window_bounds = array<i64: 128, 128>}, {transform_indices = @transform_2, window_bounds = array<i64: 64, 128>}]} {
    %c0_i32 = arith.constant 0 : i32
    %0 = arith.cmpi eq, %arg2, %c0_i32 : i32
    %1 = arith.extui %0 : i1 to i32
    %c0_i32_0 = arith.constant 0 : i32
    %2 = arith.cmpi ne, %1, %c0_i32_0 : i32
    scf.if %2 {
      %cst_10 = arith.constant 0.000000e+00 : f32
      %12 = vector.broadcast %cst_10 : f32 to vector<64x128xf32>
      %c0_11 = arith.constant 0 : index
      %c0_12 = arith.constant 0 : index
      %13 = vector.load %arg6[%c0_11, %c0_12] : memref<64x128xf32, #tpu.memory_space<vmem>>, vector<64x128xf32>
      tpu.vector_store %arg6[%c0_11, %c0_12], %12 {strides = array<i32>} : memref<64x128xf32, #tpu.memory_space<vmem>>, vector<64x128xf32>,
    } else {
    }
    %c0 = arith.constant 0 : index
    %c0_1 = arith.constant 0 : index
    %3 = vector.load %arg6[%c0, %c0_1] : memref<64x128xf32, #tpu.memory_space<vmem>>, vector<64x128xf32>
    %c0_2 = arith.constant 0 : index
    %c0_3 = arith.constant 0 : index
    %4 = vector.load %arg3[%c0_2, %c0_3] : memref<64x128xbf16, #tpu.memory_space<vmem>>, vector<64x128xbf16>
    %c0_4 = arith.constant 0 : index
    %c0_5 = arith.constant 0 : index
    %5 = vector.load %arg4[%c0_4, %c0_5] : memref<128x128xbf16, #tpu.memory_space<vmem>>, vector<128x128xbf16>
    %cst = arith.constant dense<0.000000e+00> : vector<64x128xf32>
    %6 = tpu.matmul %4, %5, %cst {dimension_numbers = #tpu.dot_dimension_numbers<[1], [0], [0], [1], [0, 0, 1, 1], [], []>} : vector<64x128xbf16>, vector<128x128xbf16>, vector<64x128xf32> -> vector<64x128xf32>
    %7 = arith.addf %3, %6 : vector<64x128xf32>
    %c0_6 = arith.constant 0 : index
    %c0_7 = arith.constant 0 : index
    %8 = vector.load %arg6[%c0_6, %c0_7] : memref<64x128xf32, #tpu.memory_space<vmem>>, vector<64x128xf32>
    tpu.vector_store %arg6[%c0_6, %c0_7], %7 {strides = array<i32>} : memref<64x128xf32, #tpu.memory_space<vmem>>, vector<64x128xf32>,
    %c0_i32_8 = arith.constant 0 : i32
    %9 = arith.cmpi eq, %arg2, %c0_i32_8 : i32
    %10 = arith.extui %9 : i1 to i32
    %c0_i32_9 = arith.constant 0 : i32
    %11 = arith.cmpi ne, %10, %c0_i32_9 : i32
    scf.if %11 {
      %c0_10 = arith.constant 0 : index
      %c0_11 = arith.constant 0 : index
      %12 = vector.load %arg6[%c0_10, %c0_11] : memref<64x128xf32, #tpu.memory_space<vmem>>, vector<64x128xf32>
      %c0_12 = arith.constant 0 : index
      %c0_13 = arith.constant 0 : index
      %13 = vector.load %arg5[%c0_12, %c0_13] : memref<64x128xf32, #tpu.memory_space<vmem>>, vector<64x128xf32>
      tpu.vector_store %arg5[%c0_12, %c0_13], %12 {strides = array<i32>} : memref<64x128xf32, #tpu.memory_space<vmem>>, vector<64x128xf32>,
    } else {
    }
    return
  }
  func.func @transform_0(%arg0: i32, %arg1: i32, %arg2: i32) -> (i32, i32) {
    %c0_i32 = arith.constant 0 : i32
    return %arg0, %arg2 : i32, i32
  }
  func.func @transform_1(%arg0: i32, %arg1: i32, %arg2: i32) -> (i32, i32) {
    %c0_i32 = arith.constant 0 : i32
    return %arg2, %arg1 : i32, i32
  }
  func.func @transform_2(%arg0: i32, %arg1: i32, %arg2: i32) -> (i32, i32) {
    %c0_i32 = arith.constant 0 : i32
    return %arg0, %arg1 : i32, i32
  }
}

module attributes {stable_mosaic.version = 11 : i64} {
  func.func @_inorm_add_gate_kernel(%arg0: i32, %arg1: i32, %arg2: memref<1x64x16xf32, #tpu.memory_space<vmem>>, %arg3: memref<1x64x16xf32, #tpu.memory_space<vmem>>, %arg4: memref<1x64x16xf32, #tpu.memory_space<vmem>>, %arg5: memref<1x64x16xf32, #tpu.memory_space<vmem>>) attributes {dimension_semantics = [#tpu.dimension_semantics<parallel>, #tpu.dimension_semantics<parallel>], iteration_bounds = array<i64: 2, 1>, scalar_prefetch = 0 : i64, scratch_operands = 0 : i64, tpu.core_type = #tpu.core_type<tc>, window_params = [{transform_indices = @transform_0, window_bounds = array<i64: 1, 64, 16>}, {transform_indices = @transform_1, window_bounds = array<i64: 1, 64, 16>}, {transform_indices = @transform_2, window_bounds = array<i64: 1, 64, 16>}, {transform_indices = @transform_3, window_bounds = array<i64: 1, 64, 16>}]} {
    %c0 = arith.constant 0 : index
    %c0_0 = arith.constant 0 : index
    %c0_1 = arith.constant 0 : index
    %0 = vector.load %arg2[%c0, %c0_0, %c0_1] : memref<1x64x16xf32, #tpu.memory_space<vmem>>, vector<1x64x16xf32>
    %cst = arith.constant dense<0.000000e+00> : vector<1x16xf32>
    %1 = vector.multi_reduction <add>, %0, %cst [1] : vector<1x64x16xf32> to vector<1x16xf32>
    %2 = vector.shape_cast %1 : vector<1x16xf32> to vector<1x1x16xf32>
    %cst_2 = arith.constant 6.400000e+01 : f32
    %3 = vector.broadcast %cst_2 : f32 to vector<1x1x16xf32>
    %4 = arith.divf %2, %3 : vector<1x1x16xf32>
    %5 = vector.broadcast %4 : vector<1x1x16xf32> to vector<1x64x16xf32>
    %6 = arith.subf %0, %5 : vector<1x64x16xf32>
    %7 = arith.mulf %6, %6 : vector<1x64x16xf32>
    %cst_3 = arith.constant dense<0.000000e+00> : vector<1x16xf32>
    %8 = vector.multi_reduction <add>, %7, %cst_3 [1] : vector<1x64x16xf32> to vector<1x16xf32>
    %9 = vector.shape_cast %8 : vector<1x16xf32> to vector<1x1x16xf32>
    %cst_4 = arith.constant 6.400000e+01 : f32
    %10 = vector.broadcast %cst_4 : f32 to vector<1x1x16xf32>
    %11 = arith.divf %9, %10 : vector<1x1x16xf32>
    %cst_5 = arith.constant 9.99999974E-6 : f32
    %12 = vector.broadcast %cst_5 : f32 to vector<1x1x16xf32>
    %13 = arith.addf %11, %12 : vector<1x1x16xf32>
    %14 = math.rsqrt %13 : vector<1x1x16xf32>
    %15 = vector.broadcast %14 : vector<1x1x16xf32> to vector<1x64x16xf32>
    %16 = arith.mulf %6, %15 : vector<1x64x16xf32>
    %c0_6 = arith.constant 0 : index
    %c0_7 = arith.constant 0 : index
    %c0_8 = arith.constant 0 : index
    %17 = vector.load %arg3[%c0_6, %c0_7, %c0_8] : memref<1x64x16xf32, #tpu.memory_space<vmem>>, vector<1x64x16xf32>
    %18 = arith.addf %16, %17 : vector<1x64x16xf32>
    %c0_9 = arith.constant 0 : index
    %c0_10 = arith.constant 0 : index
    %c0_11 = arith.constant 0 : index
    %19 = vector.load %arg4[%c0_9, %c0_10, %c0_11] : memref<1x64x16xf32, #tpu.memory_space<vmem>>, vector<1x64x16xf32>
    %20 = arith.negf %19 : vector<1x64x16xf32>
    %21 = math.exp %20 : vector<1x64x16xf32>
    %cst_12 = arith.constant 1.000000e+00 : f32
    %22 = vector.broadcast %cst_12 : f32 to vector<1x64x16xf32>
    %23 = arith.addf %22, %21 : vector<1x64x16xf32>
    %24 = arith.divf %22, %23 : vector<1x64x16xf32>
    %25 = arith.mulf %18, %24 : vector<1x64x16xf32>
    %c0_13 = arith.constant 0 : index
    %c0_14 = arith.constant 0 : index
    %c0_15 = arith.constant 0 : index
    %26 = vector.load %arg5[%c0_13, %c0_14, %c0_15] : memref<1x64x16xf32, #tpu.memory_space<vmem>>, vector<1x64x16xf32>
    tpu.vector_store %arg5[%c0_13, %c0_14, %c0_15], %25 {strides = array<i32>} : memref<1x64x16xf32, #tpu.memory_space<vmem>>, vector<1x64x16xf32>,
    return
  }
  func.func @transform_0(%arg0: i32, %arg1: i32) -> (i32, i32, i32) {
    %c0_i32 = arith.constant 0 : i32
    %c0_i32_0 = arith.constant 0 : i32
    return %arg0, %c0_i32, %arg1 : i32, i32, i32
  }
  func.func @transform_1(%arg0: i32, %arg1: i32) -> (i32, i32, i32) {
    %c0_i32 = arith.constant 0 : i32
    %c0_i32_0 = arith.constant 0 : i32
    return %arg0, %c0_i32, %arg1 : i32, i32, i32
  }
  func.func @transform_2(%arg0: i32, %arg1: i32) -> (i32, i32, i32) {
    %c0_i32 = arith.constant 0 : i32
    %c0_i32_0 = arith.constant 0 : i32
    return %arg0, %c0_i32, %arg1 : i32, i32, i32
  }
  func.func @transform_3(%arg0: i32, %arg1: i32) -> (i32, i32, i32) {
    %c0_i32 = arith.constant 0 : i32
    %c0_i32_0 = arith.constant 0 : i32
    return %arg0, %c0_i32, %arg1 : i32, i32, i32
  }
}

module attributes {stable_mosaic.version = 11 : i64} {
  func.func @_matmul_kernel(%arg0: i32, %arg1: i32, %arg2: i32, %arg3: memref<176x128xbf16, #tpu.memory_space<vmem>>, %arg4: memref<128x128xbf16, #tpu.memory_space<vmem>>, %arg5: memref<176x128xf32, #tpu.memory_space<vmem>>, %arg6: memref<176x128xf32, #tpu.memory_space<vmem>>) attributes {dimension_semantics = [#tpu.dimension_semantics<parallel>, #tpu.dimension_semantics<parallel>, #tpu.dimension_semantics<arbitrary>], iteration_bounds = array<i64: 1, 1, 1>, scalar_prefetch = 0 : i64, scratch_operands = 1 : i64, tpu.core_type = #tpu.core_type<tc>, window_params = [{transform_indices = @transform_0, window_bounds = array<i64: 176, 128>}, {transform_indices = @transform_1, window_bounds = array<i64: 128, 128>}, {transform_indices = @transform_2, window_bounds = array<i64: 176, 128>}]} {
    %c0_i32 = arith.constant 0 : i32
    %0 = arith.cmpi eq, %arg2, %c0_i32 : i32
    %1 = arith.extui %0 : i1 to i32
    %c0_i32_0 = arith.constant 0 : i32
    %2 = arith.cmpi ne, %1, %c0_i32_0 : i32
    scf.if %2 {
      %cst_10 = arith.constant 0.000000e+00 : f32
      %12 = vector.broadcast %cst_10 : f32 to vector<176x128xf32>
      %c0_11 = arith.constant 0 : index
      %c0_12 = arith.constant 0 : index
      %13 = vector.load %arg6[%c0_11, %c0_12] : memref<176x128xf32, #tpu.memory_space<vmem>>, vector<176x128xf32>
      tpu.vector_store %arg6[%c0_11, %c0_12], %12 {strides = array<i32>} : memref<176x128xf32, #tpu.memory_space<vmem>>, vector<176x128xf32>,
    } else {
    }
    %c0 = arith.constant 0 : index
    %c0_1 = arith.constant 0 : index
    %3 = vector.load %arg6[%c0, %c0_1] : memref<176x128xf32, #tpu.memory_space<vmem>>, vector<176x128xf32>
    %c0_2 = arith.constant 0 : index
    %c0_3 = arith.constant 0 : index
    %4 = vector.load %arg3[%c0_2, %c0_3] : memref<176x128xbf16, #tpu.memory_space<vmem>>, vector<176x128xbf16>
    %c0_4 = arith.constant 0 : index
    %c0_5 = arith.constant 0 : index
    %5 = vector.load %arg4[%c0_4, %c0_5] : memref<128x128xbf16, #tpu.memory_space<vmem>>, vector<128x128xbf16>
    %cst = arith.constant dense<0.000000e+00> : vector<176x128xf32>
    %6 = tpu.matmul %4, %5, %cst {dimension_numbers = #tpu.dot_dimension_numbers<[1], [0], [0], [1], [0, 0, 1, 1], [], []>} : vector<176x128xbf16>, vector<128x128xbf16>, vector<176x128xf32> -> vector<176x128xf32>
    %7 = arith.addf %3, %6 : vector<176x128xf32>
    %c0_6 = arith.constant 0 : index
    %c0_7 = arith.constant 0 : index
    %8 = vector.load %arg6[%c0_6, %c0_7] : memref<176x128xf32, #tpu.memory_space<vmem>>, vector<176x128xf32>
    tpu.vector_store %arg6[%c0_6, %c0_7], %7 {strides = array<i32>} : memref<176x128xf32, #tpu.memory_space<vmem>>, vector<176x128xf32>,
    %c0_i32_8 = arith.constant 0 : i32
    %9 = arith.cmpi eq, %arg2, %c0_i32_8 : i32
    %10 = arith.extui %9 : i1 to i32
    %c0_i32_9 = arith.constant 0 : i32
    %11 = arith.cmpi ne, %10, %c0_i32_9 : i32
    scf.if %11 {
      %c0_10 = arith.constant 0 : index
      %c0_11 = arith.constant 0 : index
      %12 = vector.load %arg6[%c0_10, %c0_11] : memref<176x128xf32, #tpu.memory_space<vmem>>, vector<176x128xf32>
      %c0_12 = arith.constant 0 : index
      %c0_13 = arith.constant 0 : index
      %13 = vector.load %arg5[%c0_12, %c0_13] : memref<176x128xf32, #tpu.memory_space<vmem>>, vector<176x128xf32>
      tpu.vector_store %arg5[%c0_12, %c0_13], %12 {strides = array<i32>} : memref<176x128xf32, #tpu.memory_space<vmem>>, vector<176x128xf32>,
    } else {
    }
    return
  }
  func.func @transform_0(%arg0: i32, %arg1: i32, %arg2: i32) -> (i32, i32) {
    %c0_i32 = arith.constant 0 : i32
    return %arg0, %arg2 : i32, i32
  }
  func.func @transform_1(%arg0: i32, %arg1: i32, %arg2: i32) -> (i32, i32) {
    %c0_i32 = arith.constant 0 : i32
    return %arg2, %arg1 : i32, i32
  }
  func.func @transform_2(%arg0: i32, %arg1: i32, %arg2: i32) -> (i32, i32) {
    %c0_i32 = arith.constant 0 : i32
    return %arg0, %arg1 : i32, i32
  }
}

module attributes {stable_mosaic.version = 11 : i64} {
  func.func @_inorm_add_kernel(%arg0: i32, %arg1: i32, %arg2: memref<1x256x8xf32, #tpu.memory_space<vmem>>, %arg3: memref<1x256x8xf32, #tpu.memory_space<vmem>>, %arg4: memref<1x256x8xf32, #tpu.memory_space<vmem>>) attributes {dimension_semantics = [#tpu.dimension_semantics<parallel>, #tpu.dimension_semantics<parallel>], iteration_bounds = array<i64: 2, 1>, scalar_prefetch = 0 : i64, scratch_operands = 0 : i64, tpu.core_type = #tpu.core_type<tc>, window_params = [{transform_indices = @transform_0, window_bounds = array<i64: 1, 256, 8>}, {transform_indices = @transform_1, window_bounds = array<i64: 1, 256, 8>}, {transform_indices = @transform_2, window_bounds = array<i64: 1, 256, 8>}]} {
    %c0 = arith.constant 0 : index
    %c0_0 = arith.constant 0 : index
    %c0_1 = arith.constant 0 : index
    %0 = vector.load %arg2[%c0, %c0_0, %c0_1] : memref<1x256x8xf32, #tpu.memory_space<vmem>>, vector<1x256x8xf32>
    %cst = arith.constant dense<0.000000e+00> : vector<1x8xf32>
    %1 = vector.multi_reduction <add>, %0, %cst [1] : vector<1x256x8xf32> to vector<1x8xf32>
    %2 = vector.shape_cast %1 : vector<1x8xf32> to vector<1x1x8xf32>
    %cst_2 = arith.constant 2.560000e+02 : f32
    %3 = vector.broadcast %cst_2 : f32 to vector<1x1x8xf32>
    %4 = arith.divf %2, %3 : vector<1x1x8xf32>
    %5 = vector.broadcast %4 : vector<1x1x8xf32> to vector<1x256x8xf32>
    %6 = arith.subf %0, %5 : vector<1x256x8xf32>
    %7 = arith.mulf %6, %6 : vector<1x256x8xf32>
    %cst_3 = arith.constant dense<0.000000e+00> : vector<1x8xf32>
    %8 = vector.multi_reduction <add>, %7, %cst_3 [1] : vector<1x256x8xf32> to vector<1x8xf32>
    %9 = vector.shape_cast %8 : vector<1x8xf32> to vector<1x1x8xf32>
    %cst_4 = arith.constant 2.560000e+02 : f32
    %10 = vector.broadcast %cst_4 : f32 to vector<1x1x8xf32>
    %11 = arith.divf %9, %10 : vector<1x1x8xf32>
    %cst_5 = arith.constant 9.99999974E-6 : f32
    %12 = vector.broadcast %cst_5 : f32 to vector<1x1x8xf32>
    %13 = arith.addf %11, %12 : vector<1x1x8xf32>
    %14 = math.rsqrt %13 : vector<1x1x8xf32>
    %15 = vector.broadcast %14 : vector<1x1x8xf32> to vector<1x256x8xf32>
    %16 = arith.mulf %6, %15 : vector<1x256x8xf32>
    %c0_6 = arith.constant 0 : index
    %c0_7 = arith.constant 0 : index
    %c0_8 = arith.constant 0 : index
    %17 = vector.load %arg3[%c0_6, %c0_7, %c0_8] : memref<1x256x8xf32, #tpu.memory_space<vmem>>, vector<1x256x8xf32>
    %18 = arith.addf %16, %17 : vector<1x256x8xf32>
    %c0_9 = arith.constant 0 : index
    %c0_10 = arith.constant 0 : index
    %c0_11 = arith.constant 0 : index
    %19 = vector.load %arg4[%c0_9, %c0_10, %c0_11] : memref<1x256x8xf32, #tpu.memory_space<vmem>>, vector<1x256x8xf32>
    tpu.vector_store %arg4[%c0_9, %c0_10, %c0_11], %18 {strides = array<i32>} : memref<1x256x8xf32, #tpu.memory_space<vmem>>, vector<1x256x8xf32>,
    return
  }
  func.func @transform_0(%arg0: i32, %arg1: i32) -> (i32, i32, i32) {
    %c0_i32 = arith.constant 0 : i32
    %c0_i32_0 = arith.constant 0 : i32
    return %arg0, %c0_i32, %arg1 : i32, i32, i32
  }
  func.func @transform_1(%arg0: i32, %arg1: i32) -> (i32, i32, i32) {
    %c0_i32 = arith.constant 0 : i32
    %c0_i32_0 = arith.constant 0 : i32
    return %arg0, %c0_i32, %arg1 : i32, i32, i32
  }
  func.func @transform_2(%arg0: i32, %arg1: i32) -> (i32, i32, i32) {
    %c0_i32 = arith.constant 0 : i32
    %c0_i32_0 = arith.constant 0 : i32
    return %arg0, %c0_i32, %arg1 : i32, i32, i32
  }
}

module attributes {stable_mosaic.version = 11 : i64} {
  func.func @_conv1x1_tanh_kernel(%arg0: i32, %arg1: memref<1x256x8xf32, #tpu.memory_space<vmem>>, %arg2: memref<8x1xf32, #tpu.memory_space<vmem>>, %arg3: memref<1x256x1xf32, #tpu.memory_space<vmem>>) attributes {dimension_semantics = [#tpu.dimension_semantics<parallel>], iteration_bounds = array<i64: 2>, scalar_prefetch = 0 : i64, scratch_operands = 0 : i64, tpu.core_type = #tpu.core_type<tc>, window_params = [{transform_indices = @transform_0, window_bounds = array<i64: 1, 256, 8>}, {pipeline_mode = #tpu.pipeline_mode<synchronous>, transform_indices = @transform_1, window_bounds = array<i64: 8, 1>}, {transform_indices = @transform_2, window_bounds = array<i64: 1, 256, 1>}]} {
    %c0 = arith.constant 0 : index
    %c0_0 = arith.constant 0 : index
    %c0_1 = arith.constant 0 : index
    %0 = vector.load %arg1[%c0, %c0_0, %c0_1] : memref<1x256x8xf32, #tpu.memory_space<vmem>>, vector<1x256x8xf32>
    %1 = vector.shape_cast %0 : vector<1x256x8xf32> to vector<256x8xf32>
    %c0_2 = arith.constant 0 : index
    %c0_3 = arith.constant 0 : index
    %2 = vector.load %arg2[%c0_2, %c0_3] : memref<8x1xf32, #tpu.memory_space<vmem>>, vector<8x1xf32>
    %cst = arith.constant dense<0.000000e+00> : vector<256x1xf32>
    %3 = tpu.matmul %1, %2, %cst {dimension_numbers = #tpu.dot_dimension_numbers<[1], [0], [0], [1], [0, 0, 1, 1], [], []>} : vector<256x8xf32>, vector<8x1xf32>, vector<256x1xf32> -> vector<256x1xf32>
    %4 = math.tanh %3 : vector<256x1xf32>
    %c0_4 = arith.constant 0 : index
    %c0_5 = arith.constant 0 : index
    %c0_6 = arith.constant 0 : index
    %5 = vector.load %arg3[%c0_4, %c0_5, %c0_6] : memref<1x256x1xf32, #tpu.memory_space<vmem>>, vector<1x256x1xf32>
    %6 = vector.shape_cast %5 : vector<1x256x1xf32> to vector<256x1xf32>
    %7 = vector.shape_cast %4 : vector<256x1xf32> to vector<1x256x1xf32>
    tpu.vector_store %arg3[%c0_4, %c0_5, %c0_6], %7 {strides = array<i32>} : memref<1x256x1xf32, #tpu.memory_space<vmem>>, vector<1x256x1xf32>,
    return
  }
  func.func @transform_0(%arg0: i32) -> (i32, i32, i32) {
    %c0_i32 = arith.constant 0 : i32
    %c0_i32_0 = arith.constant 0 : i32
    %c0_i32_1 = arith.constant 0 : i32
    return %arg0, %c0_i32, %c0_i32_0 : i32, i32, i32
  }
  func.func @transform_1(%arg0: i32) -> (i32, i32) {
    %c0_i32 = arith.constant 0 : i32
    %c0_i32_0 = arith.constant 0 : i32
    %c0_i32_1 = arith.constant 0 : i32
    return %c0_i32, %c0_i32_0 : i32, i32
  }
  func.func @transform_2(%arg0: i32) -> (i32, i32, i32) {
    %c0_i32 = arith.constant 0 : i32
    %c0_i32_0 = arith.constant 0 : i32
    %c0_i32_1 = arith.constant 0 : i32
    return %arg0, %c0_i32, %c0_i32_0 : i32, i32, i32
  }
}

</mosaic_0001>

<bundles_post_ra>
// kernel: edge_content_encoder.76
= control target key start
LH: loop header
LB: loop body
LE: loop exit
PB: predicated region body
PF: predicated region fallthrough
CT: control target
= control target key end

     0   :  { %s640_s6 = smov 0   ;;  %s642_s7 = smov 0   ;;  %s1200_s0 = inlined_call_operand.vmem [shape: f32[2,256,8], index: 0, kind: input, shape index: {}]   ;;  %s1201_s1 = inlined_call_operand.vmem [shape: f32[2,256,8], index: 1, kind: output, shape index: {}]  }
   0x1   :  { %s644_s8 = smov 0  }
   0x2 LB: > { %s23_s9 = sadd.s32 1, %s624_s7  ;;  %p571_p0 = scmp.ge.s32.totalorder %s628_s8, 1  ;;  %s628_s8 = sphi %s644_s8, %s11_s8   ;;  %s624_s7 = sphi %s642_s7, %s1203_s7   ;;  %s620_s6 = sphi %s640_s6, %s1202_s6  }
   0x3   : > { %p25_p1 = scmp.ge.s32.totalorder %s23_s9, 2  ;;  %p106_p2 = scmp.lt.s32.totalorder %s628_s8, 3 }
   0x5   : > { %s1205_s9 = smov (%p25_p1, %s23_s9), 0  ;;  %p107_p3 = pnand %p571_p0, %p106_p2 }
   0x6   : > { %p132_p4 = scmp.lt.s32.totalorder (!%p107_p3), %s620_s6, 1  ;;  %vm180_vm0 = vcmask (!%p107_p3), 64512  }
   0x7   : > { %110 = sbr.rel (%p107_p3) target bundleno = 210 (0xd2), region = 24 }
   0xe   : > { %s1207_s6 = smov (!%p132_p4, %s620_s6), 1 }
   0xf   : > { %s578_s10 = sshll.u32 %s1207_s6, 8 }
  0x10   : > { %s666_s13 = scalar_lea.vmem %s1200_s0, %s578_s10  ;;  %s1069_s16 = scalar_lea.vmem %s1201_s1, %s578_s10 }
  0x11   : > { %v669_v0 = vld [vmem:[%s666_s13] sm:$0xff]  ;;  %v672_v1 = vld [vmem:[%s666_s13 + $0x8] sm:$0xff]  ;;  %v675_v2 = vld [vmem:[%s666_s13 + $0x10] sm:$0xff] }
  0x12   : > { %v678_v3 = vld [vmem:[%s666_s13 + $0x18] sm:$0xff]  ;;  %v181_v4 = vsel %vm180_vm0, %v669_v0, 0.0  ;;  %v182_v5 = vsel %vm180_vm0, %v672_v1, 0.0  ;;  %v184_v6 = vsel %vm180_vm0, %v675_v2, 0.0  ;;  %v687_v7 = vld [vmem:[%s666_s13 + $0x20] sm:$0xff]  ;;  %v692_v10 = vld [vmem:[%s666_s13 + $0x28] sm:$0xff] }
  0x13   : > { %v183_v8 = vadd.f32 %v182_v5, %v181_v4  ;;  %v186_v9 = vsel %vm180_vm0, %v678_v3, 0.0  ;;  %v188_v12 = vsel %vm180_vm0, %v687_v7, 0.0  ;;  %v697_v13 = vld [vmem:[%s666_s13 + $0x30] sm:$0xff]  ;;  %v190_v15 = vsel %vm180_vm0, %v692_v10, 0.0  ;;  %v702_v16 = vld [vmem:[%s666_s13 + $0x38] sm:$0xff]  ;;  %v707_v19 = vld [vmem:[%s666_s13 + $0x40] sm:$0xff] }
  0x14   : > { %v192_v18 = vsel %vm180_vm0, %v697_v13, 0.0  ;;  %v194_v21 = vsel %vm180_vm0, %v702_v16, 0.0  ;;  %v712_v22 = vld [vmem:[%s666_s13 + $0x48] sm:$0xff]  ;;  %v196_v24 = vsel %vm180_vm0, %v707_v19, 0.0  ;;  %v717_v25 = vld [vmem:[%s666_s13 + $0x50] sm:$0xff]  ;;  %v722_v28 = vld [vmem:[%s666_s13 + $0x58] sm:$0xff] }
  0x15   : > { %v185_v11 = vadd.f32 %v184_v6, %v183_v8  ;;  %v198_v27 = vsel %vm180_vm0, %v712_v22, 0.0  ;;  %v200_v30 = vsel %vm180_vm0, %v717_v25, 0.0  ;;  %v727_v31 = vld [vmem:[%s666_s13 + $0x60] sm:$0xff]  ;;  %v202_v33 = vsel %vm180_vm0, %v722_v28, 0.0  ;;  %v732_v34 = vld [vmem:[%s666_s13 + $0x68] sm:$0xff]  ;;  %v737_v37 = vld [vmem:[%s666_s13 + $0x70] sm:$0xff] }
  0x16   : > { %v204_v36 = vsel %vm180_vm0, %v727_v31, 0.0  ;;  %v206_v39 = vsel %vm180_vm0, %v732_v34, 0.0  ;;  %v742_v40 = vld [vmem:[%s666_s13 + $0x78] sm:$0xff]  ;;  %v208_v42 = vsel %vm180_vm0, %v737_v37, 0.0  ;;  %v747_v43 = vld [vmem:[%s666_s13 + $0x80] sm:$0xff]  ;;  %v752_v46 = vld [vmem:[%s666_s13 + $0x88] sm:$0xff] }
  0x17   : > { %v187_v14 = vadd.f32 %v186_v9, %v185_v11  ;;  %v210_v45 = vsel %vm180_vm0, %v742_v40, 0.0  ;;  %v212_v48 = vsel %vm180_vm0, %v747_v43, 0.0  ;;  %v757_v49 = vld [vmem:[%s666_s13 + $0x90] sm:$0xff]  ;;  %v214_v51 = vsel %vm180_vm0, %v752_v46, 0.0  ;;  %v762_v52 = vld [vmem:[%s666_s13 + $0x98] sm:$0xff]  ;;  %v767_v55 = vld [vmem:[%s666_s13 + $0xa0] sm:$0xff] }
  0x18   : > { %v216_v54 = vsel %vm180_vm0, %v757_v49, 0.0  ;;  %v218_v57 = vsel %vm180_vm0, %v762_v52, 0.0  ;;  %v772_v58 = vld [vmem:[%s666_s13 + $0xa8] sm:$0xff]  ;;  %v220_v60 = vsel %vm180_vm0, %v767_v55, 0.0  ;;  %v777_v61 = vld [vmem:[%s666_s13 + $0xb0] sm:$0xff]  ;;  %v782_v4 = vld [vmem:[%s666_s13 + $0xb8] sm:$0xff] }
  0x19   : > { %v189_v17 = vadd.f32 %v188_v12, %v187_v14  ;;  %v222_v63 = vsel %vm180_vm0, %v772_v58, 0.0  ;;  %v224_v6 = vsel %vm180_vm0, %v777_v61, 0.0  ;;  %v787_v8 = vld [vmem:[%s666_s13 + $0xc0] sm:$0xff]  ;;  %v226_v11 = vsel %vm180_vm0, %v782_v4, 0.0  ;;  %v792_v12 = vld [vmem:[%s666_s13 + $0xc8] sm:$0xff] }
  0x1b   : > { %v191_v20 = vadd.f32 %v190_v15, %v189_v17  ;;  %v228_v15 = vsel %vm180_vm0, %v787_v8, 0.0  ;;  %v797_v17 = vld [vmem:[%s666_s13 + $0xd0] sm:$0xff] }
  0x1d   : > { %v193_v23 = vadd.f32 %v192_v18, %v191_v20  ;;  %v230_v20 = vsel %vm180_vm0, %v792_v12, 0.0 }
  0x1f   : > { %v195_v26 = vadd.f32 %v194_v21, %v193_v23  ;;  %v802_v21 = vld [vmem:[%s666_s13 + $0xd8] sm:$0xff] }
  0x21   : > { %v197_v29 = vadd.f32 %v196_v24, %v195_v26  ;;  %v232_v24 = vsel %vm180_vm0, %v797_v17, 0.0  ;;  %v807_v26 = vld [vmem:[%s666_s13 + $0xe0] sm:$0xff] }
  0x23   : > { %v199_v32 = vadd.f32 %v198_v27, %v197_v29  ;;  %v234_v29 = vsel %vm180_vm0, %v802_v21, 0.0 }
  0x25   : > { %v201_v35 = vadd.f32 %v200_v30, %v199_v32  ;;  %v812_v30 = vld [vmem:[%s666_s13 + $0xe8] sm:$0xff] }
  0x27   : > { %v203_v38 = vadd.f32 %v202_v33, %v201_v35  ;;  %v236_v33 = vsel %vm180_vm0, %v807_v26, 0.0  ;;  %v817_v35 = vld [vmem:[%s666_s13 + $0xf0] sm:$0xff] }
  0x29   : > { %v205_v41 = vadd.f32 %v204_v36, %v203_v38  ;;  %v238_v38 = vsel %vm180_vm0, %v812_v30, 0.0 }
  0x2b   : > { %v207_v44 = vadd.f32 %v206_v39, %v205_v41  ;;  %v822_v39 = vld [vmem:[%s666_s13 + $0xf8] sm:$0xff] }
  0x2d   : > { %v209_v47 = vadd.f32 %v208_v42, %v207_v44  ;;  %v240_v42 = vsel %vm180_vm0, %v817_v35, 0.0 }
  0x2f   : > { %v211_v50 = vadd.f32 %v210_v45, %v209_v47  ;;  %v242_v45 = vsel %vm180_vm0, %v822_v39, 0.0 }
  0x31   : > { %v213_v53 = vadd.f32 %v212_v48, %v211_v50 }
  0x33   : > { %v215_v56 = vadd.f32 %v214_v51, %v213_v53 }
  0x35   : > { %v217_v59 = vadd.f32 %v216_v54, %v215_v56 }
  0x37   : > { %v219_v62 = vadd.f32 %v218_v57, %v217_v59 }
  0x39   : > { %v221_v5 = vadd.f32 %v220_v60, %v219_v62 }
  0x3b   : > { %v223_v9 = vadd.f32 %v222_v63, %v221_v5 }
  0x3d   : > { %v225_v14 = vadd.f32 %v224_v6, %v223_v9 }
  0x3f   : > { %v227_v18 = vadd.f32 %v226_v11, %v225_v14 }
  0x41   : > { %v229_v23 = vadd.f32 %v228_v15, %v227_v18 }
  0x43   : > { %v231_v27 = vadd.f32 %v230_v20, %v229_v23 }
  0x45   : > { %v233_v32 = vadd.f32 %v232_v24, %v231_v27 }
  0x47   : > { %v235_v36 = vadd.f32 %v234_v29, %v233_v32 }
  0x49   : > { %v237_v41 = vadd.f32 %v236_v33, %v235_v36 }
  0x4b   : > { %v239_v44 = vadd.f32 %v238_v38, %v237_v41 }
  0x4d   : > { %v241_v47 = vadd.f32 %v240_v42, %v239_v44 }
  0x4f   : > { %v243_v48 = vadd.f32 %v242_v45, %v241_v47 }
  0x51   : > { %v244_v50 = vrot.slane %v243_v48, 4 }
  0x53   : > { %v245_v51 = vadd.f32 %v244_v50, %v243_v48 }
  0x55   : > { %v246_v53 = vrot.slane %v245_v51, 2 }
  0x57   : > { %v247_v54 = vadd.f32 %v246_v53, %v245_v51 }
  0x59   : > { %v248_v56 = vrot.slane %v247_v54, 1 }
  0x5b   : > { %v249_v57 = vadd.f32 %v248_v56, %v247_v54 }
  0x5d   : > { %v828_v59 = vmul.f32 0.00390625, %v249_v57 }
  0x5f   : > { %v832_v60 = vsub.f32 %v669_v0, %v828_v59  ;;  %v836_v62 = vsub.f32 %v672_v1, %v828_v59  ;;  %v840_v63 = vsub.f32 %v675_v2, %v828_v59  ;;  %v844_v5 = vsub.f32 %v678_v3, %v828_v59 }
  0x60   : > { %v848_v6 = vsub.f32 %v687_v7, %v828_v59  ;;  %v858_v2 = vsub.f32 %v692_v10, %v828_v59  ;;  %v864_v7 = vsub.f32 %v697_v13, %v828_v59  ;;  %v873_v10 = vsub.f32 %v702_v16, %v828_v59 }
  0x61   : > { %v284_v0 = vmul.f32 %v832_v60, %v832_v60  ;;  %v285_v9 = vmul.f32 %v836_v62, %v836_v62  ;;  %v286_v1 = vmul.f32 %v840_v63, %v840_v63  ;;  %v287_v3 = vmul.f32 %v844_v5, %v844_v5 }
  0x62   : > { %v288_v11 = vmul.f32 %v848_v6, %v848_v6  ;;  %v289_v23 = vmul.f32 %v858_v2, %v858_v2  ;;  %v880_v27 = vsub.f32 %v707_v19, %v828_v59  ;;  %v290_v29 = vmul.f32 %v864_v7, %v864_v7 }
  0x63   : > { %v316_v14 = vsel %vm180_vm0, %v284_v0, 0.0  ;;  %v317_v15 = vsel %vm180_vm0, %v285_v9, 0.0  ;;  %v319_v18 = vsel %vm180_vm0, %v286_v1, 0.0  ;;  %v321_v13 = vsel %vm180_vm0, %v287_v3, 0.0 }
  0x64   : > { %v318_v20 = vadd.f32 %v317_v15, %v316_v14  ;;  %v323_v32 = vsel %vm180_vm0, %v288_v11, 0.0  ;;  %v887_v16 = vsub.f32 %v712_v22, %v828_v59  ;;  %v291_v36 = vmul.f32 %v873_v10, %v873_v10 }
  0x65   : > { %v325_v38 = vsel %vm180_vm0, %v289_v23, 0.0  ;;  %v894_v19 = vsub.f32 %v717_v25, %v828_v59  ;;  %v292_v42 = vmul.f32 %v880_v27, %v880_v27  ;;  %v327_v44 = vsel %vm180_vm0, %v290_v29, 0.0 }
  0x66   : > { %v320_v24 = vadd.f32 %v319_v18, %v318_v20  ;;  %v901_v22 = vsub.f32 %v722_v28, %v828_v59  ;;  %v293_v47 = vmul.f32 %v887_v16, %v887_v16  ;;  %v329_v48 = vsel %vm180_vm0, %v291_v36, 0.0 }
  0x67   : > { %v908_v25 = vsub.f32 %v727_v31, %v828_v59  ;;  %v294_v51 = vmul.f32 %v894_v19, %v894_v19  ;;  %v331_v53 = vsel %vm180_vm0, %v292_v42, 0.0  ;;  %v915_v28 = vsub.f32 %v732_v34, %v828_v59 }
  0x68   : > { %v322_v33 = vadd.f32 %v321_v13, %v320_v24  ;;  %v295_v56 = vmul.f32 %v901_v22, %v901_v22  ;;  %v333_v57 = vsel %vm180_vm0, %v293_v47, 0.0  ;;  %v922_v31 = vsub.f32 %v737_v37, %v828_v59 }
  0x69   : > { %v296_v9 = vmul.f32 %v908_v25, %v908_v25  ;;  %v335_v1 = vsel %vm180_vm0, %v294_v51, 0.0  ;;  %v929_v34 = vsub.f32 %v742_v40, %v828_v59  ;;  %v297_v11 = vmul.f32 %v915_v28, %v915_v28 }
  0x6a   : > { %v324_v41 = vadd.f32 %v323_v32, %v322_v33  ;;  %v337_v14 = vsel %vm180_vm0, %v295_v56, 0.0  ;;  %v936_v37 = vsub.f32 %v747_v43, %v828_v59  ;;  %v298_v18 = vmul.f32 %v922_v31, %v922_v31 }
  0x6b   : > { %v339_v20 = vsel %vm180_vm0, %v296_v9, 0.0  ;;  %v943_v40 = vsub.f32 %v752_v46, %v828_v59  ;;  %v299_v13 = vmul.f32 %v929_v34, %v929_v34  ;;  %v341_v24 = vsel %vm180_vm0, %v297_v11, 0.0 }
  0x6c   : > { %v326_v45 = vadd.f32 %v325_v38, %v324_v41  ;;  %v950_v43 = vsub.f32 %v757_v49, %v828_v59  ;;  %v300_v32 = vmul.f32 %v936_v37, %v936_v37  ;;  %v343_v33 = vsel %vm180_vm0, %v298_v18, 0.0 }
  0x6d   : > { %v957_v46 = vsub.f32 %v762_v52, %v828_v59  ;;  %v301_v38 = vmul.f32 %v943_v40, %v943_v40  ;;  %v345_v41 = vsel %vm180_vm0, %v299_v13, 0.0  ;;  %v964_v49 = vsub.f32 %v767_v55, %v828_v59 }
  0x6e   : > { %v328_v50 = vadd.f32 %v327_v44, %v326_v45  ;;  %v302_v44 = vmul.f32 %v950_v43, %v950_v43  ;;  %v347_v45 = vsel %vm180_vm0, %v300_v32, 0.0  ;;  %v971_v52 = vsub.f32 %v772_v58, %v828_v59 }
  0x6f   : > { %v978_v55 = vsub.f32 %v777_v61, %v828_v59  ;;  %v985_v58 = vsub.f32 %v782_v4, %v828_v59  ;;  %v992_v61 = vsub.f32 %v787_v8, %v828_v59  ;;  %v999_v4 = vsub.f32 %v792_v12, %v828_v59 }
  0x70   : > { %v330_v54 = vadd.f32 %v329_v48, %v328_v50  ;;  %v303_v48 = vmul.f32 %v957_v46, %v957_v46  ;;  %v349_v50 = vsel %vm180_vm0, %v301_v38, 0.0  ;;  %v1006_v8 = vsub.f32 %v797_v17, %v828_v59 }
  0x71   : > { %v1013_v12 = vsub.f32 %v802_v21, %v828_v59  ;;  %v1020_v17 = vsub.f32 %v807_v26, %v828_v59  ;;  %v1027_v21 = vsub.f32 %v812_v30, %v828_v59  ;;  %v1034_v26 = vsub.f32 %v817_v35, %v828_v59 }
  0x72   : > { %v332_v0 = vadd.f32 %v331_v53, %v330_v54  ;;  %v304_v53 = vmul.f32 %v964_v49, %v964_v49  ;;  %v351_v54 = vsel %vm180_vm0, %v302_v44, 0.0  ;;  %v1041_v30 = vsub.f32 %v822_v39, %v828_v59 }
  0x73   : > { %v314_v35 = vmul.f32 %v1034_v26, %v1034_v26 }
  0x74   : > { %v334_v3 = vadd.f32 %v333_v57, %v332_v0  ;;  %v305_v57 = vmul.f32 %v971_v52, %v971_v52  ;;  %v353_v0 = vsel %vm180_vm0, %v303_v48, 0.0 }
  0x75   : > { %v375_v39 = vsel %vm180_vm0, %v314_v35, 0.0 }
  0x76   : > { %v336_v15 = vadd.f32 %v335_v1, %v334_v3  ;;  %v306_v1 = vmul.f32 %v978_v55, %v978_v55  ;;  %v355_v3 = vsel %vm180_vm0, %v304_v53, 0.0 }
  0x78   : > { %v338_v23 = vadd.f32 %v337_v14, %v336_v15  ;;  %v307_v14 = vmul.f32 %v985_v58, %v985_v58  ;;  %v357_v15 = vsel %vm180_vm0, %v305_v57, 0.0  ;;  %v315_v57 = vmul.f32 %v1041_v30, %v1041_v30 }
  0x7a   : > { %v340_v29 = vadd.f32 %v339_v20, %v338_v23  ;;  %v308_v20 = vmul.f32 %v992_v61, %v992_v61  ;;  %v359_v23 = vsel %vm180_vm0, %v306_v1, 0.0  ;;  %v377_v1 = vsel %vm180_vm0, %v315_v57, 0.0 }
  0x7c   : > { %v342_v36 = vadd.f32 %v341_v24, %v340_v29  ;;  %v309_v24 = vmul.f32 %v999_v4, %v999_v4  ;;  %v361_v29 = vsel %vm180_vm0, %v307_v14, 0.0 }
  0x7e   : > { %v344_v42 = vadd.f32 %v343_v33, %v342_v36  ;;  %v310_v33 = vmul.f32 %v1006_v8, %v1006_v8  ;;  %v363_v36 = vsel %vm180_vm0, %v308_v20, 0.0 }
  0x80   : > { %v346_v47 = vadd.f32 %v345_v41, %v344_v42  ;;  %v311_v41 = vmul.f32 %v1013_v12, %v1013_v12  ;;  %v365_v42 = vsel %vm180_vm0, %v309_v24, 0.0 }
  0x82   : > { %v348_v51 = vadd.f32 %v347_v45, %v346_v47  ;;  %v312_v45 = vmul.f32 %v1020_v17, %v1020_v17  ;;  %v367_v47 = vsel %vm180_vm0, %v310_v33, 0.0 }
  0x84   : > { %v350_v56 = vadd.f32 %v349_v50, %v348_v51  ;;  %v313_v50 = vmul.f32 %v1027_v21, %v1027_v21  ;;  %v369_v51 = vsel %vm180_vm0, %v311_v41, 0.0 }
  0x86   : > { %v352_v9 = vadd.f32 %v351_v54, %v350_v56  ;;  %v371_v54 = vsel %vm180_vm0, %v312_v45, 0.0 }
  0x88   : > { %v354_v11 = vadd.f32 %v353_v0, %v352_v9  ;;  %v373_v0 = vsel %vm180_vm0, %v313_v50, 0.0 }
  0x8a   : > { %v356_v18 = vadd.f32 %v355_v3, %v354_v11 }
  0x8c   : > { %v358_v13 = vadd.f32 %v357_v15, %v356_v18 }
  0x8e   : > { %v360_v32 = vadd.f32 %v359_v23, %v358_v13 }
  0x90   : > { %v362_v38 = vadd.f32 %v361_v29, %v360_v32 }
  0x92   : > { %v364_v44 = vadd.f32 %v363_v36, %v362_v38 }
  0x94   : > { %v366_v48 = vadd.f32 %v365_v42, %v364_v44 }
  0x96   : > { %v368_v53 = vadd.f32 %v367_v47, %v366_v48 }
  0x98   : > { %v370_v56 = vadd.f32 %v369_v51, %v368_v53 }
  0x9a   : > { %v372_v9 = vadd.f32 %v371_v54, %v370_v56 }
  0x9c   : > { %v374_v59 = vadd.f32 %v373_v0, %v372_v9 }
  0x9e   : > { %v376_v3 = vadd.f32 %v375_v39, %v374_v59 }
  0xa0   : > { %v378_v11 = vadd.f32 %v377_v1, %v376_v3 }
  0xa2   : > { %v379_v14 = vrot.slane %v378_v11, 4 }
  0xa4   : > { %v380_v15 = vadd.f32 %v379_v14, %v378_v11 }
  0xa6   : > { %v381_v18 = vrot.slane %v380_v15, 2 }
  0xa8   : > { %v382_v20 = vadd.f32 %v381_v18, %v380_v15 }
  0xaa   : > { %v383_v23 = vrot.slane %v382_v20, 1 }
  0xac   : > { %v384_v13 = vadd.f32 %v383_v23, %v382_v20 }
  0xae   : > { %v385_v24 = vmul.f32 0.00390625, %v384_v13 }
  0xb0   : > { %v386_v29 = vadd.f32 1e-05, %v385_v24 }
  0xb2   : > { %604 = vrsqrt.f32 %v386_v29 }
  0xbc   : > { %v1054_v32 = vpop.eup %604 }
  0xbd   : > { %v388_v33 = vmul.f32 %v1054_v32, %v832_v60  ;;  %v389_v36 = vmul.f32 %v1054_v32, %v836_v62  ;;  %v390_v38 = vmul.f32 %v1054_v32, %v840_v63  ;;  %v391_v41 = vmul.f32 %v1054_v32, %v844_v5 }
  0xbe   : > { %v392_v60 = vmul.f32 %v1054_v32, %v848_v6  ;;  %v393_v62 = vmul.f32 %v1054_v32, %v858_v2  ;;  %v394_v63 = vmul.f32 %v1054_v32, %v864_v7  ;;  %v395_v5 = vmul.f32 %v1054_v32, %v873_v10 }
  0xbf   : > { %v420_v42 = vmax.f32 %v388_v33, 0.0  ;;  %v421_v44 = vmax.f32 %v389_v36, 0.0  ;;  %v422_v45 = vmax.f32 %v390_v38, 0.0  ;;  %v423_v47 = vmax.f32 %v391_v41, 0.0 }
  0xc0   : > { %v424_v48 = vmax.f32 %v392_v60, 0.0  ;;  %v425_v50 = vmax.f32 %v393_v62, 0.0  ;;  %v426_v6 = vmax.f32 %v394_v63, 0.0  ;;  %v427_v51 = vmax.f32 %v395_v5, 0.0 }
  0xc1   : > { %452 = vst.msk [vmem:[%s1069_s16] sm:$0xff] %vm180_vm0, %v420_v42  ;;  %453 = vst.msk [vmem:[%s1069_s16 + $0x8] sm:$0xff] %vm180_vm0, %v421_v44  ;;  %v396_v2 = vmul.f32 %v1054_v32, %v880_v27  ;;  %v397_v7 = vmul.f32 %v1054_v32, %v887_v16  ;;  %v398_v10 = vmul.f32 %v1054_v32, %v894_v19 }
  0xc2   : > { %454 = vst.msk [vmem:[%s1069_s16 + $0x10] sm:$0xff] %vm180_vm0, %v422_v45  ;;  %455 = vst.msk [vmem:[%s1069_s16 + $0x18] sm:$0xff] %vm180_vm0, %v423_v47  ;;  %v399_v53 = vmul.f32 %v1054_v32, %v901_v22  ;;  %v400_v27 = vmul.f32 %v1054_v32, %v908_v25  ;;  %v401_v16 = vmul.f32 %v1054_v32, %v915_v28 }
  0xc3   : > { %456 = vst.msk [vmem:[%s1069_s16 + $0x20] sm:$0xff] %vm180_vm0, %v424_v48  ;;  %457 = vst.msk [vmem:[%s1069_s16 + $0x28] sm:$0xff] %vm180_vm0, %v425_v50  ;;  %v402_v19 = vmul.f32 %v1054_v32, %v922_v31  ;;  %v403_v22 = vmul.f32 %v1054_v32, %v929_v34  ;;  %v428_v35 = vmax.f32 %v396_v2, 0.0  ;;  %v429_v54 = vmax.f32 %v397_v7, 0.0 }
  0xc4   : > { %458 = vst.msk [vmem:[%s1069_s16 + $0x30] sm:$0xff] %vm180_vm0, %v426_v6  ;;  %459 = vst.msk [vmem:[%s1069_s16 + $0x38] sm:$0xff] %vm180_vm0, %v427_v51  ;;  %v430_v56 = vmax.f32 %v398_v10, 0.0  ;;  %v431_v57 = vmax.f32 %v399_v53, 0.0  ;;  %v432_v0 = vmax.f32 %v400_v27, 0.0  ;;  %v433_v9 = vmax.f32 %v401_v16, 0.0 }
  0xc5   : > { %v434_v25 = vmax.f32 %v402_v19, 0.0  ;;  %v435_v39 = vmax.f32 %v403_v22, 0.0  ;;  %460 = vst.msk [vmem:[%s1069_s16 + $0x40] sm:$0xff] %vm180_vm0, %v428_v35  ;;  %461 = vst.msk [vmem:[%s1069_s16 + $0x48] sm:$0xff] %vm180_vm0, %v429_v54  ;;  %v404_v28 = vmul.f32 %v1054_v32, %v936_v37  ;;  %v405_v31 = vmul.f32 %v1054_v32, %v943_v40 }
  0xc6   : > { %462 = vst.msk [vmem:[%s1069_s16 + $0x50] sm:$0xff] %vm180_vm0, %v430_v56  ;;  %463 = vst.msk [vmem:[%s1069_s16 + $0x58] sm:$0xff] %vm180_vm0, %v431_v57  ;;  %v406_v34 = vmul.f32 %v1054_v32, %v950_v43  ;;  %v407_v59 = vmul.f32 %v1054_v32, %v957_v46  ;;  %v408_v37 = vmul.f32 %v1054_v32, %v964_v49 }
  0xc7   : > { %464 = vst.msk [vmem:[%s1069_s16 + $0x60] sm:$0xff] %vm180_vm0, %v432_v0  ;;  %465 = vst.msk [vmem:[%s1069_s16 + $0x68] sm:$0xff] %vm180_vm0, %v433_v9  ;;  %v409_v40 = vmul.f32 %v1054_v32, %v971_v52  ;;  %v410_v43 = vmul.f32 %v1054_v32, %v978_v55  ;;  %v411_v46 = vmul.f32 %v1054_v32, %v985_v58  ;;  %v436_v1 = vmax.f32 %v404_v28, 0.0 }
  0xc8   : > { %466 = vst.msk [vmem:[%s1069_s16 + $0x70] sm:$0xff] %vm180_vm0, %v434_v25  ;;  %467 = vst.msk [vmem:[%s1069_s16 + $0x78] sm:$0xff] %vm180_vm0, %v435_v39  ;;  %v437_v3 = vmax.f32 %v405_v31, 0.0  ;;  %v438_v11 = vmax.f32 %v406_v34, 0.0  ;;  %v439_v14 = vmax.f32 %v407_v59, 0.0  ;;  %v440_v15 = vmax.f32 %v408_v37, 0.0 }
  0xc9   : > { %v441_v18 = vmax.f32 %v409_v40, 0.0  ;;  %v442_v49 = vmax.f32 %v410_v43, 0.0  ;;  %v443_v20 = vmax.f32 %v411_v46, 0.0  ;;  %468 = vst.msk [vmem:[%s1069_s16 + $0x80] sm:$0xff] %vm180_vm0, %v436_v1  ;;  %v412_v52 = vmul.f32 %v1054_v32, %v992_v61 }
  0xca   : > { %469 = vst.msk [vmem:[%s1069_s16 + $0x88] sm:$0xff] %vm180_vm0, %v437_v3  ;;  %470 = vst.msk [vmem:[%s1069_s16 + $0x90] sm:$0xff] %vm180_vm0, %v438_v11  ;;  %v413_v55 = vmul.f32 %v1054_v32, %v999_v4  ;;  %v414_v58 = vmul.f32 %v1054_v32, %v1006_v8  ;;  %v415_v23 = vmul.f32 %v1054_v32, %v1013_v12 }
  0xcb   : > { %471 = vst.msk [vmem:[%s1069_s16 + $0x98] sm:$0xff] %vm180_vm0, %v439_v14  ;;  %472 = vst.msk [vmem:[%s1069_s16 + $0xa0] sm:$0xff] %vm180_vm0, %v440_v15  ;;  %v416_v61 = vmul.f32 %v1054_v32, %v1020_v17  ;;  %v417_v4 = vmul.f32 %v1054_v32, %v1027_v21  ;;  %v418_v8 = vmul.f32 %v1054_v32, %v1034_v26  ;;  %v444_v13 = vmax.f32 %v412_v52, 0.0 }
  0xcc   : > { %473 = vst.msk [vmem:[%s1069_s16 + $0xa8] sm:$0xff] %vm180_vm0, %v441_v18  ;;  %474 = vst.msk [vmem:[%s1069_s16 + $0xb0] sm:$0xff] %vm180_vm0, %v442_v49  ;;  %v419_v12 = vmul.f32 %v1054_v32, %v1041_v30  ;;  %v445_v24 = vmax.f32 %v413_v55, 0.0  ;;  %v446_v29 = vmax.f32 %v414_v58, 0.0  ;;  %v447_v33 = vmax.f32 %v415_v23, 0.0 }
  0xcd   : > { %475 = vst.msk [vmem:[%s1069_s16 + $0xb8] sm:$0xff] %vm180_vm0, %v443_v20  ;;  %v448_v36 = vmax.f32 %v416_v61, 0.0  ;;  %v449_v38 = vmax.f32 %v417_v4, 0.0  ;;  %v450_v17 = vmax.f32 %v418_v8, 0.0  ;;  %476 = vst.msk [vmem:[%s1069_s16 + $0xc0] sm:$0xff] %vm180_vm0, %v444_v13 }
  0xce   : > { %v451_v41 = vmax.f32 %v419_v12, 0.0  ;;  %477 = vst.msk [vmem:[%s1069_s16 + $0xc8] sm:$0xff] %vm180_vm0, %v445_v24  ;;  %478 = vst.msk [vmem:[%s1069_s16 + $0xd0] sm:$0xff] %vm180_vm0, %v446_v29 }
  0xcf   : > { %479 = vst.msk [vmem:[%s1069_s16 + $0xd8] sm:$0xff] %vm180_vm0, %v447_v33  ;;  %480 = vst.msk [vmem:[%s1069_s16 + $0xe0] sm:$0xff] %vm180_vm0, %v448_v36 }
  0xd0   : > { %481 = vst.msk [vmem:[%s1069_s16 + $0xe8] sm:$0xff] %vm180_vm0, %v449_v38  ;;  %482 = vst.msk [vmem:[%s1069_s16 + $0xf0] sm:$0xff] %vm180_vm0, %v450_v17 }
  0xd1   : > { %483 = vst.msk [vmem:[%s1069_s16 + $0xf8] sm:$0xff] %vm180_vm0, %v451_v41 }
  0xd2 PF: > { %s11_s8 = sadd.s32 1, %s628_s8   ;;  %s1202_s6 = smov %s624_s7 }
  0xd3   : > { %p8_p5 = scmp.ge.s32.totalorder %s11_s8, 4   ;;  %s1203_s7 = smov %s1205_s9 }
  0xd5   :  { %10 = sbr.rel (!%p8_p5) target bundleno = 2 (0x2), region = 54 }

// kernel: edge_content_encoder.75
= control target key start
LH: loop header
LB: loop body
LE: loop exit
PB: predicated region body
PF: predicated region fallthrough
CT: control target
= control target key end

     0   :  { %s1081_s9 = smov 0   ;;  %s1083_s10 = smov 0   ;;  %s1194_s0 = inlined_call_operand.vmem [shape: bf16[512,128], index: 0, kind: input, shape index: {}]   ;;  %s1195_s1 = inlined_call_operand.vmem [shape: bf16[128,128], index: 1, kind: input, shape index: {}]   ;;  %s1196_s2 = inlined_call_operand.vmem [shape: f32[512,128], index: 2, kind: output, shape index: {}]  }
   0x1   :  { %s1085_s11 = smov 0  }
   0x2 LB: > { %s31_s12 = sadd.s32 1, %s1060_s10  ;;  %p875_p0 = scmp.ge.s32.totalorder %s1064_s11, 1  ;;  %s1064_s11 = sphi %s1085_s11, %s12_s11   ;;  %s1060_s10 = sphi %s1083_s10, %s1198_s10   ;;  %s1056_s9 = sphi %s1081_s9, %s1197_s9  }
   0x3   : > { %p33_p1 = scmp.ge.s32.totalorder %s31_s12, 2  ;;  %p155_p2 = scmp.lt.s32.totalorder %s1064_s11, 3 }
   0x5   : > { %s1200_s12 = smov (%p33_p1, %s31_s12), 0  ;;  %p156_p3 = pnand %p875_p0, %p155_p2 }
   0x6   : > { %v1018_v0 = vld [vmem:[%s1195_s1] sm:$0xff] (!%p156_p3)   ;;  %s876_s15 = sshll.u32 (!%p156_p3), %s1056_s9, 5  ;;  %v1019_v1 = vld [vmem:[%s1195_s1 + $0x8] sm:$0xff] (!%p156_p3)   ;;  %v1020_v2 = vld [vmem:[%s1195_s1 + $0x10] sm:$0xff] (!%p156_p3)  }
   0x7   : > { %159 = sbr.rel (%p156_p3) target bundleno = 279 (0x117), region = 28  ;;  %p192_p4 = scmp.lt.s32.totalorder (!%p156_p3), %s876_s15, 63  ;;  %930 = vmatprep.subr.bf16.mxu0 (!%p156_p3), %v1018_v0  ;;  %978 = vmatprep.subr.bf16.mxu1 (!%p156_p3), %v1018_v0  ;;  %v1021_v3 = vld [vmem:[%s1195_s1 + $0x18] sm:$0xff] (!%p156_p3)   ;;  %v1022_v6 = vld [vmem:[%s1195_s1 + $0x20] sm:$0xff] (!%p156_p3)   ;;  %v1023_v7 = vld [vmem:[%s1195_s1 + $0x28] sm:$0xff] (!%p156_p3)  }
   0x8   : > { %931 = vmatpush3.bf16.msra.mxu0 (!%p156_p3), %v1018_v0  ;;  %986 = vmatpush3.bf16.msra.mxu1 (!%p156_p3), %v1018_v0  ;;  %v1024_v8 = vld [vmem:[%s1195_s1 + $0x30] sm:$0xff] (!%p156_p3)   ;;  %v1025_v9 = vld [vmem:[%s1195_s1 + $0x38] sm:$0xff] (!%p156_p3)  }
   0x9   : > { %932 = vmatprep.subr.bf16.mxu0 (!%p156_p3), %v1019_v1  ;;  %979 = vmatprep.subr.bf16.mxu1 (!%p156_p3), %v1019_v1 }
   0xc   : > { %933 = vmatpush3.bf16.msra.mxu0 (!%p156_p3), %v1019_v1  ;;  %987 = vmatpush3.bf16.msra.mxu1 (!%p156_p3), %v1019_v1 }
   0xd   : > { %934 = vmatprep.subr.bf16.mxu0 (!%p156_p3), %v1020_v2  ;;  %980 = vmatprep.subr.bf16.mxu1 (!%p156_p3), %v1020_v2 }
   0xe   : > { %s1202_s15 = smov (!%p192_p4, %s876_s15), 63 }
   0xf   : > { %s877_s20 = sshll.u32 %s1202_s15, 2  ;;  %s879_s6 = sshll.u32 %s1202_s15, 3 }
  0x10   : > { %s1114_s23 = scalar_lea.vmem %s1194_s0, %s877_s20  ;;  %935 = vmatpush3.bf16.msra.mxu0 %v1020_v2  ;;  %988 = vmatpush3.bf16.msra.mxu1 %v1020_v2  ;;  %s1151_s9 = scalar_lea.vmem %s1196_s2, %s879_s6 }
  0x11   : > { %v1026_v4 = vld [vmem:[%s1114_s23] sm:$0xff]   ;;  %936 = vmatprep.subr.bf16.mxu0 %v1021_v3  ;;  %981 = vmatprep.subr.bf16.mxu1 %v1021_v3  ;;  %v1028_v10 = vld [vmem:[%s1114_s23 + $0x8] sm:$0xff]   ;;  %v1030_v12 = vld [vmem:[%s1114_s23 + $0x10] sm:$0xff]  }
  0x12   : > { %v1027_v5 = vld [vmem:[%s1114_s23 + $0x40] sm:$0xff]   ;;  %946 = vmatprep.mubr.bf16.mxu0 %v1026_v4  ;;  %v1029_v11 = vld [vmem:[%s1114_s23 + $0x48] sm:$0xff]   ;;  %v1031_v13 = vld [vmem:[%s1114_s23 + $0x50] sm:$0xff]  }
  0x13   : > { %962 = vmatprep.mubr.bf16.mxu1 %v1027_v5  ;;  %v1032_v14 = vld [vmem:[%s1114_s23 + $0x18] sm:$0xff]   ;;  %v1034_v16 = vld [vmem:[%s1114_s23 + $0x20] sm:$0xff]   ;;  %v1036_v18 = vld [vmem:[%s1114_s23 + $0x28] sm:$0xff]  }
  0x14   : > { %937 = vmatpush3.bf16.msra.mxu0 %v1021_v3  ;;  %989 = vmatpush3.bf16.msra.mxu1 %v1021_v3  ;;  %v1033_v15 = vld [vmem:[%s1114_s23 + $0x58] sm:$0xff]   ;;  %v1035_v17 = vld [vmem:[%s1114_s23 + $0x60] sm:$0xff]   ;;  %v1037_v19 = vld [vmem:[%s1114_s23 + $0x68] sm:$0xff]  }
  0x15   : > { %938 = vmatprep.subr.bf16.mxu0 %v1022_v6  ;;  %982 = vmatprep.subr.bf16.mxu1 %v1022_v6  ;;  %v1038_v20 = vld [vmem:[%s1114_s23 + $0x30] sm:$0xff]   ;;  %v1040_v22 = vld [vmem:[%s1114_s23 + $0x38] sm:$0xff]  }
  0x16   : > { %v1039_v21 = vld [vmem:[%s1114_s23 + $0x70] sm:$0xff]   ;;  %v1041_v23 = vld [vmem:[%s1114_s23 + $0x78] sm:$0xff]  }
  0x18   : > { %939 = vmatpush3.bf16.msra.mxu0 %v1022_v6  ;;  %990 = vmatpush3.bf16.msra.mxu1 %v1022_v6 }
  0x19   : > { %940 = vmatprep.subr.bf16.mxu0 %v1023_v7  ;;  %983 = vmatprep.subr.bf16.mxu1 %v1023_v7 }
  0x1c   : > { %941 = vmatpush3.bf16.msra.mxu0 %v1023_v7  ;;  %991 = vmatpush3.bf16.msra.mxu1 %v1023_v7 }
  0x1d   : > { %942 = vmatprep.subr.bf16.mxu0 %v1024_v8  ;;  %984 = vmatprep.subr.bf16.mxu1 %v1024_v8 }
  0x20   : > { %943 = vmatpush3.bf16.msra.mxu0 %v1024_v8  ;;  %992 = vmatpush3.bf16.msra.mxu1 %v1024_v8 }
  0x21   : > { %944 = vmatprep.subr.bf16.mxu0 %v1025_v9  ;;  %985 = vmatprep.subr.bf16.mxu1 %v1025_v9 }
  0x24   : > { %945 = vmatpush3.bf16.msra.mxu0 %v1025_v9  ;;  %993 = vmatpush3.bf16.msra.mxu1 %v1025_v9 }
  0x27   : > { %947 = vmatmul.mubr.bf16.vlgmr.msra.gmra.mrb[0].mxu0 %v1028_v10  ;;  %963 = vmatmul.mubr.bf16.vlgmr.msra.gmra.mrb[0].mxu1 %v1029_v11 }
  0x28   : > { %950 = vmatprep.mubr.bf16.mxu0 %v1030_v12  ;;  %966 = vmatprep.mubr.bf16.mxu1 %v1031_v13 }
  0x2f   : > { %951 = vmatmul.mubr.bf16.gmra.mrb[4].mxu0 %v1032_v14  ;;  %967 = vmatmul.mubr.bf16.gmra.mrb[4].mxu1 %v1033_v15 }
  0x30   : > { %954 = vmatprep.mubr.bf16.mxu0 %v1034_v16  ;;  %970 = vmatprep.mubr.bf16.mxu1 %v1035_v17 }
  0x37   : > { %955 = vmatmul.mubr.bf16.gmra.mrb[8].mxu0 %v1036_v18  ;;  %971 = vmatmul.mubr.bf16.gmra.mrb[8].mxu1 %v1037_v19 }
  0x38   : > { %958 = vmatprep.mubr.bf16.mxu0 %v1038_v20  ;;  %974 = vmatprep.mubr.bf16.mxu1 %v1039_v21 }
  0x3f   : > { %959 = vmatmul.mubr.bf16.gmra.mrb[12].mxu0 %v1040_v22  ;;  %975 = vmatmul.mubr.bf16.gmra.mrb[12].mxu1 %v1041_v23 }
  0xfa   : > { %v948_v24 = vpop.f32.mrb[0].mxu0  ;;  %v964_v25 = vpop.f32.mrb[0].mxu1 }
  0xfb   : > { %741 = vst [vmem:[%s1151_s9 + $0x10] sm:$0xff] %v948_v24  ;;  %757 = vst [vmem:[%s1151_s9 + $0x90] sm:$0xff] %v964_v25  ;;  %v513_v26 = vpop.f32.mrb[1].mxu0  ;;  %v577_v27 = vpop.f32.mrb[1].mxu1 }
  0xfc   : > { %739 = vst [vmem:[%s1151_s9] sm:$0xff] %v513_v26  ;;  %755 = vst [vmem:[%s1151_s9 + $0x80] sm:$0xff] %v577_v27  ;;  %v949_v28 = vpop.f32.mrb[2].mxu0  ;;  %v965_v29 = vpop.f32.mrb[2].mxu1 }
  0xfd   : > { %742 = vst [vmem:[%s1151_s9 + $0x18] sm:$0xff] %v949_v28  ;;  %758 = vst [vmem:[%s1151_s9 + $0x98] sm:$0xff] %v965_v29  ;;  %v516_v30 = vpop.f32.mrb[3].mxu0  ;;  %v580_v31 = vpop.f32.mrb[3].mxu1 }
  0xfe   : > { %740 = vst [vmem:[%s1151_s9 + $0x8] sm:$0xff] %v516_v30  ;;  %756 = vst [vmem:[%s1151_s9 + $0x88] sm:$0xff] %v580_v31 }
 0x102   : > { %v952_v32 = vpop.f32.mrb[4].mxu0  ;;  %v968_v33 = vpop.f32.mrb[4].mxu1 }
 0x103   : > { %745 = vst [vmem:[%s1151_s9 + $0x30] sm:$0xff] %v952_v32  ;;  %761 = vst [vmem:[%s1151_s9 + $0xb0] sm:$0xff] %v968_v33  ;;  %v529_v34 = vpop.f32.mrb[5].mxu0  ;;  %v593_v35 = vpop.f32.mrb[5].mxu1 }
 0x104   : > { %743 = vst [vmem:[%s1151_s9 + $0x20] sm:$0xff] %v529_v34  ;;  %759 = vst [vmem:[%s1151_s9 + $0xa0] sm:$0xff] %v593_v35  ;;  %v953_v36 = vpop.f32.mrb[6].mxu0  ;;  %v969_v37 = vpop.f32.mrb[6].mxu1 }
 0x105   : > { %746 = vst [vmem:[%s1151_s9 + $0x38] sm:$0xff] %v953_v36  ;;  %762 = vst [vmem:[%s1151_s9 + $0xb8] sm:$0xff] %v969_v37  ;;  %v532_v38 = vpop.f32.mrb[7].mxu0  ;;  %v596_v39 = vpop.f32.mrb[7].mxu1 }
 0x106   : > { %744 = vst [vmem:[%s1151_s9 + $0x28] sm:$0xff] %v532_v38  ;;  %760 = vst [vmem:[%s1151_s9 + $0xa8] sm:$0xff] %v596_v39 }
 0x10a   : > { %v956_v40 = vpop.f32.mrb[8].mxu0  ;;  %v972_v41 = vpop.f32.mrb[8].mxu1 }
 0x10b   : > { %749 = vst [vmem:[%s1151_s9 + $0x50] sm:$0xff] %v956_v40  ;;  %765 = vst [vmem:[%s1151_s9 + $0xd0] sm:$0xff] %v972_v41  ;;  %v545_v42 = vpop.f32.mrb[9].mxu0  ;;  %v609_v43 = vpop.f32.mrb[9].mxu1 }
 0x10c   : > { %747 = vst [vmem:[%s1151_s9 + $0x40] sm:$0xff] %v545_v42  ;;  %763 = vst [vmem:[%s1151_s9 + $0xc0] sm:$0xff] %v609_v43  ;;  %v957_v44 = vpop.f32.mrb[10].mxu0  ;;  %v973_v45 = vpop.f32.mrb[10].mxu1 }
 0x10d   : > { %750 = vst [vmem:[%s1151_s9 + $0x58] sm:$0xff] %v957_v44  ;;  %766 = vst [vmem:[%s1151_s9 + $0xd8] sm:$0xff] %v973_v45  ;;  %v548_v46 = vpop.f32.mrb[11].mxu0  ;;  %v612_v47 = vpop.f32.mrb[11].mxu1 }
 0x10e   : > { %748 = vst [vmem:[%s1151_s9 + $0x48] sm:$0xff] %v548_v46  ;;  %764 = vst [vmem:[%s1151_s9 + $0xc8] sm:$0xff] %v612_v47 }
 0x112   : > { %v960_v48 = vpop.f32.mrb[12].mxu0  ;;  %v976_v49 = vpop.f32.mrb[12].mxu1 }
 0x113   : > { %753 = vst [vmem:[%s1151_s9 + $0x70] sm:$0xff] %v960_v48  ;;  %769 = vst [vmem:[%s1151_s9 + $0xf0] sm:$0xff] %v976_v49  ;;  %v561_v50 = vpop.f32.mrb[13].mxu0  ;;  %v625_v51 = vpop.f32.mrb[13].mxu1 }
 0x114   : > { %751 = vst [vmem:[%s1151_s9 + $0x60] sm:$0xff] %v561_v50  ;;  %767 = vst [vmem:[%s1151_s9 + $0xe0] sm:$0xff] %v625_v51  ;;  %v961_v52 = vpop.f32.mrb[14].mxu0  ;;  %v977_v53 = vpop.f32.mrb[14].mxu1 }
 0x115   : > { %754 = vst [vmem:[%s1151_s9 + $0x78] sm:$0xff] %v961_v52  ;;  %770 = vst [vmem:[%s1151_s9 + $0xf8] sm:$0xff] %v977_v53  ;;  %v564_v54 = vpop.f32.mrb[15].mxu0  ;;  %v628_v55 = vpop.f32.mrb[15].mxu1 }
 0x116   : > { %752 = vst [vmem:[%s1151_s9 + $0x68] sm:$0xff] %v564_v54  ;;  %768 = vst [vmem:[%s1151_s9 + $0xe8] sm:$0xff] %v628_v55 }
 0x117 PF: > { %s12_s11 = sadd.s32 1, %s1064_s11   ;;  %s1197_s9 = smov %s1060_s10 }
 0x118   : > { %p9_p5 = scmp.ge.s32.totalorder %s12_s11, 4   ;;  %s1198_s10 = smov %s1200_s12 }
 0x11a   :  { %11 = sbr.rel (!%p9_p5) target bundleno = 2 (0x2), region = 69 }

// kernel: edge_content_encoder.78
= control target key start
LH: loop header
LB: loop body
LE: loop exit
PB: predicated region body
PF: predicated region fallthrough
CT: control target
= control target key end

     0   :  { %s400_s6 = smov 0   ;;  %s402_s7 = smov 0   ;;  %s464_s0 = inlined_call_operand.vmem [shape: f32[2,64,16], index: 0, kind: input, shape index: {}]   ;;  %s465_s1 = inlined_call_operand.vmem [shape: f32[2,64,16], index: 1, kind: output, shape index: {}]  }
   0x1   :  { %s404_s8 = smov 0  }
   0x2 LB: > { %s23_s9 = sadd.s32 1, %s384_s7  ;;  %p331_p0 = scmp.ge.s32.totalorder %s388_s8, 1  ;;  %s388_s8 = sphi %s404_s8, %s11_s8   ;;  %s384_s7 = sphi %s402_s7, %s467_s7   ;;  %s380_s6 = sphi %s400_s6, %s466_s6  }
   0x3   : > { %p25_p1 = scmp.ge.s32.totalorder %s23_s9, 2  ;;  %p106_p2 = scmp.lt.s32.totalorder %s388_s8, 3 }
   0x5   : > { %s469_s9 = smov (%p25_p1, %s23_s9), 0  ;;  %p107_p3 = pnand %p331_p0, %p106_p2 }
   0x6   : > { %p132_p4 = scmp.lt.s32.totalorder (!%p107_p3), %s380_s6, 1  ;;  %vm156_vm0 = vcmask (!%p107_p3), 130048  }
   0x7   : > { %110 = sbr.rel (%p107_p3) target bundleno = 101 (0x65), region = 24 }
   0xe   : > { %s471_s6 = smov (!%p132_p4, %s380_s6), 1 }
   0xf   : > { %s338_s10 = sshll.u32 %s471_s6, 6 }
  0x10   : > { %s139_s13 = scalar_lea.vmem %s464_s0, %s338_s10  ;;  %s147_s16 = scalar_lea.vmem %s465_s1, %s338_s10 }
  0x11   : > { %v148_v0 = vld [vmem:[%s139_s13] sm:$0xff]  ;;  %v149_v1 = vld [vmem:[%s139_s13 + $0x8] sm:$0xff]  ;;  %v150_v2 = vld [vmem:[%s139_s13 + $0x10] sm:$0xff] }
  0x12   : > { %v151_v3 = vld [vmem:[%s139_s13 + $0x18] sm:$0xff]  ;;  %v157_v4 = vsel %vm156_vm0, %v148_v0, 0.0  ;;  %v158_v5 = vsel %vm156_vm0, %v149_v1, 0.0  ;;  %v160_v6 = vsel %vm156_vm0, %v150_v2, 0.0  ;;  %v152_v7 = vld [vmem:[%s139_s13 + $0x20] sm:$0xff]  ;;  %v153_v10 = vld [vmem:[%s139_s13 + $0x28] sm:$0xff] }
  0x13   : > { %v159_v8 = vadd.f32 %v158_v5, %v157_v4  ;;  %v162_v9 = vsel %vm156_vm0, %v151_v3, 0.0  ;;  %v164_v12 = vsel %vm156_vm0, %v152_v7, 0.0  ;;  %v154_v13 = vld [vmem:[%s139_s13 + $0x30] sm:$0xff]  ;;  %v166_v15 = vsel %vm156_vm0, %v153_v10, 0.0  ;;  %v155_v16 = vld [vmem:[%s139_s13 + $0x38] sm:$0xff] }
  0x14   : > { %v168_v18 = vsel %vm156_vm0, %v154_v13, 0.0  ;;  %v170_v20 = vsel %vm156_vm0, %v155_v16, 0.0 }
  0x15   : > { %v161_v11 = vadd.f32 %v160_v6, %v159_v8 }
  0x17   : > { %v163_v14 = vadd.f32 %v162_v9, %v161_v11 }
  0x19   : > { %v165_v17 = vadd.f32 %v164_v12, %v163_v14 }
  0x1b   : > { %v167_v19 = vadd.f32 %v166_v15, %v165_v17 }
  0x1d   : > { %v169_v21 = vadd.f32 %v168_v18, %v167_v19 }
  0x1f   : > { %v171_v22 = vadd.f32 %v170_v20, %v169_v21 }
  0x21   : > { %v172_v23 = vrot.slane %v171_v22, 4 }
  0x23   : > { %v173_v24 = vadd.f32 %v172_v23, %v171_v22 }
  0x25   : > { %v174_v25 = vrot.slane %v173_v24, 2 }
  0x27   : > { %v175_v26 = vadd.f32 %v174_v25, %v173_v24 }
  0x29   : > { %v176_v27 = vrot.slane %v175_v26, 1 }
  0x2b   : > { %v177_v28 = vadd.f32 %v176_v27, %v175_v26 }
  0x2d   : > { %v179_v29 = vmul.f32 0.015625, %v177_v28 }
  0x2f   : > { %v180_v30 = vsub.f32 %v148_v0, %v179_v29  ;;  %v181_v31 = vsub.f32 %v149_v1, %v179_v29  ;;  %v182_v32 = vsub.f32 %v150_v2, %v179_v29  ;;  %v183_v33 = vsub.f32 %v151_v3, %v179_v29 }
  0x30   : > { %v184_v34 = vsub.f32 %v152_v7, %v179_v29  ;;  %v185_v35 = vsub.f32 %v153_v10, %v179_v29  ;;  %v186_v40 = vsub.f32 %v154_v13, %v179_v29  ;;  %v187_v46 = vsub.f32 %v155_v16, %v179_v29 }
  0x31   : > { %v188_v36 = vmul.f32 %v180_v30, %v180_v30  ;;  %v189_v37 = vmul.f32 %v181_v31, %v181_v31  ;;  %v190_v38 = vmul.f32 %v182_v32, %v182_v32  ;;  %v191_v39 = vmul.f32 %v183_v33, %v183_v33 }
  0x32   : > { %v192_v41 = vmul.f32 %v184_v34, %v184_v34  ;;  %v193_v47 = vmul.f32 %v185_v35, %v185_v35  ;;  %v194_v50 = vmul.f32 %v186_v40, %v186_v40  ;;  %v195_v53 = vmul.f32 %v187_v46, %v187_v46 }
  0x33   : > { %v196_v42 = vsel %vm156_vm0, %v188_v36, 0.0  ;;  %v197_v43 = vsel %vm156_vm0, %v189_v37, 0.0  ;;  %v199_v44 = vsel %vm156_vm0, %v190_v38, 0.0  ;;  %v201_v48 = vsel %vm156_vm0, %v191_v39, 0.0 }
  0x34   : > { %v198_v45 = vadd.f32 %v197_v43, %v196_v42  ;;  %v203_v51 = vsel %vm156_vm0, %v192_v41, 0.0  ;;  %v205_v54 = vsel %vm156_vm0, %v193_v47, 0.0  ;;  %v207_v56 = vsel %vm156_vm0, %v194_v50, 0.0 }
  0x35   : > { %v209_v58 = vsel %vm156_vm0, %v195_v53, 0.0 }
  0x36   : > { %v200_v49 = vadd.f32 %v199_v44, %v198_v45 }
  0x38   : > { %v202_v52 = vadd.f32 %v201_v48, %v200_v49 }
  0x3a   : > { %v204_v55 = vadd.f32 %v203_v51, %v202_v52 }
  0x3c   : > { %v206_v57 = vadd.f32 %v205_v54, %v204_v55 }
  0x3e   : > { %v208_v59 = vadd.f32 %v207_v56, %v206_v57 }
  0x40   : > { %v210_v60 = vadd.f32 %v209_v58, %v208_v59 }
  0x42   : > { %v211_v61 = vrot.slane %v210_v60, 4 }
  0x44   : > { %v212_v62 = vadd.f32 %v211_v61, %v210_v60 }
  0x46   : > { %v213_v63 = vrot.slane %v212_v62, 2 }
  0x48   : > { %v214_v0 = vadd.f32 %v213_v63, %v212_v62 }
  0x4a   : > { %v215_v1 = vrot.slane %v214_v0, 1 }
  0x4c   : > { %v216_v2 = vadd.f32 %v215_v1, %v214_v0 }
  0x4e   : > { %v217_v3 = vmul.f32 0.015625, %v216_v2 }
  0x50   : > { %v218_v4 = vadd.f32 1e-05, %v217_v3 }
  0x52   : > { %364 = vrsqrt.f32 %v218_v4 }
  0x5c   : > { %v365_v5 = vpop.eup %364 }
  0x5d   : > { %v220_v6 = vmul.f32 %v365_v5, %v180_v30  ;;  %v221_v7 = vmul.f32 %v365_v5, %v181_v31  ;;  %v222_v8 = vmul.f32 %v365_v5, %v182_v32  ;;  %v223_v9 = vmul.f32 %v365_v5, %v183_v33 }
  0x5e   : > { %v224_v10 = vmul.f32 %v365_v5, %v184_v34  ;;  %v225_v11 = vmul.f32 %v365_v5, %v185_v35  ;;  %v226_v12 = vmul.f32 %v365_v5, %v186_v40  ;;  %v227_v13 = vmul.f32 %v365_v5, %v187_v46 }
  0x5f   : > { %v228_v14 = vmax.f32 %v220_v6, 0.0  ;;  %v229_v15 = vmax.f32 %v221_v7, 0.0  ;;  %v230_v16 = vmax.f32 %v222_v8, 0.0  ;;  %v231_v17 = vmax.f32 %v223_v9, 0.0 }
  0x60   : > { %v232_v18 = vmax.f32 %v224_v10, 0.0  ;;  %v233_v19 = vmax.f32 %v225_v11, 0.0  ;;  %v234_v20 = vmax.f32 %v226_v12, 0.0  ;;  %v235_v21 = vmax.f32 %v227_v13, 0.0 }
  0x61   : > { %236 = vst.msk [vmem:[%s147_s16] sm:$0xff] %vm156_vm0, %v228_v14  ;;  %237 = vst.msk [vmem:[%s147_s16 + $0x8] sm:$0xff] %vm156_vm0, %v229_v15 }
  0x62   : > { %238 = vst.msk [vmem:[%s147_s16 + $0x10] sm:$0xff] %vm156_vm0, %v230_v16  ;;  %239 = vst.msk [vmem:[%s147_s16 + $0x18] sm:$0xff] %vm156_vm0, %v231_v17 }
  0x63   : > { %240 = vst.msk [vmem:[%s147_s16 + $0x20] sm:$0xff] %vm156_vm0, %v232_v18  ;;  %241 = vst.msk [vmem:[%s147_s16 + $0x28] sm:$0xff] %vm156_vm0, %v233_v19 }
  0x64   : > { %242 = vst.msk [vmem:[%s147_s16 + $0x30] sm:$0xff] %vm156_vm0, %v234_v20  ;;  %243 = vst.msk [vmem:[%s147_s16 + $0x38] sm:$0xff] %vm156_vm0, %v235_v21 }
  0x65 PF: > { %s11_s8 = sadd.s32 1, %s388_s8   ;;  %s466_s6 = smov %s384_s7 }
  0x66   : > { %p8_p5 = scmp.ge.s32.totalorder %s11_s8, 4   ;;  %s467_s7 = smov %s469_s9 }
  0x68   :  { %10 = sbr.rel (!%p8_p5) target bundleno = 2 (0x2), region = 54 }

// kernel: edge_content_encoder.77
= control target key start
LH: loop header
LB: loop body
LE: loop exit
PB: predicated region body
PF: predicated region fallthrough
CT: control target
= control target key end

     0   :  { %s551_s1 = inlined_call_operand.vmem [shape: bf16[128,128], index: 1, kind: input, shape index: {}]   ;;  %s552_s0 = inlined_call_operand.vmem [shape: bf16[128,128], index: 0, kind: input, shape index: {}]   ;;  %s553_s2 = inlined_call_operand.vmem [shape: f32[128,128], index: 2, kind: output, shape index: {}]  }
   0x1   :  { %v424_v0 = vld [vmem:[%s551_s1] sm:$0xff]   ;;  %v425_v1 = vld [vmem:[%s551_s1 + $0x8] sm:$0xff]   ;;  %v426_v2 = vld [vmem:[%s551_s1 + $0x10] sm:$0xff]  }
   0x2   :  { %376 = vmatprep.subr.bf16.mxu0 %v424_v0  ;;  %408 = vmatprep.subr.bf16.mxu1 %v424_v0  ;;  %v427_v3 = vld [vmem:[%s551_s1 + $0x18] sm:$0xff]   ;;  %v432_v4 = vld [vmem:[%s552_s0] sm:$0xff]   ;;  %v429_v7 = vld [vmem:[%s551_s1 + $0x28] sm:$0xff]  }
   0x3   :  { %377 = vmatpush3.bf16.msra.mxu0 %v424_v0  ;;  %416 = vmatpush3.bf16.msra.mxu1 %v424_v0  ;;  %v433_v5 = vld [vmem:[%s552_s0 + $0x20] sm:$0xff]   ;;  %v430_v8 = vld [vmem:[%s551_s1 + $0x30] sm:$0xff]   ;;  %v431_v9 = vld [vmem:[%s551_s1 + $0x38] sm:$0xff]  }
   0x4   :  { %378 = vmatprep.subr.bf16.mxu0 %v425_v1  ;;  %409 = vmatprep.subr.bf16.mxu1 %v425_v1  ;;  %v428_v6 = vld [vmem:[%s551_s1 + $0x20] sm:$0xff]   ;;  %v434_v10 = vld [vmem:[%s552_s0 + $0x8] sm:$0xff]   ;;  %v436_v12 = vld [vmem:[%s552_s0 + $0x10] sm:$0xff]  }
   0x5   :  { %392 = vmatprep.mubr.bf16.mxu0 %v432_v4  ;;  %400 = vmatprep.mubr.bf16.mxu1 %v433_v5  ;;  %v435_v11 = vld [vmem:[%s552_s0 + $0x28] sm:$0xff]   ;;  %v437_v13 = vld [vmem:[%s552_s0 + $0x30] sm:$0xff]   ;;  %v438_v14 = vld [vmem:[%s552_s0 + $0x18] sm:$0xff]  }
   0x6   :  { %v439_v15 = vld [vmem:[%s552_s0 + $0x38] sm:$0xff]  }
   0x7   :  { %379 = vmatpush3.bf16.msra.mxu0 %v425_v1  ;;  %417 = vmatpush3.bf16.msra.mxu1 %v425_v1 }
   0x8   :  { %380 = vmatprep.subr.bf16.mxu0 %v426_v2  ;;  %410 = vmatprep.subr.bf16.mxu1 %v426_v2 }
   0xb   :  { %381 = vmatpush3.bf16.msra.mxu0 %v426_v2  ;;  %418 = vmatpush3.bf16.msra.mxu1 %v426_v2 }
   0xc   :  { %382 = vmatprep.subr.bf16.mxu0 %v427_v3  ;;  %411 = vmatprep.subr.bf16.mxu1 %v427_v3 }
   0xf   :  { %383 = vmatpush3.bf16.msra.mxu0 %v427_v3  ;;  %419 = vmatpush3.bf16.msra.mxu1 %v427_v3 }
  0x10   :  { %384 = vmatprep.subr.bf16.mxu0 %v428_v6  ;;  %412 = vmatprep.subr.bf16.mxu1 %v428_v6 }
  0x13   :  { %385 = vmatpush3.bf16.msra.mxu0 %v428_v6  ;;  %420 = vmatpush3.bf16.msra.mxu1 %v428_v6 }
  0x14   :  { %386 = vmatprep.subr.bf16.mxu0 %v429_v7  ;;  %413 = vmatprep.subr.bf16.mxu1 %v429_v7 }
  0x17   :  { %387 = vmatpush3.bf16.msra.mxu0 %v429_v7  ;;  %421 = vmatpush3.bf16.msra.mxu1 %v429_v7 }
  0x18   :  { %388 = vmatprep.subr.bf16.mxu0 %v430_v8  ;;  %414 = vmatprep.subr.bf16.mxu1 %v430_v8 }
  0x1b   :  { %389 = vmatpush3.bf16.msra.mxu0 %v430_v8  ;;  %422 = vmatpush3.bf16.msra.mxu1 %v430_v8 }
  0x1c   :  { %390 = vmatprep.subr.bf16.mxu0 %v431_v9  ;;  %415 = vmatprep.subr.bf16.mxu1 %v431_v9 }
  0x1f   :  { %391 = vmatpush3.bf16.msra.mxu0 %v431_v9  ;;  %423 = vmatpush3.bf16.msra.mxu1 %v431_v9 }
  0x22   :  { %393 = vmatmul.mubr.bf16.vlgmr.msra.gmra.mrb[0].mxu0 %v434_v10  ;;  %401 = vmatmul.mubr.bf16.vlgmr.msra.gmra.mrb[0].mxu1 %v435_v11 }
  0x23   :  { %396 = vmatprep.mubr.bf16.mxu0 %v436_v12  ;;  %404 = vmatprep.mubr.bf16.mxu1 %v437_v13 }
  0x2a   :  { %397 = vmatmul.mubr.bf16.gmra.mrb[4].mxu0 %v438_v14  ;;  %405 = vmatmul.mubr.bf16.gmra.mrb[4].mxu1 %v439_v15 }
  0xf5   :  { %v394_v16 = vpop.f32.mrb[0].mxu0  ;;  %v402_v17 = vpop.f32.mrb[0].mxu1 }
  0xf6   :  { %326 = vst [vmem:[%s553_s2 + $0x10] sm:$0xff] %v394_v16  ;;  %334 = vst [vmem:[%s553_s2 + $0x50] sm:$0xff] %v402_v17  ;;  %v210_v18 = vpop.f32.mrb[1].mxu0  ;;  %v242_v19 = vpop.f32.mrb[1].mxu1 }
  0xf7   :  { %324 = vst [vmem:[%s553_s2] sm:$0xff] %v210_v18  ;;  %332 = vst [vmem:[%s553_s2 + $0x40] sm:$0xff] %v242_v19  ;;  %v395_v20 = vpop.f32.mrb[2].mxu0  ;;  %v403_v21 = vpop.f32.mrb[2].mxu1 }
  0xf8   :  { %327 = vst [vmem:[%s553_s2 + $0x18] sm:$0xff] %v395_v20  ;;  %335 = vst [vmem:[%s553_s2 + $0x58] sm:$0xff] %v403_v21  ;;  %v213_v22 = vpop.f32.mrb[3].mxu0  ;;  %v245_v23 = vpop.f32.mrb[3].mxu1 }
  0xf9   :  { %325 = vst [vmem:[%s553_s2 + $0x8] sm:$0xff] %v213_v22  ;;  %333 = vst [vmem:[%s553_s2 + $0x48] sm:$0xff] %v245_v23 }
  0xfd   :  { %v398_v24 = vpop.f32.mrb[4].mxu0  ;;  %v406_v25 = vpop.f32.mrb[4].mxu1 }
  0xfe   :  { %330 = vst [vmem:[%s553_s2 + $0x30] sm:$0xff] %v398_v24  ;;  %338 = vst [vmem:[%s553_s2 + $0x70] sm:$0xff] %v406_v25  ;;  %v226_v26 = vpop.f32.mrb[5].mxu0  ;;  %v258_v27 = vpop.f32.mrb[5].mxu1 }
  0xff   :  { %328 = vst [vmem:[%s553_s2 + $0x20] sm:$0xff] %v226_v26  ;;  %336 = vst [vmem:[%s553_s2 + $0x60] sm:$0xff] %v258_v27  ;;  %v399_v28 = vpop.f32.mrb[6].mxu0  ;;  %v407_v29 = vpop.f32.mrb[6].mxu1 }
 0x100   :  { %331 = vst [vmem:[%s553_s2 + $0x38] sm:$0xff] %v399_v28  ;;  %339 = vst [vmem:[%s553_s2 + $0x78] sm:$0xff] %v407_v29  ;;  %v229_v30 = vpop.f32.mrb[7].mxu0  ;;  %v261_v31 = vpop.f32.mrb[7].mxu1 }
 0x101   :  { %329 = vst [vmem:[%s553_s2 + $0x28] sm:$0xff] %v229_v30  ;;  %337 = vst [vmem:[%s553_s2 + $0x68] sm:$0xff] %v261_v31 }

// kernel: edge_content_encoder.82
= control target key start
LH: loop header
LB: loop body
LE: loop exit
PB: predicated region body
PF: predicated region fallthrough
CT: control target
= control target key end

     0   :  { %s492_s9 = smov 0   ;;  %s494_s10 = smov 0   ;;  %s557_s0 = inlined_call_operand.vmem [shape: f32[2,64,16], index: 0, kind: input, shape index: {}]   ;;  %s558_s1 = inlined_call_operand.vmem [shape: f32[2,64,16], index: 1, kind: input, shape index: {}]   ;;  %s559_s2 = inlined_call_operand.vmem [shape: f32[2,64,16], index: 2, kind: output, shape index: {}]  }
   0x1   :  { %s496_s11 = smov 0  }
   0x2 LB: > { %s24_s12 = sadd.s32 1, %s471_s10  ;;  %p415_p0 = scmp.ge.s32.totalorder %s475_s11, 1  ;;  %s475_s11 = sphi %s496_s11, %s12_s11   ;;  %s471_s10 = sphi %s494_s10, %s561_s10   ;;  %s467_s9 = sphi %s492_s9, %s560_s9  }
   0x3   : > { %p26_p1 = scmp.ge.s32.totalorder %s24_s12, 2  ;;  %p146_p2 = scmp.lt.s32.totalorder %s475_s11, 3 }
   0x5   : > { %s563_s12 = smov (%p26_p1, %s24_s12), 0  ;;  %p147_p3 = pnand %p415_p0, %p146_p2 }
   0x6   : > { %p182_p4 = scmp.lt.s32.totalorder (!%p147_p3), %s467_s9, 1  ;;  %vm214_vm0 = vcmask (!%p147_p3), 130048  }
   0x7   : > { %150 = sbr.rel (%p147_p3) target bundleno = 101 (0x65), region = 28 }
   0xe   : > { %s565_s9 = smov (!%p182_p4, %s467_s9), 1 }
   0xf   : > { %s510_s13 = sshll.u32 %s565_s9, 6 }
  0x10   : > { %s189_s16 = scalar_lea.vmem %s557_s0, %s510_s13  ;;  %s197_s19 = scalar_lea.vmem %s558_s1, %s510_s13 }
  0x11   : > { %v206_v0 = vld [vmem:[%s189_s16] sm:$0xff]  ;;  %v207_v1 = vld [vmem:[%s189_s16 + $0x8] sm:$0xff]  ;;  %v208_v2 = vld [vmem:[%s189_s16 + $0x10] sm:$0xff]  ;;  %s205_s22 = scalar_lea.vmem %s559_s2, %s510_s13 }
  0x12   : > { %v209_v3 = vld [vmem:[%s189_s16 + $0x18] sm:$0xff]  ;;  %v215_v4 = vsel %vm214_vm0, %v206_v0, 0.0  ;;  %v216_v5 = vsel %vm214_vm0, %v207_v1, 0.0  ;;  %v218_v6 = vsel %vm214_vm0, %v208_v2, 0.0  ;;  %v210_v7 = vld [vmem:[%s189_s16 + $0x20] sm:$0xff]  ;;  %v211_v10 = vld [vmem:[%s189_s16 + $0x28] sm:$0xff] }
  0x13   : > { %v217_v8 = vadd.f32 %v216_v5, %v215_v4  ;;  %v220_v9 = vsel %vm214_vm0, %v209_v3, 0.0  ;;  %v222_v12 = vsel %vm214_vm0, %v210_v7, 0.0  ;;  %v212_v13 = vld [vmem:[%s189_s16 + $0x30] sm:$0xff]  ;;  %v224_v15 = vsel %vm214_vm0, %v211_v10, 0.0  ;;  %v213_v16 = vld [vmem:[%s189_s16 + $0x38] sm:$0xff]  ;;  %v286_v5 = vld [vmem:[%s197_s19] sm:$0xff] }
  0x14   : > { %v226_v18 = vsel %vm214_vm0, %v212_v13, 0.0  ;;  %v228_v20 = vsel %vm214_vm0, %v213_v16, 0.0 }
  0x15   : > { %v219_v11 = vadd.f32 %v218_v6, %v217_v8  ;;  %v287_v6 = vld [vmem:[%s197_s19 + $0x8] sm:$0xff]  ;;  %v288_v8 = vld [vmem:[%s197_s19 + $0x10] sm:$0xff] }
  0x17   : > { %v221_v14 = vadd.f32 %v220_v9, %v219_v11  ;;  %v289_v9 = vld [vmem:[%s197_s19 + $0x18] sm:$0xff] }
  0x19   : > { %v223_v17 = vadd.f32 %v222_v12, %v221_v14 }
  0x1b   : > { %v225_v19 = vadd.f32 %v224_v15, %v223_v17  ;;  %v291_v15 = vld [vmem:[%s197_s19 + $0x28] sm:$0xff]  ;;  %v293_v17 = vld [vmem:[%s197_s19 + $0x38] sm:$0xff] }
  0x1d   : > { %v227_v21 = vadd.f32 %v226_v18, %v225_v19 }
  0x1f   : > { %v229_v22 = vadd.f32 %v228_v20, %v227_v21 }
  0x21   : > { %v230_v23 = vrot.slane %v229_v22, 4 }
  0x23   : > { %v231_v24 = vadd.f32 %v230_v23, %v229_v22 }
  0x25   : > { %v232_v25 = vrot.slane %v231_v24, 2 }
  0x27   : > { %v233_v26 = vadd.f32 %v232_v25, %v231_v24 }
  0x29   : > { %v234_v27 = vrot.slane %v233_v26, 1 }
  0x2b   : > { %v235_v28 = vadd.f32 %v234_v27, %v233_v26 }
  0x2d   : > { %v237_v29 = vmul.f32 0.015625, %v235_v28 }
  0x2f   : > { %v238_v30 = vsub.f32 %v206_v0, %v237_v29  ;;  %v239_v31 = vsub.f32 %v207_v1, %v237_v29  ;;  %v240_v32 = vsub.f32 %v208_v2, %v237_v29  ;;  %v241_v33 = vsub.f32 %v209_v3, %v237_v29 }
  0x30   : > { %v242_v34 = vsub.f32 %v210_v7, %v237_v29  ;;  %v243_v35 = vsub.f32 %v211_v10, %v237_v29  ;;  %v244_v40 = vsub.f32 %v212_v13, %v237_v29  ;;  %v245_v46 = vsub.f32 %v213_v16, %v237_v29  ;;  %v290_v10 = vld [vmem:[%s197_s19 + $0x20] sm:$0xff]  ;;  %v292_v16 = vld [vmem:[%s197_s19 + $0x30] sm:$0xff] }
  0x31   : > { %v246_v36 = vmul.f32 %v238_v30, %v238_v30  ;;  %v247_v37 = vmul.f32 %v239_v31, %v239_v31  ;;  %v248_v38 = vmul.f32 %v240_v32, %v240_v32  ;;  %v249_v39 = vmul.f32 %v241_v33, %v241_v33 }
  0x32   : > { %v250_v41 = vmul.f32 %v242_v34, %v242_v34  ;;  %v251_v47 = vmul.f32 %v243_v35, %v243_v35  ;;  %v252_v50 = vmul.f32 %v244_v40, %v244_v40  ;;  %v253_v53 = vmul.f32 %v245_v46, %v245_v46 }
  0x33   : > { %v254_v42 = vsel %vm214_vm0, %v246_v36, 0.0  ;;  %v255_v43 = vsel %vm214_vm0, %v247_v37, 0.0  ;;  %v257_v44 = vsel %vm214_vm0, %v248_v38, 0.0  ;;  %v259_v48 = vsel %vm214_vm0, %v249_v39, 0.0 }
  0x34   : > { %v256_v45 = vadd.f32 %v255_v43, %v254_v42  ;;  %v261_v51 = vsel %vm214_vm0, %v250_v41, 0.0  ;;  %v263_v54 = vsel %vm214_vm0, %v251_v47, 0.0  ;;  %v265_v56 = vsel %vm214_vm0, %v252_v50, 0.0 }
  0x35   : > { %v267_v58 = vsel %vm214_vm0, %v253_v53, 0.0 }
  0x36   : > { %v258_v49 = vadd.f32 %v257_v44, %v256_v45 }
  0x38   : > { %v260_v52 = vadd.f32 %v259_v48, %v258_v49 }
  0x3a   : > { %v262_v55 = vadd.f32 %v261_v51, %v260_v52 }
  0x3c   : > { %v264_v57 = vadd.f32 %v263_v54, %v262_v55 }
  0x3e   : > { %v266_v59 = vadd.f32 %v265_v56, %v264_v57 }
  0x40   : > { %v268_v60 = vadd.f32 %v267_v58, %v266_v59 }
  0x42   : > { %v269_v61 = vrot.slane %v268_v60, 4 }
  0x44   : > { %v270_v62 = vadd.f32 %v269_v61, %v268_v60 }
  0x46   : > { %v271_v63 = vrot.slane %v270_v62, 2 }
  0x48   : > { %v272_v0 = vadd.f32 %v271_v63, %v270_v62 }
  0x4a   : > { %v273_v1 = vrot.slane %v272_v0, 1 }
  0x4c   : > { %v274_v2 = vadd.f32 %v273_v1, %v272_v0 }
  0x4e   : > { %v275_v3 = vmul.f32 0.015625, %v274_v2 }
  0x50   : > { %v276_v4 = vadd.f32 1e-05, %v275_v3 }
  0x52   : > { %451 = vrsqrt.f32 %v276_v4 }
  0x5c   : > { %v452_v7 = vpop.eup %451 }
  0x5d   : > { %v278_v11 = vmul.f32 %v452_v7, %v238_v30  ;;  %v279_v12 = vmul.f32 %v452_v7, %v239_v31  ;;  %v280_v13 = vmul.f32 %v452_v7, %v240_v32  ;;  %v281_v14 = vmul.f32 %v452_v7, %v241_v33 }
  0x5e   : > { %v282_v18 = vmul.f32 %v452_v7, %v242_v34  ;;  %v283_v19 = vmul.f32 %v452_v7, %v243_v35  ;;  %v284_v20 = vmul.f32 %v452_v7, %v244_v40  ;;  %v285_v21 = vmul.f32 %v452_v7, %v245_v46 }
  0x5f   : > { %v294_v22 = vadd.f32 %v286_v5, %v278_v11  ;;  %v295_v23 = vadd.f32 %v287_v6, %v279_v12  ;;  %v296_v24 = vadd.f32 %v288_v8, %v280_v13  ;;  %v297_v25 = vadd.f32 %v289_v9, %v281_v14 }
  0x60   : > { %v298_v26 = vadd.f32 %v290_v10, %v282_v18  ;;  %v299_v27 = vadd.f32 %v291_v15, %v283_v19  ;;  %v300_v28 = vadd.f32 %v292_v16, %v284_v20  ;;  %v301_v29 = vadd.f32 %v293_v17, %v285_v21 }
  0x61   : > { %302 = vst.msk [vmem:[%s205_s22] sm:$0xff] %vm214_vm0, %v294_v22  ;;  %303 = vst.msk [vmem:[%s205_s22 + $0x8] sm:$0xff] %vm214_vm0, %v295_v23 }
  0x62   : > { %304 = vst.msk [vmem:[%s205_s22 + $0x10] sm:$0xff] %vm214_vm0, %v296_v24  ;;  %305 = vst.msk [vmem:[%s205_s22 + $0x18] sm:$0xff] %vm214_vm0, %v297_v25 }
  0x63   : > { %306 = vst.msk [vmem:[%s205_s22 + $0x20] sm:$0xff] %vm214_vm0, %v298_v26  ;;  %307 = vst.msk [vmem:[%s205_s22 + $0x28] sm:$0xff] %vm214_vm0, %v299_v27 }
  0x64   : > { %308 = vst.msk [vmem:[%s205_s22 + $0x30] sm:$0xff] %vm214_vm0, %v300_v28  ;;  %309 = vst.msk [vmem:[%s205_s22 + $0x38] sm:$0xff] %vm214_vm0, %v301_v29 }
  0x65 PF: > { %s12_s11 = sadd.s32 1, %s475_s11   ;;  %s560_s9 = smov %s471_s10 }
  0x66   : > { %p9_p5 = scmp.ge.s32.totalorder %s12_s11, 4   ;;  %s561_s10 = smov %s563_s12 }
  0x68   :  { %11 = sbr.rel (!%p9_p5) target bundleno = 2 (0x2), region = 61 }

// kernel: edge_content_encoder.79
= control target key start
LH: loop header
LB: loop body
LE: loop exit
PB: predicated region body
PF: predicated region fallthrough
CT: control target
= control target key end

     0   :  { %s751_s1 = inlined_call_operand.vmem [shape: bf16[256,128], index: 1, kind: input, shape index: {}]   ;;  %s752_s0 = inlined_call_operand.vmem [shape: bf16[128,256], index: 0, kind: input, shape index: {}]   ;;  %s753_s2 = inlined_call_operand.vmem [shape: f32[128,128], index: 2, kind: output, shape index: {}]  }
   0x1   :  { %v552_v0 = vld [vmem:[%s751_s1 + $0x40] sm:$0xff]   ;;  %v554_v2 = vld [vmem:[%s751_s1 + $0x48] sm:$0xff]   ;;  %v556_v4 = vld [vmem:[%s751_s1 + $0x50] sm:$0xff]  }
   0x2   :  { %v553_v1 = vld [vmem:[%s751_s1] sm:$0xff]   ;;  %472 = vmatprep.subr.bf16.mxu0 %v552_v0  ;;  %536 = vmatprep.subr.bf16.mxu1 %v552_v0  ;;  %v555_v3 = vld [vmem:[%s751_s1 + $0x8] sm:$0xff]   ;;  %v557_v5 = vld [vmem:[%s751_s1 + $0x10] sm:$0xff]  }
   0x3   :  { %473 = vmatpush3.bf16.msra.mxu0 %v553_v1  ;;  %544 = vmatpush3.bf16.msra.mxu1 %v553_v1  ;;  %v558_v6 = vld [vmem:[%s751_s1 + $0x58] sm:$0xff]   ;;  %v560_v8 = vld [vmem:[%s751_s1 + $0x60] sm:$0xff]   ;;  %v562_v10 = vld [vmem:[%s751_s1 + $0x68] sm:$0xff]  }
   0x4   :  { %474 = vmatprep.subr.bf16.mxu0 %v554_v2  ;;  %537 = vmatprep.subr.bf16.mxu1 %v554_v2  ;;  %v559_v7 = vld [vmem:[%s751_s1 + $0x18] sm:$0xff]   ;;  %v561_v9 = vld [vmem:[%s751_s1 + $0x20] sm:$0xff]   ;;  %v563_v13 = vld [vmem:[%s751_s1 + $0x28] sm:$0xff]  }
   0x5   :  { %v570_v11 = vld [vmem:[%s752_s0 + $0x4] ss:$8 sps:$4 sm:$0xff]   ;;  %v564_v14 = vld [vmem:[%s751_s1 + $0x70] sm:$0xff]   ;;  %v566_v16 = vld [vmem:[%s751_s1 + $0x78] sm:$0xff]  }
   0x6   :  { %v573_v12 = vld [vmem:[%s752_s0 + $0x44] ss:$8 sps:$4 sm:$0xff]   ;;  %304 = vmatprep.mubr.bf16.mxu0 %v570_v11  ;;  %v565_v15 = vld [vmem:[%s751_s1 + $0x30] sm:$0xff]   ;;  %v567_v17 = vld [vmem:[%s751_s1 + $0x38] sm:$0xff]  }
   0x7   :  { %475 = vmatpush3.bf16.msra.mxu0 %v555_v3  ;;  %545 = vmatpush3.bf16.msra.mxu1 %v555_v3  ;;  %v568_v18 = vld [vmem:[%s752_s0] ss:$8 sps:$4 sm:$0xff]   ;;  %v574_v20 = vld [vmem:[%s752_s0 + $0x14] ss:$8 sps:$4 sm:$0xff]   ;;  %v578_v22 = vld [vmem:[%s752_s0 + $0x10] ss:$8 sps:$4 sm:$0xff]  }
   0x8   :  { %476 = vmatprep.subr.bf16.mxu0 %v556_v4  ;;  %538 = vmatprep.subr.bf16.mxu1 %v556_v4  ;;  %v571_v19 = vld [vmem:[%s752_s0 + $0x40] ss:$8 sps:$4 sm:$0xff]   ;;  %v576_v21 = vld [vmem:[%s752_s0 + $0x54] ss:$8 sps:$4 sm:$0xff]   ;;  %v579_v23 = vld [vmem:[%s752_s0 + $0x50] ss:$8 sps:$4 sm:$0xff]  }
   0x9   :  { %336 = vmatprep.mubr.bf16.mxu1 %v573_v12  ;;  %v580_v24 = vld [vmem:[%s752_s0 + $0x24] ss:$8 sps:$4 sm:$0xff]   ;;  %v584_v26 = vld [vmem:[%s752_s0 + $0x20] ss:$8 sps:$4 sm:$0xff]   ;;  %v586_v28 = vld [vmem:[%s752_s0 + $0x34] ss:$8 sps:$4 sm:$0xff]  }
   0xa   :  { %v582_v25 = vld [vmem:[%s752_s0 + $0x64] ss:$8 sps:$4 sm:$0xff]   ;;  %v585_v27 = vld [vmem:[%s752_s0 + $0x60] ss:$8 sps:$4 sm:$0xff]   ;;  %v588_v29 = vld [vmem:[%s752_s0 + $0x74] ss:$8 sps:$4 sm:$0xff]  }
   0xb   :  { %477 = vmatpush3.bf16.msra.mxu0 %v557_v5  ;;  %546 = vmatpush3.bf16.msra.mxu1 %v557_v5  ;;  %v590_v30 = vld [vmem:[%s752_s0 + $0x30] ss:$8 sps:$4 sm:$0xff]  }
   0xc   :  { %478 = vmatprep.subr.bf16.mxu0 %v558_v6  ;;  %539 = vmatprep.subr.bf16.mxu1 %v558_v6  ;;  %v591_v31 = vld [vmem:[%s752_s0 + $0x70] ss:$8 sps:$4 sm:$0xff]  }
   0xf   :  { %479 = vmatpush3.bf16.msra.mxu0 %v559_v7  ;;  %547 = vmatpush3.bf16.msra.mxu1 %v559_v7 }
  0x10   :  { %480 = vmatprep.subr.bf16.mxu0 %v560_v8  ;;  %540 = vmatprep.subr.bf16.mxu1 %v560_v8 }
  0x13   :  { %481 = vmatpush3.bf16.msra.mxu0 %v561_v9  ;;  %548 = vmatpush3.bf16.msra.mxu1 %v561_v9 }
  0x14   :  { %482 = vmatprep.subr.bf16.mxu0 %v562_v10  ;;  %541 = vmatprep.subr.bf16.mxu1 %v562_v10 }
  0x17   :  { %483 = vmatpush3.bf16.msra.mxu0 %v563_v13  ;;  %549 = vmatpush3.bf16.msra.mxu1 %v563_v13 }
  0x18   :  { %484 = vmatprep.subr.bf16.mxu0 %v564_v14  ;;  %542 = vmatprep.subr.bf16.mxu1 %v564_v14 }
  0x1b   :  { %485 = vmatpush3.bf16.msra.mxu0 %v565_v15  ;;  %550 = vmatpush3.bf16.msra.mxu1 %v565_v15 }
  0x1c   :  { %486 = vmatprep.subr.bf16.mxu0 %v566_v16  ;;  %543 = vmatprep.subr.bf16.mxu1 %v566_v16 }
  0x1f   :  { %487 = vmatpush3.bf16.msra.mxu0 %v567_v17  ;;  %551 = vmatpush3.bf16.msra.mxu1 %v567_v17 }
  0x22   :  { %305 = vmatmul.mubr.bf16.vlgmr.msra.gmra.mrb[0].mxu0 %v568_v18  ;;  %337 = vmatmul.mubr.bf16.vlgmr.msra.gmra.mrb[0].mxu1 %v571_v19 }
  0x23   :  { %312 = vmatprep.mubr.bf16.mxu0 %v574_v20  ;;  %344 = vmatprep.mubr.bf16.mxu1 %v576_v21 }
  0x2a   :  { %313 = vmatmul.mubr.bf16.gmra.mrb[4].mxu0 %v578_v22  ;;  %345 = vmatmul.mubr.bf16.gmra.mrb[4].mxu1 %v579_v23 }
  0x2b   :  { %320 = vmatprep.mubr.bf16.mxu0 %v580_v24  ;;  %352 = vmatprep.mubr.bf16.mxu1 %v582_v25 }
  0x32   :  { %321 = vmatmul.mubr.bf16.gmra.mrb[8].mxu0 %v584_v26  ;;  %353 = vmatmul.mubr.bf16.gmra.mrb[8].mxu1 %v585_v27 }
  0x33   :  { %328 = vmatprep.mubr.bf16.mxu0 %v586_v28  ;;  %360 = vmatprep.mubr.bf16.mxu1 %v588_v29 }
  0x3a   :  { %329 = vmatmul.mubr.bf16.gmra.mrb[12].mxu0 %v590_v30  ;;  %361 = vmatmul.mubr.bf16.gmra.mrb[12].mxu1 %v591_v31 }
  0xf5   :  { %v488_v32 = vpop.f32.mrb[0].mxu0  ;;  %v512_v33 = vpop.f32.mrb[0].mxu1 }
  0xf6   :  { %v489_v34 = vpop.f32.mrb[1].mxu0  ;;  %v513_v35 = vpop.f32.mrb[1].mxu1 }
  0xf7   :  { %v490_v36 = vadd.f32 %v489_v34, %v488_v32  ;;  %v514_v37 = vadd.f32 %v513_v35, %v512_v33  ;;  %v491_v38 = vpop.f32.mrb[2].mxu0  ;;  %v515_v39 = vpop.f32.mrb[2].mxu1 }
  0xf8   :  { %v492_v40 = vpop.f32.mrb[3].mxu0  ;;  %v516_v41 = vpop.f32.mrb[3].mxu1 }
  0xf9   :  { %420 = vst [vmem:[%s753_s2] sm:$0xff] %v490_v36  ;;  %428 = vst [vmem:[%s753_s2 + $0x40] sm:$0xff] %v514_v37  ;;  %v493_v42 = vadd.f32 %v492_v40, %v491_v38  ;;  %v517_v43 = vadd.f32 %v516_v41, %v515_v39 }
  0xfb   :  { %421 = vst [vmem:[%s753_s2 + $0x8] sm:$0xff] %v493_v42  ;;  %429 = vst [vmem:[%s753_s2 + $0x48] sm:$0xff] %v517_v43 }
  0xfd   :  { %v494_v44 = vpop.f32.mrb[4].mxu0  ;;  %v518_v45 = vpop.f32.mrb[4].mxu1 }
  0xfe   :  { %v495_v46 = vpop.f32.mrb[5].mxu0  ;;  %v519_v47 = vpop.f32.mrb[5].mxu1 }
  0xff   :  { %v496_v48 = vadd.f32 %v495_v46, %v494_v44  ;;  %v520_v49 = vadd.f32 %v519_v47, %v518_v45  ;;  %v497_v50 = vpop.f32.mrb[6].mxu0  ;;  %v521_v51 = vpop.f32.mrb[6].mxu1 }
 0x100   :  { %v498_v52 = vpop.f32.mrb[7].mxu0  ;;  %v522_v53 = vpop.f32.mrb[7].mxu1 }
 0x101   :  { %422 = vst [vmem:[%s753_s2 + $0x10] sm:$0xff] %v496_v48  ;;  %430 = vst [vmem:[%s753_s2 + $0x50] sm:$0xff] %v520_v49  ;;  %v499_v54 = vadd.f32 %v498_v52, %v497_v50  ;;  %v523_v55 = vadd.f32 %v522_v53, %v521_v51 }
 0x103   :  { %423 = vst [vmem:[%s753_s2 + $0x18] sm:$0xff] %v499_v54  ;;  %431 = vst [vmem:[%s753_s2 + $0x58] sm:$0xff] %v523_v55 }
 0x105   :  { %v500_v56 = vpop.f32.mrb[8].mxu0  ;;  %v524_v57 = vpop.f32.mrb[8].mxu1 }
 0x106   :  { %v501_v58 = vpop.f32.mrb[9].mxu0  ;;  %v525_v59 = vpop.f32.mrb[9].mxu1 }
 0x107   :  { %v502_v60 = vadd.f32 %v501_v58, %v500_v56  ;;  %v526_v61 = vadd.f32 %v525_v59, %v524_v57  ;;  %v503_v62 = vpop.f32.mrb[10].mxu0  ;;  %v527_v63 = vpop.f32.mrb[10].mxu1 }
 0x108   :  { %v504_v0 = vpop.f32.mrb[11].mxu0  ;;  %v528_v1 = vpop.f32.mrb[11].mxu1 }
 0x109   :  { %424 = vst [vmem:[%s753_s2 + $0x20] sm:$0xff] %v502_v60  ;;  %432 = vst [vmem:[%s753_s2 + $0x60] sm:$0xff] %v526_v61  ;;  %v505_v2 = vadd.f32 %v504_v0, %v503_v62  ;;  %v529_v3 = vadd.f32 %v528_v1, %v527_v63 }
 0x10b   :  { %425 = vst [vmem:[%s753_s2 + $0x28] sm:$0xff] %v505_v2  ;;  %433 = vst [vmem:[%s753_s2 + $0x68] sm:$0xff] %v529_v3 }
 0x10d   :  { %v506_v4 = vpop.f32.mrb[12].mxu0  ;;  %v530_v5 = vpop.f32.mrb[12].mxu1 }
 0x10e   :  { %v507_v6 = vpop.f32.mrb[13].mxu0  ;;  %v531_v7 = vpop.f32.mrb[13].mxu1 }
 0x10f   :  { %v508_v8 = vadd.f32 %v507_v6, %v506_v4  ;;  %v532_v9 = vadd.f32 %v531_v7, %v530_v5  ;;  %v509_v10 = vpop.f32.mrb[14].mxu0  ;;  %v533_v11 = vpop.f32.mrb[14].mxu1 }
 0x110   :  { %v510_v12 = vpop.f32.mrb[15].mxu0  ;;  %v534_v13 = vpop.f32.mrb[15].mxu1 }
 0x111   :  { %426 = vst [vmem:[%s753_s2 + $0x30] sm:$0xff] %v508_v8  ;;  %434 = vst [vmem:[%s753_s2 + $0x70] sm:$0xff] %v532_v9  ;;  %v511_v14 = vadd.f32 %v510_v12, %v509_v10  ;;  %v535_v15 = vadd.f32 %v534_v13, %v533_v11 }
 0x113   :  { %427 = vst [vmem:[%s753_s2 + $0x38] sm:$0xff] %v511_v14  ;;  %435 = vst [vmem:[%s753_s2 + $0x78] sm:$0xff] %v535_v15 }

// kernel: edge_content_encoder.84
= control target key start
LH: loop header
LB: loop body
LE: loop exit
PB: predicated region body
PF: predicated region fallthrough
CT: control target
= control target key end

     0   :  { %s340_s6 = smov 0   ;;  %s342_s7 = smov 0   ;;  %s386_s0 = inlined_call_operand.vmem [shape: f32[2,16,32], index: 0, kind: input, shape index: {}]   ;;  %s387_s1 = inlined_call_operand.vmem [shape: f32[2,16,32], index: 1, kind: output, shape index: {}]  }
   0x1   :  { %s344_s8 = smov 0  }
   0x2 LB: > { %s23_s9 = sadd.s32 1, %s324_s7  ;;  %p271_p0 = scmp.ge.s32.totalorder %s328_s8, 1  ;;  %s328_s8 = sphi %s344_s8, %s11_s8   ;;  %s324_s7 = sphi %s342_s7, %s389_s7   ;;  %s320_s6 = sphi %s340_s6, %s388_s6  }
   0x3   : > { %p25_p1 = scmp.ge.s32.totalorder %s23_s9, 2  ;;  %p106_p2 = scmp.lt.s32.totalorder %s328_s8, 3 }
   0x5   : > { %s391_s9 = smov (%p25_p1, %s23_s9), 0  ;;  %p107_p3 = pnand %p271_p0, %p106_p2 }
   0x6   : > { %p132_p4 = scmp.lt.s32.totalorder (!%p107_p3), %s320_s6, 1  ;;  %vm150_vm0 = vcmask (!%p107_p3), 261120  }
   0x7   : > { %110 = sbr.rel (%p107_p3) target bundleno = 74 (0x4a), region = 24 }
   0xe   : > { %s393_s6 = smov (!%p132_p4, %s320_s6), 1 }
   0xf   : > { %s278_s10 = sshll.u32 %s393_s6, 4 }
  0x10   : > { %s139_s13 = scalar_lea.vmem %s386_s0, %s278_s10  ;;  %s147_s16 = scalar_lea.vmem %s387_s1, %s278_s10 }
  0x11   : > { %v148_v0 = vld [vmem:[%s139_s13] sm:$0xff]  ;;  %v149_v1 = vld [vmem:[%s139_s13 + $0x8] sm:$0xff] }
  0x12   : > { %v151_v2 = vsel %vm150_vm0, %v148_v0, 0.0  ;;  %v152_v3 = vsel %vm150_vm0, %v149_v1, 0.0 }
  0x13   : > { %v153_v4 = vadd.f32 %v152_v3, %v151_v2 }
  0x15   : > { %v154_v5 = vrot.slane %v153_v4, 4 }
  0x17   : > { %v155_v6 = vadd.f32 %v154_v5, %v153_v4 }
  0x19   : > { %v156_v7 = vrot.slane %v155_v6, 2 }
  0x1b   : > { %v157_v8 = vadd.f32 %v156_v7, %v155_v6 }
  0x1d   : > { %v158_v9 = vrot.slane %v157_v8, 1 }
  0x1f   : > { %v159_v10 = vadd.f32 %v158_v9, %v157_v8 }
  0x21   : > { %v161_v11 = vmul.f32 0.0625, %v159_v10 }
  0x23   : > { %v162_v12 = vsub.f32 %v148_v0, %v161_v11  ;;  %v163_v13 = vsub.f32 %v149_v1, %v161_v11 }
  0x25   : > { %v164_v14 = vmul.f32 %v162_v12, %v162_v12  ;;  %v165_v15 = vmul.f32 %v163_v13, %v163_v13 }
  0x27   : > { %v166_v16 = vsel %vm150_vm0, %v164_v14, 0.0  ;;  %v167_v17 = vsel %vm150_vm0, %v165_v15, 0.0 }
  0x28   : > { %v168_v18 = vadd.f32 %v167_v17, %v166_v16 }
  0x2a   : > { %v169_v19 = vrot.slane %v168_v18, 4 }
  0x2c   : > { %v170_v20 = vadd.f32 %v169_v19, %v168_v18 }
  0x2e   : > { %v171_v21 = vrot.slane %v170_v20, 2 }
  0x30   : > { %v172_v22 = vadd.f32 %v171_v21, %v170_v20 }
  0x32   : > { %v173_v23 = vrot.slane %v172_v22, 1 }
  0x34   : > { %v174_v24 = vadd.f32 %v173_v23, %v172_v22 }
  0x36   : > { %v175_v25 = vmul.f32 0.0625, %v174_v24 }
  0x38   : > { %v176_v26 = vadd.f32 1e-05, %v175_v25 }
  0x3a   : > { %304 = vrsqrt.f32 %v176_v26 }
  0x44   : > { %v305_v27 = vpop.eup %304 }
  0x45   : > { %v178_v28 = vmul.f32 %v305_v27, %v162_v12  ;;  %v179_v29 = vmul.f32 %v305_v27, %v163_v13 }
  0x47   : > { %v180_v30 = vmax.f32 %v178_v28, 0.0  ;;  %v181_v31 = vmax.f32 %v179_v29, 0.0 }
  0x49   : > { %182 = vst.msk [vmem:[%s147_s16] sm:$0xff] %vm150_vm0, %v180_v30  ;;  %183 = vst.msk [vmem:[%s147_s16 + $0x8] sm:$0xff] %vm150_vm0, %v181_v31 }
  0x4a PF: > { %s11_s8 = sadd.s32 1, %s328_s8   ;;  %s388_s6 = smov %s324_s7 }
  0x4b   : > { %p8_p5 = scmp.ge.s32.totalorder %s11_s8, 4   ;;  %s389_s7 = smov %s391_s9 }
  0x4d   :  { %10 = sbr.rel (!%p8_p5) target bundleno = 2 (0x2), region = 54 }

// kernel: edge_content_encoder.83
= control target key start
LH: loop header
LB: loop body
LE: loop exit
PB: predicated region body
PF: predicated region fallthrough
CT: control target
= control target key end

     0   :  { %s421_s1 = inlined_call_operand.vmem [shape: bf16[256,128], index: 1, kind: input, shape index: {}]   ;;  %s422_s0 = inlined_call_operand.vmem [shape: bf16[32,256], index: 0, kind: input, shape index: {}]   ;;  %s423_s2 = inlined_call_operand.vmem [shape: f32[32,128], index: 2, kind: output, shape index: {}]  }
   0x1   :  { %v312_v0 = vld [vmem:[%s421_s1 + $0x40] sm:$0xff]   ;;  %v314_v2 = vld [vmem:[%s421_s1 + $0x48] sm:$0xff]   ;;  %v316_v4 = vld [vmem:[%s421_s1 + $0x50] sm:$0xff]  }
   0x2   :  { %v313_v1 = vld [vmem:[%s421_s1] sm:$0xff]   ;;  %268 = vmatprep.subr.bf16.mxu0 %v312_v0  ;;  %296 = vmatprep.subr.bf16.mxu1 %v312_v0  ;;  %v315_v3 = vld [vmem:[%s421_s1 + $0x8] sm:$0xff]   ;;  %v317_v5 = vld [vmem:[%s421_s1 + $0x10] sm:$0xff]  }
   0x3   :  { %269 = vmatpush3.bf16.msra.mxu0 %v313_v1  ;;  %304 = vmatpush3.bf16.msra.mxu1 %v313_v1  ;;  %v318_v6 = vld [vmem:[%s421_s1 + $0x58] sm:$0xff]   ;;  %v320_v8 = vld [vmem:[%s421_s1 + $0x60] sm:$0xff]   ;;  %v322_v10 = vld [vmem:[%s421_s1 + $0x68] sm:$0xff]  }
   0x4   :  { %270 = vmatprep.subr.bf16.mxu0 %v314_v2  ;;  %297 = vmatprep.subr.bf16.mxu1 %v314_v2  ;;  %v319_v7 = vld [vmem:[%s421_s1 + $0x18] sm:$0xff]   ;;  %v321_v9 = vld [vmem:[%s421_s1 + $0x20] sm:$0xff]   ;;  %v323_v13 = vld [vmem:[%s421_s1 + $0x28] sm:$0xff]  }
   0x5   :  { %v330_v11 = vld [vmem:[%s422_s0 + $0x4] ss:$8 sps:$4 sm:$0xff]   ;;  %v333_v12 = vld [vmem:[%s422_s0 + $0x14] ss:$8 sps:$4 sm:$0xff]   ;;  %v328_v18 = vld [vmem:[%s422_s0] ss:$8 sps:$4 sm:$0xff]  }
   0x6   :  { %v324_v14 = vld [vmem:[%s421_s1 + $0x70] sm:$0xff]   ;;  %208 = vmatprep.mubr.bf16.mxu0 %v330_v11  ;;  %216 = vmatprep.mubr.bf16.mxu1 %v333_v12  ;;  %v326_v16 = vld [vmem:[%s421_s1 + $0x78] sm:$0xff]  }
   0x7   :  { %271 = vmatpush3.bf16.msra.mxu0 %v315_v3  ;;  %305 = vmatpush3.bf16.msra.mxu1 %v315_v3  ;;  %v325_v15 = vld [vmem:[%s421_s1 + $0x30] sm:$0xff]   ;;  %v327_v17 = vld [vmem:[%s421_s1 + $0x38] sm:$0xff]  }
   0x8   :  { %272 = vmatprep.subr.bf16.mxu0 %v316_v4  ;;  %298 = vmatprep.subr.bf16.mxu1 %v316_v4  ;;  %v331_v19 = vld [vmem:[%s422_s0 + $0x10] ss:$8 sps:$4 sm:$0xff]  }
   0xb   :  { %273 = vmatpush3.bf16.msra.mxu0 %v317_v5  ;;  %306 = vmatpush3.bf16.msra.mxu1 %v317_v5 }
   0xc   :  { %274 = vmatprep.subr.bf16.mxu0 %v318_v6  ;;  %299 = vmatprep.subr.bf16.mxu1 %v318_v6 }
   0xf   :  { %275 = vmatpush3.bf16.msra.mxu0 %v319_v7  ;;  %307 = vmatpush3.bf16.msra.mxu1 %v319_v7 }
  0x10   :  { %276 = vmatprep.subr.bf16.mxu0 %v320_v8  ;;  %300 = vmatprep.subr.bf16.mxu1 %v320_v8 }
  0x13   :  { %277 = vmatpush3.bf16.msra.mxu0 %v321_v9  ;;  %308 = vmatpush3.bf16.msra.mxu1 %v321_v9 }
  0x14   :  { %278 = vmatprep.subr.bf16.mxu0 %v322_v10  ;;  %301 = vmatprep.subr.bf16.mxu1 %v322_v10 }
  0x17   :  { %279 = vmatpush3.bf16.msra.mxu0 %v323_v13  ;;  %309 = vmatpush3.bf16.msra.mxu1 %v323_v13 }
  0x18   :  { %280 = vmatprep.subr.bf16.mxu0 %v324_v14  ;;  %302 = vmatprep.subr.bf16.mxu1 %v324_v14 }
  0x1b   :  { %281 = vmatpush3.bf16.msra.mxu0 %v325_v15  ;;  %310 = vmatpush3.bf16.msra.mxu1 %v325_v15 }
  0x1c   :  { %282 = vmatprep.subr.bf16.mxu0 %v326_v16  ;;  %303 = vmatprep.subr.bf16.mxu1 %v326_v16 }
  0x1f   :  { %283 = vmatpush3.bf16.msra.mxu0 %v327_v17  ;;  %311 = vmatpush3.bf16.msra.mxu1 %v327_v17 }
  0x22   :  { %209 = vmatmul.mubr.bf16.vlgmr.msra.gmra.mrb[0].mxu0 %v328_v18  ;;  %217 = vmatmul.mubr.bf16.vlgmr.msra.gmra.mrb[0].mxu1 %v331_v19 }
  0xf5   :  { %v284_v20 = vpop.f32.mrb[0].mxu0  ;;  %v290_v21 = vpop.f32.mrb[0].mxu1 }
  0xf6   :  { %v285_v22 = vpop.f32.mrb[1].mxu0  ;;  %v291_v23 = vpop.f32.mrb[1].mxu1 }
  0xf7   :  { %v286_v24 = vadd.f32 %v285_v22, %v284_v20  ;;  %v292_v25 = vadd.f32 %v291_v23, %v290_v21  ;;  %v287_v26 = vpop.f32.mrb[2].mxu0  ;;  %v293_v27 = vpop.f32.mrb[2].mxu1 }
  0xf8   :  { %v288_v28 = vpop.f32.mrb[3].mxu0  ;;  %v294_v29 = vpop.f32.mrb[3].mxu1 }
  0xf9   :  { %240 = vst [vmem:[%s423_s2] sm:$0xff] %v286_v24  ;;  %242 = vst [vmem:[%s423_s2 + $0x10] sm:$0xff] %v292_v25  ;;  %v289_v30 = vadd.f32 %v288_v28, %v287_v26  ;;  %v295_v31 = vadd.f32 %v294_v29, %v293_v27 }
  0xfb   :  { %241 = vst [vmem:[%s423_s2 + $0x8] sm:$0xff] %v289_v30  ;;  %243 = vst [vmem:[%s423_s2 + $0x18] sm:$0xff] %v295_v31 }

// kernel: edge_content_encoder.88
= control target key start
LH: loop header
LB: loop body
LE: loop exit
PB: predicated region body
PF: predicated region fallthrough
CT: control target
= control target key end

     0   :  { %s426_s9 = smov 0   ;;  %s428_s10 = smov 0   ;;  %s473_s0 = inlined_call_operand.vmem [shape: f32[2,16,32], index: 0, kind: input, shape index: {}]   ;;  %s474_s1 = inlined_call_operand.vmem [shape: f32[2,16,32], index: 1, kind: input, shape index: {}]   ;;  %s475_s2 = inlined_call_operand.vmem [shape: f32[2,16,32], index: 2, kind: output, shape index: {}]  }
   0x1   :  { %s430_s11 = smov 0  }
   0x2 LB: > { %s24_s12 = sadd.s32 1, %s405_s10  ;;  %p349_p0 = scmp.ge.s32.totalorder %s409_s11, 1  ;;  %s409_s11 = sphi %s430_s11, %s12_s11   ;;  %s405_s10 = sphi %s428_s10, %s477_s10   ;;  %s401_s9 = sphi %s426_s9, %s476_s9  }
   0x3   : > { %p26_p1 = scmp.ge.s32.totalorder %s24_s12, 2  ;;  %p146_p2 = scmp.lt.s32.totalorder %s409_s11, 3 }
   0x5   : > { %s479_s12 = smov (%p26_p1, %s24_s12), 0  ;;  %p147_p3 = pnand %p349_p0, %p146_p2 }
   0x6   : > { %p182_p4 = scmp.lt.s32.totalorder (!%p147_p3), %s401_s9, 1  ;;  %vm208_vm0 = vcmask (!%p147_p3), 261120  }
   0x7   : > { %150 = sbr.rel (%p147_p3) target bundleno = 74 (0x4a), region = 28 }
   0xe   : > { %s481_s9 = smov (!%p182_p4, %s401_s9), 1 }
   0xf   : > { %s444_s13 = sshll.u32 %s481_s9, 4 }
  0x10   : > { %s189_s16 = scalar_lea.vmem %s473_s0, %s444_s13  ;;  %s197_s19 = scalar_lea.vmem %s474_s1, %s444_s13 }
  0x11   : > { %v206_v0 = vld [vmem:[%s189_s16] sm:$0xff]  ;;  %v207_v1 = vld [vmem:[%s189_s16 + $0x8] sm:$0xff]  ;;  %s205_s22 = scalar_lea.vmem %s475_s2, %s444_s13 }
  0x12   : > { %v209_v2 = vsel %vm208_vm0, %v206_v0, 0.0  ;;  %v210_v3 = vsel %vm208_vm0, %v207_v1, 0.0  ;;  %v238_v28 = vld [vmem:[%s197_s19] sm:$0xff]  ;;  %v239_v29 = vld [vmem:[%s197_s19 + $0x8] sm:$0xff] }
  0x13   : > { %v211_v4 = vadd.f32 %v210_v3, %v209_v2 }
  0x15   : > { %v212_v5 = vrot.slane %v211_v4, 4 }
  0x17   : > { %v213_v6 = vadd.f32 %v212_v5, %v211_v4 }
  0x19   : > { %v214_v7 = vrot.slane %v213_v6, 2 }
  0x1b   : > { %v215_v8 = vadd.f32 %v214_v7, %v213_v6 }
  0x1d   : > { %v216_v9 = vrot.slane %v215_v8, 1 }
  0x1f   : > { %v217_v10 = vadd.f32 %v216_v9, %v215_v8 }
  0x21   : > { %v219_v11 = vmul.f32 0.0625, %v217_v10 }
  0x23   : > { %v220_v12 = vsub.f32 %v206_v0, %v219_v11  ;;  %v221_v13 = vsub.f32 %v207_v1, %v219_v11 }
  0x25   : > { %v222_v14 = vmul.f32 %v220_v12, %v220_v12  ;;  %v223_v15 = vmul.f32 %v221_v13, %v221_v13 }
  0x27   : > { %v224_v16 = vsel %vm208_vm0, %v222_v14, 0.0  ;;  %v225_v17 = vsel %vm208_vm0, %v223_v15, 0.0 }
  0x28   : > { %v226_v18 = vadd.f32 %v225_v17, %v224_v16 }
  0x2a   : > { %v227_v19 = vrot.slane %v226_v18, 4 }
  0x2c   : > { %v228_v20 = vadd.f32 %v227_v19, %v226_v18 }
  0x2e   : > { %v229_v21 = vrot.slane %v228_v20, 2 }
  0x30   : > { %v230_v22 = vadd.f32 %v229_v21, %v228_v20 }
  0x32   : > { %v231_v23 = vrot.slane %v230_v22, 1 }
  0x34   : > { %v232_v24 = vadd.f32 %v231_v23, %v230_v22 }
  0x36   : > { %v233_v25 = vmul.f32 0.0625, %v232_v24 }
  0x38   : > { %v234_v26 = vadd.f32 1e-05, %v233_v25 }
  0x3a   : > { %385 = vrsqrt.f32 %v234_v26 }
  0x44   : > { %v386_v27 = vpop.eup %385 }
  0x45   : > { %v236_v30 = vmul.f32 %v386_v27, %v220_v12  ;;  %v237_v31 = vmul.f32 %v386_v27, %v221_v13 }
  0x47   : > { %v240_v32 = vadd.f32 %v238_v28, %v236_v30  ;;  %v241_v33 = vadd.f32 %v239_v29, %v237_v31 }
  0x49   : > { %242 = vst.msk [vmem:[%s205_s22] sm:$0xff] %vm208_vm0, %v240_v32  ;;  %243 = vst.msk [vmem:[%s205_s22 + $0x8] sm:$0xff] %vm208_vm0, %v241_v33 }
  0x4a PF: > { %s12_s11 = sadd.s32 1, %s409_s11   ;;  %s476_s9 = smov %s405_s10 }
  0x4b   : > { %p9_p5 = scmp.ge.s32.totalorder %s12_s11, 4   ;;  %s477_s10 = smov %s479_s12 }
  0x4d   :  { %11 = sbr.rel (!%p9_p5) target bundleno = 2 (0x2), region = 61 }

// kernel: edge_content_encoder.85
= control target key start
LH: loop header
LB: loop body
LE: loop exit
PB: predicated region body
PF: predicated region fallthrough
CT: control target
= control target key end

     0   :  { %s614_s1 = inlined_call_operand.vmem [shape: bf16[384,128], index: 1, kind: input, shape index: {}]   ;;  %s615_s0 = inlined_call_operand.vmem [shape: bf16[32,384], index: 0, kind: input, shape index: {}]   ;;  %s616_s2 = inlined_call_operand.vmem [shape: f32[32,128], index: 2, kind: output, shape index: {}]  }
   0x1   :  { %v465_v0 = vld [vmem:[%s614_s1 + $0x40] sm:$0xff]   ;;  %v468_v3 = vld [vmem:[%s614_s1 + $0x48] sm:$0xff]   ;;  %v471_v6 = vld [vmem:[%s614_s1 + $0x50] sm:$0xff]  }
   0x2   :  { %v466_v1 = vld [vmem:[%s614_s1] sm:$0xff]   ;;  %407 = vmatprep.subr.bf16.mxu0 %v465_v0  ;;  %v469_v4 = vld [vmem:[%s614_s1 + $0x8] sm:$0xff]   ;;  %v472_v7 = vld [vmem:[%s614_s1 + $0x10] sm:$0xff]  }
   0x3   :  { %v467_v2 = vld [vmem:[%s614_s1 + $0x80] sm:$0xff]   ;;  %408 = vmatpush3.bf16.msra.mxu0 %v466_v1  ;;  %v470_v5 = vld [vmem:[%s614_s1 + $0x88] sm:$0xff]   ;;  %v473_v8 = vld [vmem:[%s614_s1 + $0x90] sm:$0xff]  }
   0x4   :  { %445 = vmatprep.subr.bf16.mxu1 %v467_v2  ;;  %409 = vmatprep.subr.bf16.mxu0 %v468_v3  ;;  %v474_v9 = vld [vmem:[%s614_s1 + $0x58] sm:$0xff]   ;;  %v477_v12 = vld [vmem:[%s614_s1 + $0x60] sm:$0xff]   ;;  %v480_v15 = vld [vmem:[%s614_s1 + $0x68] sm:$0xff]  }
   0x5   :  { %446 = vmatpush3.bf16.msra.mxu1 %v467_v2  ;;  %v475_v10 = vld [vmem:[%s614_s1 + $0x18] sm:$0xff]   ;;  %v479_v13 = vld [vmem:[%s614_s1 + $0xa0] sm:$0xff]   ;;  %v482_v16 = vld [vmem:[%s614_s1 + $0xa8] sm:$0xff]  }
   0x6   :  { %447 = vmatprep.subr.bf16.mxu1 %v470_v5  ;;  %v476_v11 = vld [vmem:[%s614_s1 + $0x98] sm:$0xff]   ;;  %v478_v14 = vld [vmem:[%s614_s1 + $0x20] sm:$0xff]   ;;  %v481_v17 = vld [vmem:[%s614_s1 + $0x28] sm:$0xff]  }
   0x7   :  { %410 = vmatpush3.bf16.msra.mxu0 %v469_v4  ;;  %v483_v18 = vld [vmem:[%s614_s1 + $0x70] sm:$0xff]   ;;  %v486_v21 = vld [vmem:[%s614_s1 + $0x78] sm:$0xff]   ;;  %v489_v26 = vld [vmem:[%s615_s0] ss:$12 sps:$4 sm:$0xff]  }
   0x8   :  { %411 = vmatprep.subr.bf16.mxu0 %v471_v6  ;;  %v484_v19 = vld [vmem:[%s614_s1 + $0x30] sm:$0xff]   ;;  %v488_v22 = vld [vmem:[%s614_s1 + $0xb8] sm:$0xff]   ;;  %v493_v28 = vld [vmem:[%s615_s0 + $0x20] ss:$12 sps:$4 sm:$0xff]  }
   0x9   :  { %448 = vmatpush3.bf16.msra.mxu1 %v470_v5  ;;  %v485_v20 = vld [vmem:[%s614_s1 + $0xb0] sm:$0xff]   ;;  %v487_v25 = vld [vmem:[%s614_s1 + $0x38] sm:$0xff]  }
   0xa   :  { %449 = vmatprep.subr.bf16.mxu1 %v473_v8  ;;  %v491_v23 = vld [vmem:[%s615_s0 + $0x4] ss:$12 sps:$4 sm:$0xff]   ;;  %v492_v24 = vld [vmem:[%s615_s0 + $0x8] ss:$12 sps:$4 sm:$0xff]  }
   0xb   :  { %412 = vmatpush3.bf16.msra.mxu0 %v472_v7  ;;  %288 = vmatprep.mubr.bf16.mxu0 %v491_v23  ;;  %v494_v27 = vld [vmem:[%s615_s0 + $0x1c] ss:$12 sps:$4 sm:$0xff]   ;;  %v496_v29 = vld [vmem:[%s615_s0 + $0x18] ss:$12 sps:$4 sm:$0xff]  }
   0xc   :  { %413 = vmatprep.subr.bf16.mxu0 %v474_v9  ;;  %461 = vmatprep.mubr.bf16.mxu1 %v492_v24 }
   0xd   :  { %450 = vmatpush3.bf16.msra.mxu1 %v473_v8 }
   0xe   :  { %451 = vmatprep.subr.bf16.mxu1 %v476_v11 }
   0xf   :  { %414 = vmatpush3.bf16.msra.mxu0 %v475_v10 }
  0x10   :  { %415 = vmatprep.subr.bf16.mxu0 %v477_v12 }
  0x11   :  { %452 = vmatpush3.bf16.msra.mxu1 %v476_v11 }
  0x12   :  { %453 = vmatprep.subr.bf16.mxu1 %v479_v13 }
  0x13   :  { %416 = vmatpush3.bf16.msra.mxu0 %v478_v14 }
  0x14   :  { %417 = vmatprep.subr.bf16.mxu0 %v480_v15 }
  0x15   :  { %454 = vmatpush3.bf16.msra.mxu1 %v479_v13 }
  0x16   :  { %455 = vmatprep.subr.bf16.mxu1 %v482_v16 }
  0x17   :  { %418 = vmatpush3.bf16.msra.mxu0 %v481_v17 }
  0x18   :  { %419 = vmatprep.subr.bf16.mxu0 %v483_v18 }
  0x19   :  { %456 = vmatpush3.bf16.msra.mxu1 %v482_v16 }
  0x1a   :  { %457 = vmatprep.subr.bf16.mxu1 %v485_v20 }
  0x1b   :  { %420 = vmatpush3.bf16.msra.mxu0 %v484_v19 }
  0x1c   :  { %421 = vmatprep.subr.bf16.mxu0 %v486_v21 }
  0x1d   :  { %458 = vmatpush3.bf16.msra.mxu1 %v485_v20 }
  0x1e   :  { %459 = vmatprep.subr.bf16.mxu1 %v488_v22 }
  0x1f   :  { %422 = vmatpush3.bf16.msra.mxu0 %v487_v25 }
  0x21   :  { %460 = vmatpush3.bf16.msra.mxu1 %v488_v22 }
  0x22   :  { %289 = vmatmul.mubr.bf16.vlgmr.msra.gmra.mrb[0].mxu0 %v489_v26 }
  0x23   :  { %296 = vmatprep.mubr.bf16.mxu0 %v494_v27 }
  0x24   :  { %462 = vmatmul.mubr.bf16.vlgmr.msra.gmra.mrb[0].mxu1 %v493_v28 }
  0x2a   :  { %297 = vmatmul.mubr.bf16.gmra.mrb[4].mxu0 %v496_v29 }
  0xf5   :  { %v423_v30 = vpop.f32.mrb[0].mxu0 }
  0xf6   :  { %v424_v31 = vpop.f32.mrb[1].mxu0 }
  0xf7   :  { %v425_v32 = vadd.f32 %v424_v31, %v423_v30  ;;  %v426_v33 = vpop.f32.mrb[2].mxu0  ;;  %v463_v34 = vpop.f32.mrb[0].mxu1 }
  0xf8   :  { %v427_v35 = vpop.f32.mrb[3].mxu0  ;;  %v339_v36 = vpop.f32.mrb[1].mxu1 }
  0xf9   :  { %v428_v37 = vadd.f32 %v427_v35, %v426_v33  ;;  %v340_v38 = vadd.f32 %v425_v32, %v339_v36  ;;  %v464_v39 = vpop.f32.mrb[2].mxu1 }
  0xfa   :  { %v342_v40 = vpop.f32.mrb[3].mxu1 }
  0xfb   :  { %369 = vst [vmem:[%s616_s2] sm:$0xff] %v340_v38  ;;  %v343_v41 = vadd.f32 %v428_v37, %v342_v40 }
  0xfd   :  { %370 = vst [vmem:[%s616_s2 + $0x8] sm:$0xff] %v343_v41  ;;  %v429_v42 = vpop.f32.mrb[4].mxu0 }
  0xfe   :  { %v430_v43 = vpop.f32.mrb[5].mxu0 }
  0xff   :  { %v431_v44 = vadd.f32 %v430_v43, %v429_v42  ;;  %v432_v45 = vpop.f32.mrb[6].mxu0 }
 0x100   :  { %v433_v46 = vpop.f32.mrb[7].mxu0 }
 0x101   :  { %v348_v47 = vadd.f32 %v463_v34, %v431_v44  ;;  %v434_v48 = vadd.f32 %v433_v46, %v432_v45 }
 0x103   :  { %371 = vst [vmem:[%s616_s2 + $0x10] sm:$0xff] %v348_v47  ;;  %v351_v49 = vadd.f32 %v464_v39, %v434_v48 }
 0x105   :  { %372 = vst [vmem:[%s616_s2 + $0x18] sm:$0xff] %v351_v49 }

// kernel: edge_content_encoder.90
= control target key start
LH: loop header
LB: loop body
LE: loop exit
PB: predicated region body
PF: predicated region fallthrough
CT: control target
= control target key end

     0   :  { %s312_s6 = smov 0   ;;  %s314_s7 = smov 0   ;;  %s348_s0 = inlined_call_operand.vmem [shape: f32[2,4,64], index: 0, kind: input, shape index: {}]   ;;  %s349_s1 = inlined_call_operand.vmem [shape: f32[2,4,64], index: 1, kind: output, shape index: {}]  }
   0x1   :  { %s316_s8 = smov 0  }
   0x2 LB: > { %s23_s9 = sadd.s32 1, %s296_s7  ;;  %p247_p0 = scmp.ge.s32.totalorder %s300_s8, 1  ;;  %s300_s8 = sphi %s316_s8, %s11_s8   ;;  %s296_s7 = sphi %s314_s7, %s351_s7   ;;  %s292_s6 = sphi %s312_s6, %s350_s6  }
   0x3   : > { %p25_p1 = scmp.ge.s32.totalorder %s23_s9, 2  ;;  %p105_p2 = scmp.lt.s32.totalorder %s300_s8, 3 }
   0x5   : > { %s353_s9 = smov (%p25_p1, %s23_s9), 0  ;;  %p106_p3 = pnand %p247_p0, %p105_p2 }
   0x6   : > { %p129_p4 = scmp.lt.s32.totalorder (!%p106_p3), %s292_s6, 1  ;;  %vm144_vm0 = vcmask (!%p106_p3), 519168  }
   0x7   : > { %109 = sbr.rel (%p106_p3) target bundleno = 70 (0x46), region = 24 }
   0xe   : > { %s355_s6 = smov (!%p129_p4, %s292_s6), 1 }
   0xf   : > { %s248_s10 = sshll.u32 %s355_s6, 2 }
  0x10   : > { %s135_s13 = scalar_lea.vmem %s348_s0, %s248_s10  ;;  %s142_s16 = scalar_lea.vmem %s349_s1, %s248_s10 }
  0x11   : > { %v143_v0 = vld [vmem:[%s135_s13] sm:$0xf] }
  0x12   : > { %v145_v1 = vsel %vm144_vm0, %v143_v0, 0.0 }
  0x13   : > { %v146_v2 = vrot.slane %v145_v1, 4 }
  0x15   : > { %v147_v3 = vadd.f32 %v146_v2, %v145_v1 }
  0x17   : > { %v148_v4 = vrot.slane %v147_v3, 2 }
  0x19   : > { %v149_v5 = vadd.f32 %v148_v4, %v147_v3 }
  0x1b   : > { %v150_v6 = vrot.slane %v149_v5, 1 }
  0x1d   : > { %v151_v7 = vadd.f32 %v150_v6, %v149_v5 }
  0x1f   : > { %v153_v8 = vmul.f32 0.25, %v151_v7 }
  0x21   : > { %v154_v9 = vsub.f32 %v143_v0, %v153_v8 }
  0x23   : > { %v155_v10 = vmul.f32 %v154_v9, %v154_v9 }
  0x25   : > { %v156_v11 = vsel %vm144_vm0, %v155_v10, 0.0 }
  0x26   : > { %v157_v12 = vrot.slane %v156_v11, 4 }
  0x28   : > { %v158_v13 = vadd.f32 %v157_v12, %v156_v11 }
  0x2a   : > { %v159_v14 = vrot.slane %v158_v13, 2 }
  0x2c   : > { %v160_v15 = vadd.f32 %v159_v14, %v158_v13 }
  0x2e   : > { %v161_v16 = vrot.slane %v160_v15, 1 }
  0x30   : > { %v162_v17 = vadd.f32 %v161_v16, %v160_v15 }
  0x32   : > { %v163_v18 = vmul.f32 0.25, %v162_v17 }
  0x34   : > { %v164_v19 = vadd.f32 1e-05, %v163_v18 }
  0x36   : > { %276 = vrsqrt.f32 %v164_v19 }
  0x40   : > { %v277_v20 = vpop.eup %276 }
  0x41   : > { %v166_v21 = vmul.f32 %v277_v20, %v154_v9 }
  0x43   : > { %v167_v22 = vmax.f32 %v166_v21, 0.0 }
  0x45   : > { %168 = vst.msk [vmem:[%s142_s16] sm:$0xf] %vm144_vm0, %v167_v22 }
  0x46 PF: > { %s11_s8 = sadd.s32 1, %s300_s8   ;;  %s350_s6 = smov %s296_s7 }
  0x47   : > { %p8_p5 = scmp.ge.s32.totalorder %s11_s8, 4   ;;  %s351_s7 = smov %s353_s9 }
  0x49   :  { %10 = sbr.rel (!%p8_p5) target bundleno = 2 (0x2), region = 54 }

// kernel: edge_content_encoder.89
= control target key start
LH: loop header
LB: loop body
LE: loop exit
PB: predicated region body
PF: predicated region fallthrough
CT: control target
= control target key end

     0   :  { %s644_s1 = inlined_call_operand.vmem [shape: bf16[512,128], index: 1, kind: input, shape index: {}]   ;;  %s645_s0 = inlined_call_operand.vmem [shape: bf16[16,512], index: 0, kind: input, shape index: {}]   ;;  %s646_s2 = inlined_call_operand.vmem [shape: f32[16,128], index: 2, kind: output, shape index: {}]  }
   0x1   :  { %v477_v0 = vld [vmem:[%s644_s1 + $0x40] sm:$0xff]   ;;  %v481_v4 = vld [vmem:[%s644_s1 + $0x48] sm:$0xff]   ;;  %v485_v8 = vld [vmem:[%s644_s1 + $0x50] sm:$0xff]  }
   0x2   :  { %v478_v1 = vld [vmem:[%s644_s1 + $0xc0] sm:$0xff]   ;;  %433 = vmatprep.subr.bf16.mxu0 %v477_v0  ;;  %v482_v5 = vld [vmem:[%s644_s1 + $0xc8] sm:$0xff]   ;;  %v486_v9 = vld [vmem:[%s644_s1 + $0xd0] sm:$0xff]  }
   0x3   :  { %v479_v2 = vld [vmem:[%s644_s1] sm:$0xff]   ;;  %455 = vmatprep.subr.bf16.mxu1 %v478_v1  ;;  %v483_v6 = vld [vmem:[%s644_s1 + $0x8] sm:$0xff]   ;;  %v487_v10 = vld [vmem:[%s644_s1 + $0x10] sm:$0xff]  }
   0x4   :  { %v480_v3 = vld [vmem:[%s644_s1 + $0x80] sm:$0xff]   ;;  %434 = vmatpush3.bf16.msra.mxu0 %v479_v2  ;;  %v484_v7 = vld [vmem:[%s644_s1 + $0x88] sm:$0xff]   ;;  %v488_v11 = vld [vmem:[%s644_s1 + $0x90] sm:$0xff]  }
   0x5   :  { %456 = vmatpush3.bf16.msra.mxu1 %v480_v3  ;;  %435 = vmatprep.subr.bf16.mxu0 %v481_v4  ;;  %v489_v12 = vld [vmem:[%s644_s1 + $0x58] sm:$0xff]   ;;  %v493_v16 = vld [vmem:[%s644_s1 + $0x60] sm:$0xff]   ;;  %v497_v20 = vld [vmem:[%s644_s1 + $0x68] sm:$0xff]  }
   0x6   :  { %457 = vmatprep.subr.bf16.mxu1 %v482_v5  ;;  %v490_v13 = vld [vmem:[%s644_s1 + $0xd8] sm:$0xff]   ;;  %v494_v17 = vld [vmem:[%s644_s1 + $0xe0] sm:$0xff]   ;;  %v498_v21 = vld [vmem:[%s644_s1 + $0xe8] sm:$0xff]  }
   0x7   :  { %v491_v14 = vld [vmem:[%s644_s1 + $0x18] sm:$0xff]   ;;  %v495_v18 = vld [vmem:[%s644_s1 + $0x20] sm:$0xff]   ;;  %v499_v22 = vld [vmem:[%s644_s1 + $0x28] sm:$0xff]  }
   0x8   :  { %436 = vmatpush3.bf16.msra.mxu0 %v483_v6  ;;  %v492_v15 = vld [vmem:[%s644_s1 + $0x98] sm:$0xff]   ;;  %v496_v19 = vld [vmem:[%s644_s1 + $0xa0] sm:$0xff]   ;;  %v500_v23 = vld [vmem:[%s644_s1 + $0xa8] sm:$0xff]  }
   0x9   :  { %458 = vmatpush3.bf16.msra.mxu1 %v484_v7  ;;  %437 = vmatprep.subr.bf16.mxu0 %v485_v8  ;;  %v501_v24 = vld [vmem:[%s644_s1 + $0x70] sm:$0xff]   ;;  %v505_v28 = vld [vmem:[%s644_s1 + $0x78] sm:$0xff]  }
   0xa   :  { %459 = vmatprep.subr.bf16.mxu1 %v486_v9  ;;  %v502_v25 = vld [vmem:[%s644_s1 + $0xf0] sm:$0xff]   ;;  %v506_v29 = vld [vmem:[%s644_s1 + $0xf8] sm:$0xff]  }
   0xb   :  { %v503_v26 = vld [vmem:[%s644_s1 + $0x30] sm:$0xff]   ;;  %v507_v30 = vld [vmem:[%s644_s1 + $0x38] sm:$0xff]  }
   0xc   :  { %438 = vmatpush3.bf16.msra.mxu0 %v487_v10  ;;  %v504_v27 = vld [vmem:[%s644_s1 + $0xb0] sm:$0xff]   ;;  %v508_v31 = vld [vmem:[%s644_s1 + $0xb8] sm:$0xff]  }
   0xd   :  { %460 = vmatpush3.bf16.msra.mxu1 %v488_v11  ;;  %439 = vmatprep.subr.bf16.mxu0 %v489_v12  ;;  %v509_v32 = vld [vmem:[%s645_s0] ss:$16 sps:$4 sm:$0xff]   ;;  %v511_v33 = vld [vmem:[%s645_s0 + $0x4] ss:$16 sps:$4 sm:$0xff]   ;;  %v512_v34 = vld [vmem:[%s645_s0 + $0x8] ss:$16 sps:$4 sm:$0xff]  }
   0xe   :  { %461 = vmatprep.subr.bf16.mxu1 %v490_v13  ;;  %v514_v35 = vld [vmem:[%s645_s0 + $0xc] ss:$16 sps:$4 sm:$0xff]   ;;  %332 = vmatprep.mubr.bf16.mxu0 %v511_v33 }
   0xf   :  { %373 = vmatprep.mubr.bf16.mxu1 %v514_v35 }
  0x10   :  { %440 = vmatpush3.bf16.msra.mxu0 %v491_v14 }
  0x11   :  { %462 = vmatpush3.bf16.msra.mxu1 %v492_v15  ;;  %441 = vmatprep.subr.bf16.mxu0 %v493_v16 }
  0x12   :  { %463 = vmatprep.subr.bf16.mxu1 %v494_v17 }
  0x14   :  { %442 = vmatpush3.bf16.msra.mxu0 %v495_v18 }
  0x15   :  { %464 = vmatpush3.bf16.msra.mxu1 %v496_v19  ;;  %443 = vmatprep.subr.bf16.mxu0 %v497_v20 }
  0x16   :  { %465 = vmatprep.subr.bf16.mxu1 %v498_v21 }
  0x18   :  { %444 = vmatpush3.bf16.msra.mxu0 %v499_v22 }
  0x19   :  { %466 = vmatpush3.bf16.msra.mxu1 %v500_v23  ;;  %445 = vmatprep.subr.bf16.mxu0 %v501_v24 }
  0x1a   :  { %467 = vmatprep.subr.bf16.mxu1 %v502_v25 }
  0x1c   :  { %446 = vmatpush3.bf16.msra.mxu0 %v503_v26 }
  0x1d   :  { %468 = vmatpush3.bf16.msra.mxu1 %v504_v27  ;;  %447 = vmatprep.subr.bf16.mxu0 %v505_v28 }
  0x1e   :  { %469 = vmatprep.subr.bf16.mxu1 %v506_v29 }
  0x20   :  { %448 = vmatpush3.bf16.msra.mxu0 %v507_v30 }
  0x21   :  { %470 = vmatpush3.bf16.msra.mxu1 %v508_v31 }
  0x23   :  { %333 = vmatmul.mubr.bf16.vlgmr.msra.gmra.mrb[0].mxu0 %v509_v32 }
  0x24   :  { %374 = vmatmul.mubr.bf16.vlgmr.msra.gmra.mrb[0].mxu1 %v512_v34 }
  0xf6   :  { %v449_v36 = vpop.f32.mrb[0].mxu0 }
  0xf7   :  { %v471_v37 = vpop.f32.mrb[0].mxu1  ;;  %v450_v38 = vpop.f32.mrb[1].mxu0 }
  0xf8   :  { %v451_v39 = vadd.f32 %v450_v38, %v449_v36  ;;  %v472_v40 = vpop.f32.mrb[1].mxu1  ;;  %v452_v41 = vpop.f32.mrb[2].mxu0 }
  0xf9   :  { %v473_v42 = vadd.f32 %v472_v40, %v471_v37  ;;  %v474_v43 = vpop.f32.mrb[2].mxu1  ;;  %v453_v44 = vpop.f32.mrb[3].mxu0 }
  0xfa   :  { %v454_v45 = vadd.f32 %v453_v44, %v452_v41  ;;  %v475_v46 = vpop.f32.mrb[3].mxu1 }
  0xfb   :  { %v376_v47 = vadd.f32 %v473_v42, %v451_v39  ;;  %v476_v48 = vadd.f32 %v475_v46, %v474_v43 }
  0xfd   :  { %391 = vst [vmem:[%s646_s2] sm:$0xff] %v376_v47  ;;  %v379_v49 = vadd.f32 %v476_v48, %v454_v45 }
  0xff   :  { %392 = vst [vmem:[%s646_s2 + $0x8] sm:$0xff] %v379_v49 }

// kernel: edge_content_encoder.94
= control target key start
LH: loop header
LB: loop body
LE: loop exit
PB: predicated region body
PF: predicated region fallthrough
CT: control target
= control target key end

     0   :  { %s389_s9 = smov 0   ;;  %s391_s10 = smov 0   ;;  %s433_s0 = inlined_call_operand.vmem [shape: f32[2,4,64], index: 0, kind: input, shape index: {}]   ;;  %s434_s1 = inlined_call_operand.vmem [shape: f32[2,4,64], index: 1, kind: input, shape index: {}]   ;;  %s435_s2 = inlined_call_operand.vmem [shape: f32[2,4,64], index: 2, kind: output, shape index: {}]  }
   0x1   :  { %s393_s11 = smov 0  }
   0x2 LB: > { %s24_s12 = sadd.s32 1, %s368_s10  ;;  %p318_p0 = scmp.ge.s32.totalorder %s372_s11, 1  ;;  %s372_s11 = sphi %s393_s11, %s12_s11   ;;  %s368_s10 = sphi %s391_s10, %s437_s10   ;;  %s364_s9 = sphi %s389_s9, %s436_s9  }
   0x3   : > { %p26_p1 = scmp.ge.s32.totalorder %s24_s12, 2  ;;  %p144_p2 = scmp.lt.s32.totalorder %s372_s11, 3 }
   0x5   : > { %s439_s12 = smov (%p26_p1, %s24_s12), 0  ;;  %p145_p3 = pnand %p318_p0, %p144_p2 }
   0x6   : > { %p177_p4 = scmp.lt.s32.totalorder (!%p145_p3), %s364_s9, 1  ;;  %vm199_vm0 = vcmask (!%p145_p3), 519168  }
   0x7   : > { %148 = sbr.rel (%p145_p3) target bundleno = 70 (0x46), region = 28 }
   0xe   : > { %s441_s9 = smov (!%p177_p4, %s364_s9), 1 }
   0xf   : > { %s407_s13 = sshll.u32 %s441_s9, 2 }
  0x10   : > { %s183_s16 = scalar_lea.vmem %s433_s0, %s407_s13  ;;  %s190_s19 = scalar_lea.vmem %s434_s1, %s407_s13 }
  0x11   : > { %v198_v0 = vld [vmem:[%s183_s16] sm:$0xf]  ;;  %s197_s22 = scalar_lea.vmem %s435_s2, %s407_s13 }
  0x12   : > { %v200_v1 = vsel %vm199_vm0, %v198_v0, 0.0  ;;  %v222_v21 = vld [vmem:[%s190_s19] sm:$0xf] }
  0x13   : > { %v201_v2 = vrot.slane %v200_v1, 4 }
  0x15   : > { %v202_v3 = vadd.f32 %v201_v2, %v200_v1 }
  0x17   : > { %v203_v4 = vrot.slane %v202_v3, 2 }
  0x19   : > { %v204_v5 = vadd.f32 %v203_v4, %v202_v3 }
  0x1b   : > { %v205_v6 = vrot.slane %v204_v5, 1 }
  0x1d   : > { %v206_v7 = vadd.f32 %v205_v6, %v204_v5 }
  0x1f   : > { %v208_v8 = vmul.f32 0.25, %v206_v7 }
  0x21   : > { %v209_v9 = vsub.f32 %v198_v0, %v208_v8 }
  0x23   : > { %v210_v10 = vmul.f32 %v209_v9, %v209_v9 }
  0x25   : > { %v211_v11 = vsel %vm199_vm0, %v210_v10, 0.0 }
  0x26   : > { %v212_v12 = vrot.slane %v211_v11, 4 }
  0x28   : > { %v213_v13 = vadd.f32 %v212_v12, %v211_v11 }
  0x2a   : > { %v214_v14 = vrot.slane %v213_v13, 2 }
  0x2c   : > { %v215_v15 = vadd.f32 %v214_v14, %v213_v13 }
  0x2e   : > { %v216_v16 = vrot.slane %v215_v15, 1 }
  0x30   : > { %v217_v17 = vadd.f32 %v216_v16, %v215_v15 }
  0x32   : > { %v218_v18 = vmul.f32 0.25, %v217_v17 }
  0x34   : > { %v219_v19 = vadd.f32 1e-05, %v218_v18 }
  0x36   : > { %348 = vrsqrt.f32 %v219_v19 }
  0x40   : > { %v349_v20 = vpop.eup %348 }
  0x41   : > { %v221_v22 = vmul.f32 %v349_v20, %v209_v9 }
  0x43   : > { %v223_v23 = vadd.f32 %v222_v21, %v221_v22 }
  0x45   : > { %224 = vst.msk [vmem:[%s197_s22] sm:$0xf] %vm199_vm0, %v223_v23 }
  0x46 PF: > { %s12_s11 = sadd.s32 1, %s372_s11   ;;  %s436_s9 = smov %s368_s10 }
  0x47   : > { %p9_p5 = scmp.ge.s32.totalorder %s12_s11, 4   ;;  %s437_s10 = smov %s439_s12 }
  0x49   :  { %11 = sbr.rel (!%p9_p5) target bundleno = 2 (0x2), region = 61 }

// kernel: edge_content_encoder.91
= control target key start
LH: loop header
LB: loop body
LE: loop exit
PB: predicated region body
PF: predicated region fallthrough
CT: control target
= control target key end

     0   :  { %s952_s9 = smov 0   ;;  %s954_s10 = smov 0   ;;  %s1065_s0 = inlined_call_operand.vmem [shape: bf16[16,1024], index: 0, kind: input, shape index: {}]   ;;  %s1066_s1 = inlined_call_operand.vmem [shape: bf16[1024,128], index: 1, kind: input, shape index: {}]   ;;  %s1067_s2 = inlined_call_operand.vmem [shape: f32[16,128], index: 2, kind: output, shape index: {}]  }
   0x1   :  { %s956_s11 = smov 0   ;;  %s958_s12 = smov 0  }
   0x2   :  { %s960_s13 = smov 0  }
   0x3 LB: > { %s24_s14 = sadd.s32 1, %s930_s12  ;;  %p47_p1 = scmp.ne.s32.totalorder %s922_s10, %s918_s9  ;;  %s934_s13 = sphi %s960_s13, %s12_s13   ;;  %s930_s12 = sphi %s958_s12, %s1071_s12   ;;  %s926_s11 = sphi %s956_s11, %s1070_s11   ;;  %s922_s10 = sphi %s954_s10, %s1069_s10   ;;  %s918_s9 = sphi %s952_s9, %s1068_s9  }
   0x4   : > { %p25_p0 = scmp.ge.s32.totalorder %s24_s14, 2  ;;  %p48_p2 = scmp.eq.s32.totalorder %s934_s13, 0 }
   0x5   : > { %s40_s16 = sadd.s32 1, %s922_s10  ;;  %p722_p5 = scmp.ge.s32.totalorder %s934_s13, 2 }
   0x6   : > { %s1073_s14 = smov (%p25_p0, %s24_s14), 0  ;;  %p49_p3 = por %p48_p2, %p47_p1 }
   0x7   : > { %s36_s15 = ssub.s32 %s930_s12, %s1073_s14  ;;  %129 = sbr.rel (%p722_p5) target bundleno = 21 (0x15), region = 16 }
   0x8   : > { %p38_p4 = scmp.eq.s32.totalorder %s36_s15, 0 }
   0xa   : > { %s987_s17 = scalar_select %p38_p4, %s922_s10, %s40_s16  }
   0xe   : > { %132 = sbr.rel (!%p49_p3) target bundleno = 21 (0x15), region = 20  ;;  %s134_s18 = sand.u32 (%p49_p3), 1, %s922_s10  }
   0xf   : > { %s772_s19 = sshll.u32 (%p49_p3), %s930_s12, 4  ;;  %s723_s20 = sshll.u32 (%p49_p3), %s134_s18, 5 }
  0x10   : > { %s142_s23 = scalar_lea.vmem (%p49_p3), %s1065_s0, %s772_s19  ;;  %s136_s24 = scalar_lea.vmem (%p49_p3), [#allocation3], %s723_s20 }
  0x11   : > { %v155_v0 = vld [vmem:[%s142_s23] sm:$0xff] (%p49_p3)  ;;  %v157_v1 = vld [vmem:[%s142_s23 + $0x8] sm:$0xff] (%p49_p3) }
  0x12   : > { %v159_v2 = vld [vmem:[%s142_s23 + $0x20] sm:$0xff] (%p49_p3)  ;;  %156 = vst [vmem:[%s136_s24] sm:$0xff] (%p49_p3), %v155_v0  ;;  %158 = vst [vmem:[%s136_s24 + $0x8] sm:$0xff] (%p49_p3), %v157_v1  ;;  %v161_v3 = vld [vmem:[%s142_s23 + $0x28] sm:$0xff] (%p49_p3) }
  0x13   : > { %160 = vst [vmem:[%s136_s24 + $0x10] sm:$0xff] (%p49_p3), %v159_v2  ;;  %162 = vst [vmem:[%s136_s24 + $0x18] sm:$0xff] (%p49_p3), %v161_v3 }
  0x15 PF: > { %p726_p6 = scmp.ge.s32.totalorder %s934_s13, 1  ;;  %p179_p7 = scmp.lt.s32.totalorder %s934_s13, 3 }
  0x17   : > { %p180_p8 = pnand %p726_p6, %p179_p7 }
  0x18   : > { %s186_s25 = sand.u32 (!%p180_p8), 1, %s918_s9   ;;  %s728_s26 = sshll.u32 (!%p180_p8), %s926_s11, 6 }
  0x19   : > { %183 = sbr.rel (%p180_p8) target bundleno = 304 (0x130), region = 47  ;;  %s727_s27 = sshll.u32 (!%p180_p8), %s186_s25, 5 }
  0x1a   : > { %p221_p9 = scmp.lt.s32.totalorder (!%p180_p8), %s728_s26, 127  ;;  %s1004_s4 = scalar_lea.vmem (!%p180_p8), [#allocation3], %s727_s27 }
  0x1b   : > { %p730_p10 = scmp.ne.s32.totalorder (!%p180_p8), %s926_s11, 0 }
  0x20   : > { %s1075_s26 = smov (!%p221_p9, %s728_s26), 127  ;;  %242 = sbr.rel (%p730_p10) target bundleno = 39 (0x27), region = 55 }
  0x21   : > { %s729_s28 = sshll.u32 %s1075_s26, 2  ;;  %v936_v4 = vmov (!%p730_p10), 0.0  }
  0x22   : > { %s1002_s3 = scalar_lea.vmem %s1066_s1, %s729_s28  ;;  %243 = vst [vmem:[#allocation2] sm:$0xff] (!%p730_p10), %v936_v4  ;;  %244 = vst [vmem:[#allocation2 + $0x8] sm:$0xff] (!%p730_p10), %v936_v4 }
  0x27 PF: > { %v858_v5 = vld [vmem:[%s1002_s3 + $0x40] sm:$0xff]   ;;  %v862_v9 = vld [vmem:[%s1002_s3 + $0x48] sm:$0xff]   ;;  %v866_v13 = vld [vmem:[%s1002_s3 + $0x50] sm:$0xff]   ;;  %p767_p11 = scmp.ne.s32.totalorder %s926_s11, 1 }
  0x28   : > { %v859_v6 = vld [vmem:[%s1002_s3 + $0xc0] sm:$0xff]   ;;  %773 = vmatprep.subr.bf16.mxu0 %v858_v5  ;;  %v863_v10 = vld [vmem:[%s1002_s3 + $0xc8] sm:$0xff]   ;;  %v867_v14 = vld [vmem:[%s1002_s3 + $0xd0] sm:$0xff]  }
  0x29   : > { %v860_v7 = vld [vmem:[%s1002_s3] sm:$0xff]   ;;  %795 = vmatprep.subr.bf16.mxu1 %v859_v6  ;;  %v864_v11 = vld [vmem:[%s1002_s3 + $0x8] sm:$0xff]   ;;  %v868_v15 = vld [vmem:[%s1002_s3 + $0x10] sm:$0xff]  }
  0x2a   : > { %v861_v8 = vld [vmem:[%s1002_s3 + $0x80] sm:$0xff]   ;;  %774 = vmatpush3.bf16.msra.mxu0 %v860_v7  ;;  %v865_v12 = vld [vmem:[%s1002_s3 + $0x88] sm:$0xff]   ;;  %v869_v16 = vld [vmem:[%s1002_s3 + $0x90] sm:$0xff]  }
  0x2b   : > { %796 = vmatpush3.bf16.msra.mxu1 %v861_v8  ;;  %775 = vmatprep.subr.bf16.mxu0 %v862_v9  ;;  %v870_v17 = vld [vmem:[%s1002_s3 + $0x58] sm:$0xff]   ;;  %v874_v21 = vld [vmem:[%s1002_s3 + $0x60] sm:$0xff]   ;;  %v878_v25 = vld [vmem:[%s1002_s3 + $0x68] sm:$0xff]  }
  0x2c   : > { %797 = vmatprep.subr.bf16.mxu1 %v863_v10  ;;  %v871_v18 = vld [vmem:[%s1002_s3 + $0xd8] sm:$0xff]   ;;  %v875_v22 = vld [vmem:[%s1002_s3 + $0xe0] sm:$0xff]   ;;  %v879_v26 = vld [vmem:[%s1002_s3 + $0xe8] sm:$0xff]  }
  0x2d   : > { %v872_v19 = vld [vmem:[%s1002_s3 + $0x18] sm:$0xff]   ;;  %v876_v23 = vld [vmem:[%s1002_s3 + $0x20] sm:$0xff]   ;;  %v880_v27 = vld [vmem:[%s1002_s3 + $0x28] sm:$0xff]  }
  0x2e   : > { %776 = vmatpush3.bf16.msra.mxu0 %v864_v11  ;;  %v873_v20 = vld [vmem:[%s1002_s3 + $0x98] sm:$0xff]   ;;  %v877_v24 = vld [vmem:[%s1002_s3 + $0xa0] sm:$0xff]   ;;  %v881_v28 = vld [vmem:[%s1002_s3 + $0xa8] sm:$0xff]  }
  0x2f   : > { %798 = vmatpush3.bf16.msra.mxu1 %v865_v12  ;;  %777 = vmatprep.subr.bf16.mxu0 %v866_v13  ;;  %v882_v29 = vld [vmem:[%s1002_s3 + $0x70] sm:$0xff]   ;;  %v886_v33 = vld [vmem:[%s1002_s3 + $0x78] sm:$0xff]   ;;  %v245_v50 = vld [vmem:[#allocation2] sm:$0xff] }
  0x30   : > { %799 = vmatprep.subr.bf16.mxu1 %v867_v14  ;;  %v883_v30 = vld [vmem:[%s1002_s3 + $0xf0] sm:$0xff]   ;;  %v887_v34 = vld [vmem:[%s1002_s3 + $0xf8] sm:$0xff]   ;;  %v246_v55 = vld [vmem:[#allocation2 + $0x8] sm:$0xff] }
  0x31   : > { %v884_v31 = vld [vmem:[%s1002_s3 + $0x30] sm:$0xff]   ;;  %v888_v35 = vld [vmem:[%s1002_s3 + $0x38] sm:$0xff]  }
  0x32   : > { %778 = vmatpush3.bf16.msra.mxu0 %v868_v15  ;;  %v885_v32 = vld [vmem:[%s1002_s3 + $0xb0] sm:$0xff]   ;;  %v889_v36 = vld [vmem:[%s1002_s3 + $0xb8] sm:$0xff]  }
  0x33   : > { %800 = vmatpush3.bf16.msra.mxu1 %v869_v16  ;;  %779 = vmatprep.subr.bf16.mxu0 %v870_v17  ;;  %v890_v37 = vld [vmem:[%s1004_s4] ss:$16 sps:$4 sm:$0xff]   ;;  %v892_v38 = vld [vmem:[%s1004_s4 + $0x4] ss:$16 sps:$4 sm:$0xff]   ;;  %v893_v39 = vld [vmem:[%s1004_s4 + $0x8] ss:$16 sps:$4 sm:$0xff]  }
  0x34   : > { %801 = vmatprep.subr.bf16.mxu1 %v871_v18  ;;  %v895_v40 = vld [vmem:[%s1004_s4 + $0xc] ss:$16 sps:$4 sm:$0xff]   ;;  %559 = vmatprep.mubr.bf16.mxu0 %v892_v38 }
  0x35   : > { %600 = vmatprep.mubr.bf16.mxu1 %v895_v40 }
  0x36   : > { %780 = vmatpush3.bf16.msra.mxu0 %v872_v19 }
  0x37   : > { %802 = vmatpush3.bf16.msra.mxu1 %v873_v20  ;;  %781 = vmatprep.subr.bf16.mxu0 %v874_v21 }
  0x38   : > { %803 = vmatprep.subr.bf16.mxu1 %v875_v22 }
  0x3a   : > { %782 = vmatpush3.bf16.msra.mxu0 %v876_v23 }
  0x3b   : > { %804 = vmatpush3.bf16.msra.mxu1 %v877_v24  ;;  %783 = vmatprep.subr.bf16.mxu0 %v878_v25 }
  0x3c   : > { %805 = vmatprep.subr.bf16.mxu1 %v879_v26 }
  0x3e   : > { %784 = vmatpush3.bf16.msra.mxu0 %v880_v27 }
  0x3f   : > { %806 = vmatpush3.bf16.msra.mxu1 %v881_v28  ;;  %785 = vmatprep.subr.bf16.mxu0 %v882_v29 }
  0x40   : > { %807 = vmatprep.subr.bf16.mxu1 %v883_v30 }
  0x42   : > { %786 = vmatpush3.bf16.msra.mxu0 %v884_v31 }
  0x43   : > { %808 = vmatpush3.bf16.msra.mxu1 %v885_v32  ;;  %787 = vmatprep.subr.bf16.mxu0 %v886_v33 }
  0x44   : > { %809 = vmatprep.subr.bf16.mxu1 %v887_v34 }
  0x46   : > { %788 = vmatpush3.bf16.msra.mxu0 %v888_v35 }
  0x47   : > { %810 = vmatpush3.bf16.msra.mxu1 %v889_v36 }
  0x49   : > { %560 = vmatmul.mubr.bf16.vlgmr.msra.gmra.mrb[0].mxu0 %v890_v37 }
  0x4a   : > { %601 = vmatmul.mubr.bf16.vlgmr.msra.gmra.mrb[0].mxu1 %v893_v39 }
 0x11c   : > { %v789_v41 = vpop.f32.mrb[0].mxu0 }
 0x11d   : > { %v811_v42 = vpop.f32.mrb[0].mxu1  ;;  %v790_v43 = vpop.f32.mrb[1].mxu0 }
 0x11e   : > { %v791_v44 = vadd.f32 %v790_v43, %v789_v41  ;;  %v812_v45 = vpop.f32.mrb[1].mxu1  ;;  %v792_v46 = vpop.f32.mrb[2].mxu0 }
 0x11f   : > { %v813_v47 = vadd.f32 %v812_v45, %v811_v42  ;;  %v814_v48 = vpop.f32.mrb[2].mxu1  ;;  %v793_v49 = vpop.f32.mrb[3].mxu0 }
 0x120   : > { %v794_v51 = vadd.f32 %v793_v49, %v792_v46  ;;  %v815_v52 = vpop.f32.mrb[3].mxu1 }
 0x121   : > { %v603_v53 = vadd.f32 %v813_v47, %v791_v44  ;;  %v816_v54 = vadd.f32 %v815_v52, %v814_v48  ;;  %616 = sbr.rel (%p767_p11) target bundleno = 304 (0x130), region = 59 }
 0x123   : > { %v609_v56 = vadd.f32 %v603_v53, %v245_v50  ;;  %v606_v57 = vadd.f32 %v816_v54, %v794_v51 }
 0x125   : > { %611 = vst [vmem:[#allocation2] sm:$0xff] %v609_v56  ;;  %v610_v58 = vadd.f32 %v606_v57, %v246_v55 }
 0x127   : > { %612 = vst [vmem:[#allocation2 + $0x8] sm:$0xff] %v610_v58 }
 0x12c   : > { %v617_v59 = vld [vmem:[#allocation2] sm:$0xff] }
 0x12d   : > { %619 = vst [vmem:[%s1067_s2] sm:$0xff] %v617_v59 }
 0x12e   : > { %v618_v60 = vld [vmem:[#allocation2 + $0x8] sm:$0xff] }
 0x12f   : > { %620 = vst [vmem:[%s1067_s2 + $0x8] sm:$0xff] %v618_v60 }
 0x130 PF: > { %s12_s13 = sadd.s32 1, %s934_s13   ;;  %s1068_s9 = smov %s922_s10 }
 0x131   : > { %p9_p12 = scmp.ge.s32.totalorder %s12_s13, 4   ;;  %s1069_s10 = smov %s987_s17 }
 0x132   : > { %s1070_s11 = smov %s930_s12  ;;  %s1071_s12 = smov %s1073_s14 }
 0x133   :  { %11 = sbr.rel (!%p9_p12) target bundleno = 3 (0x3), region = 97 }

// kernel: edge_content_encoder.114
= control target key start
LH: loop header
LB: loop body
LE: loop exit
PB: predicated region body
PF: predicated region fallthrough
CT: control target
= control target key end

     0   :  { %s478_s12 = smov 0   ;;  %s480_s13 = smov 0   ;;  %s526_s0 = inlined_call_operand.vmem [shape: f32[2,4,64], index: 0, kind: input, shape index: {}]   ;;  %s527_s1 = inlined_call_operand.vmem [shape: f32[2,4,64], index: 1, kind: input, shape index: {}]   ;;  %s528_s2 = inlined_call_operand.vmem [shape: f32[2,4,64], index: 2, kind: input, shape index: {}]   ;;  %s529_s3 = inlined_call_operand.vmem [shape: f32[2,4,64], index: 3, kind: output, shape index: {}]  }
   0x1   :  { %s482_s14 = smov 0  }
   0x2 LB: > { %s25_s15 = sadd.s32 1, %s452_s13  ;;  %p396_p0 = scmp.ge.s32.totalorder %s456_s14, 1  ;;  %s456_s14 = sphi %s482_s14, %s13_s14   ;;  %s452_s13 = sphi %s480_s13, %s531_s13   ;;  %s448_s12 = sphi %s478_s12, %s530_s12  }
   0x3   : > { %p27_p1 = scmp.ge.s32.totalorder %s25_s15, 2  ;;  %p183_p2 = scmp.lt.s32.totalorder %s456_s14, 3 }
   0x5   : > { %s533_s15 = smov (%p27_p1, %s25_s15), 0  ;;  %p184_p3 = pnand %p396_p0, %p183_p2 }
   0x6   : > { %p225_p4 = scmp.lt.s32.totalorder (!%p184_p3), %s448_s12, 1  ;;  %vm254_vm0 = vcmask (!%p184_p3), 519168  }
   0x7   : > { %187 = sbr.rel (%p184_p3) target bundleno = 72 (0x48), region = 32 }
   0xe   : > { %s535_s12 = smov (!%p225_p4, %s448_s12), 1 }
   0xf   : > { %s496_s16 = sshll.u32 %s535_s12, 2 }
  0x10   : > { %s231_s19 = scalar_lea.vmem %s526_s0, %s496_s16  ;;  %s245_s22 = scalar_lea.vmem %s528_s2, %s496_s16 }
  0x11   : > { %v253_v0 = vld [vmem:[%s231_s19] sm:$0xf]  ;;  %s238_s25 = scalar_lea.vmem %s527_s1, %s496_s16  ;;  %s252_s28 = scalar_lea.vmem %s529_s3, %s496_s16 }
  0x12   : > { %v255_v1 = vsel %vm254_vm0, %v253_v0, 0.0  ;;  %v279_v9 = vld [vmem:[%s245_s22] sm:$0xf] }
  0x13   : > { %v256_v2 = vrot.slane %v255_v1, 4  ;;  %v401_v12 = vmul.f32 -1.442695, %v279_v9  ;;  %v277_v25 = vld [vmem:[%s238_s25] sm:$0xf] }
  0x15   : > { %v257_v3 = vadd.f32 %v256_v2, %v255_v1  ;;  %428 = vpow2.f32 %v401_v12 }
  0x17   : > { %v258_v4 = vrot.slane %v257_v3, 2 }
  0x19   : > { %v259_v5 = vadd.f32 %v258_v4, %v257_v3 }
  0x1b   : > { %v260_v6 = vrot.slane %v259_v5, 1 }
  0x1d   : > { %v261_v7 = vadd.f32 %v260_v6, %v259_v5 }
  0x1f   : > { %v263_v8 = vmul.f32 0.25, %v261_v7  ;;  %v429_v20 = vpop.eup %428 }
  0x20   : > { %v283_v23 = vadd.f32 1.0, %v429_v20 }
  0x21   : > { %v264_v10 = vsub.f32 %v253_v0, %v263_v8 }
  0x23   : > { %v265_v11 = vmul.f32 %v264_v10, %v264_v10 }
  0x25   : > { %v266_v13 = vsel %vm254_vm0, %v265_v11, 0.0 }
  0x26   : > { %v267_v14 = vrot.slane %v266_v13, 4 }
  0x28   : > { %v268_v15 = vadd.f32 %v267_v14, %v266_v13 }
  0x2a   : > { %v269_v16 = vrot.slane %v268_v15, 2 }
  0x2c   : > { %v270_v17 = vadd.f32 %v269_v16, %v268_v15 }
  0x2e   : > { %v271_v18 = vrot.slane %v270_v17, 1 }
  0x30   : > { %v272_v19 = vadd.f32 %v271_v18, %v270_v17 }
  0x32   : > { %v273_v21 = vmul.f32 0.25, %v272_v19 }
  0x34   : > { %v274_v22 = vadd.f32 1e-05, %v273_v21 }
  0x36   : > { %430 = vrsqrt.f32 %v274_v22 }
  0x37   : > { %432 = vrcp.f32 %v283_v23 }
  0x40   : > { %v431_v24 = vpop.eup %430 }
  0x41   : > { %v276_v26 = vmul.f32 %v431_v24, %v264_v10  ;;  %v433_v27 = vpop.eup %432 }
  0x43   : > { %v278_v28 = vadd.f32 %v277_v25, %v276_v26 }
  0x45   : > { %v286_v29 = vmul.f32 %v433_v27, %v278_v28 }
  0x47   : > { %287 = vst.msk [vmem:[%s252_s28] sm:$0xf] %vm254_vm0, %v286_v29 }
  0x48 PF: > { %s13_s14 = sadd.s32 1, %s456_s14   ;;  %s530_s12 = smov %s452_s13 }
  0x49   : > { %p10_p5 = scmp.ge.s32.totalorder %s13_s14, 4   ;;  %s531_s13 = smov %s533_s15 }
  0x4b   :  { %12 = sbr.rel (!%p10_p5) target bundleno = 2 (0x2), region = 68 }

// kernel: edge_content_encoder.120
= control target key start
LH: loop header
LB: loop body
LE: loop exit
PB: predicated region body
PF: predicated region fallthrough
CT: control target
= control target key end

     0   :  { %s536_s12 = smov 0   ;;  %s538_s13 = smov 0   ;;  %s587_s0 = inlined_call_operand.vmem [shape: f32[2,16,32], index: 0, kind: input, shape index: {}]   ;;  %s588_s1 = inlined_call_operand.vmem [shape: f32[2,16,32], index: 1, kind: input, shape index: {}]   ;;  %s589_s2 = inlined_call_operand.vmem [shape: f32[2,16,32], index: 2, kind: input, shape index: {}]   ;;  %s590_s3 = inlined_call_operand.vmem [shape: f32[2,16,32], index: 3, kind: output, shape index: {}]  }
   0x1   :  { %s540_s14 = smov 0  }
   0x2 LB: > { %s25_s15 = sadd.s32 1, %s510_s13  ;;  %p441_p0 = scmp.ge.s32.totalorder %s514_s14, 1  ;;  %s514_s14 = sphi %s540_s14, %s13_s14   ;;  %s510_s13 = sphi %s538_s13, %s592_s13   ;;  %s506_s12 = sphi %s536_s12, %s591_s12  }
   0x3   : > { %p27_p1 = scmp.ge.s32.totalorder %s25_s15, 2  ;;  %p186_p2 = scmp.lt.s32.totalorder %s514_s14, 3 }
   0x5   : > { %s594_s15 = smov (%p27_p1, %s25_s15), 0  ;;  %p187_p3 = pnand %p441_p0, %p186_p2 }
   0x6   : > { %p232_p4 = scmp.lt.s32.totalorder (!%p187_p3), %s506_s12, 1  ;;  %vm266_vm0 = vcmask (!%p187_p3), 261120  }
   0x7   : > { %190 = sbr.rel (%p187_p3) target bundleno = 76 (0x4c), region = 32 }
   0xe   : > { %s596_s12 = smov (!%p232_p4, %s506_s12), 1 }
   0xf   : > { %s554_s16 = sshll.u32 %s596_s12, 4 }
  0x10   : > { %s239_s19 = scalar_lea.vmem %s587_s0, %s554_s16  ;;  %s255_s22 = scalar_lea.vmem %s589_s2, %s554_s16 }
  0x11   : > { %v264_v0 = vld [vmem:[%s239_s19] sm:$0xff]  ;;  %v265_v1 = vld [vmem:[%s239_s19 + $0x8] sm:$0xff]  ;;  %s247_s25 = scalar_lea.vmem %s588_s1, %s554_s16  ;;  %s263_s28 = scalar_lea.vmem %s590_s3, %s554_s16 }
  0x12   : > { %v267_v2 = vsel %vm266_vm0, %v264_v0, 0.0  ;;  %v268_v3 = vsel %vm266_vm0, %v265_v1, 0.0  ;;  %v300_v14 = vld [vmem:[%s255_s22] sm:$0xff]  ;;  %v301_v15 = vld [vmem:[%s255_s22 + $0x8] sm:$0xff] }
  0x13   : > { %v269_v4 = vadd.f32 %v268_v3, %v267_v2  ;;  %v450_v18 = vmul.f32 -1.442695, %v300_v14  ;;  %v451_v21 = vmul.f32 -1.442695, %v301_v15  ;;  %v296_v36 = vld [vmem:[%s247_s25] sm:$0xff]  ;;  %v297_v37 = vld [vmem:[%s247_s25 + $0x8] sm:$0xff] }
  0x15   : > { %v270_v5 = vrot.slane %v269_v4, 4  ;;  %482 = vpow2.f32 %v450_v18 }
  0x16   : > { %484 = vpow2.f32 %v451_v21 }
  0x17   : > { %v271_v6 = vadd.f32 %v270_v5, %v269_v4 }
  0x19   : > { %v272_v7 = vrot.slane %v271_v6, 2 }
  0x1b   : > { %v273_v8 = vadd.f32 %v272_v7, %v271_v6 }
  0x1d   : > { %v274_v9 = vrot.slane %v273_v8, 1 }
  0x1f   : > { %v275_v10 = vadd.f32 %v274_v9, %v273_v8  ;;  %v483_v28 = vpop.eup %482 }
  0x20   : > { %v485_v30 = vpop.eup %484  ;;  %v308_v32 = vadd.f32 1.0, %v483_v28 }
  0x21   : > { %v277_v11 = vmul.f32 0.0625, %v275_v10  ;;  %v309_v34 = vadd.f32 1.0, %v485_v30 }
  0x23   : > { %v278_v12 = vsub.f32 %v264_v0, %v277_v11  ;;  %v279_v13 = vsub.f32 %v265_v1, %v277_v11 }
  0x25   : > { %v280_v16 = vmul.f32 %v278_v12, %v278_v12  ;;  %v281_v17 = vmul.f32 %v279_v13, %v279_v13 }
  0x27   : > { %v282_v19 = vsel %vm266_vm0, %v280_v16, 0.0  ;;  %v283_v20 = vsel %vm266_vm0, %v281_v17, 0.0 }
  0x28   : > { %v284_v22 = vadd.f32 %v283_v20, %v282_v19 }
  0x2a   : > { %v285_v23 = vrot.slane %v284_v22, 4 }
  0x2c   : > { %v286_v24 = vadd.f32 %v285_v23, %v284_v22 }
  0x2e   : > { %v287_v25 = vrot.slane %v286_v24, 2 }
  0x30   : > { %v288_v26 = vadd.f32 %v287_v25, %v286_v24 }
  0x32   : > { %v289_v27 = vrot.slane %v288_v26, 1 }
  0x34   : > { %v290_v29 = vadd.f32 %v289_v27, %v288_v26 }
  0x36   : > { %v291_v31 = vmul.f32 0.0625, %v290_v29 }
  0x38   : > { %v292_v33 = vadd.f32 1e-05, %v291_v31 }
  0x3a   : > { %486 = vrsqrt.f32 %v292_v33 }
  0x3b   : > { %488 = vrcp.f32 %v308_v32 }
  0x3c   : > { %490 = vrcp.f32 %v309_v34 }
  0x44   : > { %v487_v35 = vpop.eup %486 }
  0x45   : > { %v489_v38 = vpop.eup %488  ;;  %v294_v39 = vmul.f32 %v487_v35, %v278_v12  ;;  %v295_v40 = vmul.f32 %v487_v35, %v279_v13 }
  0x46   : > { %v491_v41 = vpop.eup %490 }
  0x47   : > { %v298_v42 = vadd.f32 %v296_v36, %v294_v39  ;;  %v299_v43 = vadd.f32 %v297_v37, %v295_v40 }
  0x49   : > { %v314_v44 = vmul.f32 %v489_v38, %v298_v42  ;;  %v315_v45 = vmul.f32 %v491_v41, %v299_v43 }
  0x4b   : > { %316 = vst.msk [vmem:[%s263_s28] sm:$0xff] %vm266_vm0, %v314_v44  ;;  %317 = vst.msk [vmem:[%s263_s28 + $0x8] sm:$0xff] %vm266_vm0, %v315_v45 }
  0x4c PF: > { %s13_s14 = sadd.s32 1, %s514_s14   ;;  %s591_s12 = smov %s510_s13 }
  0x4d   : > { %p10_p5 = scmp.ge.s32.totalorder %s13_s14, 4   ;;  %s592_s13 = smov %s594_s15 }
  0x4f   :  { %12 = sbr.rel (!%p10_p5) target bundleno = 2 (0x2), region = 68 }

// kernel: edge_content_encoder.121
= control target key start
LH: loop header
LB: loop body
LE: loop exit
PB: predicated region body
PF: predicated region fallthrough
CT: control target
= control target key end

     0   :  { %s383_s1 = inlined_call_operand.vmem [shape: bf16[128,128], index: 1, kind: input, shape index: {}]   ;;  %s384_s0 = inlined_call_operand.vmem [shape: bf16[64,128], index: 0, kind: input, shape index: {}]   ;;  %s385_s2 = inlined_call_operand.vmem [shape: f32[64,128], index: 2, kind: output, shape index: {}]  }
   0x1   :  { %v296_v0 = vld [vmem:[%s383_s1] sm:$0xff]   ;;  %v297_v1 = vld [vmem:[%s383_s1 + $0x8] sm:$0xff]   ;;  %v298_v2 = vld [vmem:[%s383_s1 + $0x10] sm:$0xff]  }
   0x2   :  { %256 = vmatprep.subr.bf16.mxu0 %v296_v0  ;;  %280 = vmatprep.subr.bf16.mxu1 %v296_v0  ;;  %v299_v3 = vld [vmem:[%s383_s1 + $0x18] sm:$0xff]   ;;  %v304_v4 = vld [vmem:[%s384_s0] sm:$0xff]   ;;  %v305_v5 = vld [vmem:[%s384_s0 + $0x10] sm:$0xff]  }
   0x3   :  { %257 = vmatpush3.bf16.msra.mxu0 %v296_v0  ;;  %288 = vmatpush3.bf16.msra.mxu1 %v296_v0  ;;  %v300_v6 = vld [vmem:[%s383_s1 + $0x20] sm:$0xff]   ;;  %v301_v7 = vld [vmem:[%s383_s1 + $0x28] sm:$0xff]   ;;  %v302_v8 = vld [vmem:[%s383_s1 + $0x30] sm:$0xff]  }
   0x4   :  { %258 = vmatprep.subr.bf16.mxu0 %v297_v1  ;;  %281 = vmatprep.subr.bf16.mxu1 %v297_v1  ;;  %v303_v9 = vld [vmem:[%s383_s1 + $0x38] sm:$0xff]   ;;  %v306_v10 = vld [vmem:[%s384_s0 + $0x8] sm:$0xff]  }
   0x5   :  { %272 = vmatprep.mubr.bf16.mxu0 %v304_v4  ;;  %276 = vmatprep.mubr.bf16.mxu1 %v305_v5  ;;  %v307_v11 = vld [vmem:[%s384_s0 + $0x18] sm:$0xff]  }
   0x7   :  { %259 = vmatpush3.bf16.msra.mxu0 %v297_v1  ;;  %289 = vmatpush3.bf16.msra.mxu1 %v297_v1 }
   0x8   :  { %260 = vmatprep.subr.bf16.mxu0 %v298_v2  ;;  %282 = vmatprep.subr.bf16.mxu1 %v298_v2 }
   0xb   :  { %261 = vmatpush3.bf16.msra.mxu0 %v298_v2  ;;  %290 = vmatpush3.bf16.msra.mxu1 %v298_v2 }
   0xc   :  { %262 = vmatprep.subr.bf16.mxu0 %v299_v3  ;;  %283 = vmatprep.subr.bf16.mxu1 %v299_v3 }
   0xf   :  { %263 = vmatpush3.bf16.msra.mxu0 %v299_v3  ;;  %291 = vmatpush3.bf16.msra.mxu1 %v299_v3 }
  0x10   :  { %264 = vmatprep.subr.bf16.mxu0 %v300_v6  ;;  %284 = vmatprep.subr.bf16.mxu1 %v300_v6 }
  0x13   :  { %265 = vmatpush3.bf16.msra.mxu0 %v300_v6  ;;  %292 = vmatpush3.bf16.msra.mxu1 %v300_v6 }
  0x14   :  { %266 = vmatprep.subr.bf16.mxu0 %v301_v7  ;;  %285 = vmatprep.subr.bf16.mxu1 %v301_v7 }
  0x17   :  { %267 = vmatpush3.bf16.msra.mxu0 %v301_v7  ;;  %293 = vmatpush3.bf16.msra.mxu1 %v301_v7 }
  0x18   :  { %268 = vmatprep.subr.bf16.mxu0 %v302_v8  ;;  %286 = vmatprep.subr.bf16.mxu1 %v302_v8 }
  0x1b   :  { %269 = vmatpush3.bf16.msra.mxu0 %v302_v8  ;;  %294 = vmatpush3.bf16.msra.mxu1 %v302_v8 }
  0x1c   :  { %270 = vmatprep.subr.bf16.mxu0 %v303_v9  ;;  %287 = vmatprep.subr.bf16.mxu1 %v303_v9 }
  0x1f   :  { %271 = vmatpush3.bf16.msra.mxu0 %v303_v9  ;;  %295 = vmatpush3.bf16.msra.mxu1 %v303_v9 }
  0x22   :  { %273 = vmatmul.mubr.bf16.vlgmr.msra.gmra.mrb[0].mxu0 %v306_v10  ;;  %277 = vmatmul.mubr.bf16.vlgmr.msra.gmra.mrb[0].mxu1 %v307_v11 }
  0xf5   :  { %v274_v12 = vpop.f32.mrb[0].mxu0  ;;  %v278_v13 = vpop.f32.mrb[0].mxu1 }
  0xf6   :  { %222 = vst [vmem:[%s385_s2 + $0x10] sm:$0xff] %v274_v12  ;;  %226 = vst [vmem:[%s385_s2 + $0x30] sm:$0xff] %v278_v13  ;;  %v162_v14 = vpop.f32.mrb[1].mxu0  ;;  %v178_v15 = vpop.f32.mrb[1].mxu1 }
  0xf7   :  { %220 = vst [vmem:[%s385_s2] sm:$0xff] %v162_v14  ;;  %224 = vst [vmem:[%s385_s2 + $0x20] sm:$0xff] %v178_v15  ;;  %v275_v16 = vpop.f32.mrb[2].mxu0  ;;  %v279_v17 = vpop.f32.mrb[2].mxu1 }
  0xf8   :  { %223 = vst [vmem:[%s385_s2 + $0x18] sm:$0xff] %v275_v16  ;;  %227 = vst [vmem:[%s385_s2 + $0x38] sm:$0xff] %v279_v17  ;;  %v165_v18 = vpop.f32.mrb[3].mxu0  ;;  %v181_v19 = vpop.f32.mrb[3].mxu1 }
  0xf9   :  { %221 = vst [vmem:[%s385_s2 + $0x8] sm:$0xff] %v165_v18  ;;  %225 = vst [vmem:[%s385_s2 + $0x28] sm:$0xff] %v181_v19 }

// kernel: edge_content_encoder.126
= control target key start
LH: loop header
LB: loop body
LE: loop exit
PB: predicated region body
PF: predicated region fallthrough
CT: control target
= control target key end

     0   :  { %s680_s12 = smov 0   ;;  %s682_s13 = smov 0   ;;  %s799_s0 = inlined_call_operand.vmem [shape: f32[2,64,16], index: 0, kind: input, shape index: {}]   ;;  %s800_s1 = inlined_call_operand.vmem [shape: f32[2,64,16], index: 1, kind: input, shape index: {}]   ;;  %s801_s2 = inlined_call_operand.vmem [shape: f32[2,64,16], index: 2, kind: input, shape index: {}]   ;;  %s802_s3 = inlined_call_operand.vmem [shape: f32[2,64,16], index: 3, kind: output, shape index: {}]  }
   0x1   :  { %s684_s14 = smov 0  }
   0x2 LB: > { %s25_s15 = sadd.s32 1, %s654_s13  ;;  %p555_p0 = scmp.ge.s32.totalorder %s658_s14, 1  ;;  %s658_s14 = sphi %s684_s14, %s13_s14   ;;  %s654_s13 = sphi %s682_s13, %s804_s13   ;;  %s650_s12 = sphi %s680_s12, %s803_s12  }
   0x3   : > { %p27_p1 = scmp.ge.s32.totalorder %s25_s15, 2  ;;  %p186_p2 = scmp.lt.s32.totalorder %s658_s14, 3 }
   0x5   : > { %s806_s15 = smov (%p27_p1, %s25_s15), 0  ;;  %p187_p3 = pnand %p555_p0, %p186_p2 }
   0x6   : > { %p232_p4 = scmp.lt.s32.totalorder (!%p187_p3), %s650_s12, 1  ;;  %vm272_vm0 = vcmask (!%p187_p3), 130048  }
   0x7   : > { %190 = sbr.rel (%p187_p3) target bundleno = 103 (0x67), region = 32 }
   0xe   : > { %s808_s12 = smov (!%p232_p4, %s650_s12), 1 }
   0xf   : > { %s698_s16 = sshll.u32 %s808_s12, 6 }
  0x10   : > { %s239_s19 = scalar_lea.vmem %s799_s0, %s698_s16  ;;  %s736_s22 = scalar_lea.vmem %s801_s2, %s698_s16 }
  0x11   : > { %v264_v0 = vld [vmem:[%s239_s19] sm:$0xff]  ;;  %v265_v1 = vld [vmem:[%s239_s19 + $0x8] sm:$0xff]  ;;  %v266_v2 = vld [vmem:[%s239_s19 + $0x10] sm:$0xff]  ;;  %s247_s25 = scalar_lea.vmem %s800_s1, %s698_s16  ;;  %s263_s28 = scalar_lea.vmem %s802_s3, %s698_s16 }
  0x12   : > { %v267_v3 = vld [vmem:[%s239_s19 + $0x18] sm:$0xff]  ;;  %v273_v4 = vsel %vm272_vm0, %v264_v0, 0.0  ;;  %v274_v5 = vsel %vm272_vm0, %v265_v1, 0.0  ;;  %v276_v6 = vsel %vm272_vm0, %v266_v2, 0.0  ;;  %v268_v7 = vld [vmem:[%s239_s19 + $0x20] sm:$0xff]  ;;  %v269_v10 = vld [vmem:[%s239_s19 + $0x28] sm:$0xff] }
  0x13   : > { %v275_v8 = vadd.f32 %v274_v5, %v273_v4  ;;  %v278_v9 = vsel %vm272_vm0, %v267_v3, 0.0  ;;  %v280_v12 = vsel %vm272_vm0, %v268_v7, 0.0  ;;  %v270_v13 = vld [vmem:[%s239_s19 + $0x30] sm:$0xff]  ;;  %v282_v15 = vsel %vm272_vm0, %v269_v10, 0.0  ;;  %v271_v16 = vld [vmem:[%s239_s19 + $0x38] sm:$0xff]  ;;  %v360_v49 = vld [vmem:[%s736_s22] sm:$0xff] }
  0x14   : > { %v284_v18 = vsel %vm272_vm0, %v270_v13, 0.0  ;;  %v286_v20 = vsel %vm272_vm0, %v271_v16, 0.0  ;;  %v361_v51 = vld [vmem:[%s736_s22 + $0x8] sm:$0xff]  ;;  %v362_v54 = vld [vmem:[%s736_s22 + $0x10] sm:$0xff]  ;;  %v564_v56 = vmul.f32 -1.442695, %v360_v49 }
  0x15   : > { %v277_v11 = vadd.f32 %v276_v6, %v275_v8  ;;  %v363_v57 = vld [vmem:[%s736_s22 + $0x18] sm:$0xff]  ;;  %v565_v60 = vmul.f32 -1.442695, %v361_v51  ;;  %v364_v61 = vld [vmem:[%s736_s22 + $0x20] sm:$0xff]  ;;  %v566_v63 = vmul.f32 -1.442695, %v362_v54 }
  0x16   : > { %602 = vpow2.f32 %v564_v56  ;;  %v568_v4 = vmul.f32 -1.442695, %v364_v61  ;;  %v366_v5 = vld [vmem:[%s736_s22 + $0x30] sm:$0xff]  ;;  %v345_v51 = vld [vmem:[%s247_s25 + $0x8] sm:$0xff]  ;;  %v347_v54 = vld [vmem:[%s247_s25 + $0x18] sm:$0xff] }
  0x17   : > { %v279_v14 = vadd.f32 %v278_v9, %v277_v11  ;;  %604 = vpow2.f32 %v565_v60  ;;  %v349_v61 = vld [vmem:[%s247_s25 + $0x28] sm:$0xff] }
  0x18   : > { %606 = vpow2.f32 %v566_v63  ;;  %v351_v63 = vld [vmem:[%s247_s25 + $0x38] sm:$0xff] }
  0x19   : > { %v281_v17 = vadd.f32 %v280_v12, %v279_v14 }
  0x1b   : > { %v283_v19 = vadd.f32 %v282_v15, %v281_v17 }
  0x1d   : > { %v285_v21 = vadd.f32 %v284_v18, %v283_v19 }
  0x1f   : > { %v287_v22 = vadd.f32 %v286_v20, %v285_v21 }
  0x20   : > { %v603_v15 = vpop.eup %602 }
  0x21   : > { %v288_v23 = vrot.slane %v287_v22, 4  ;;  %v605_v17 = vpop.eup %604  ;;  %v392_v21 = vadd.f32 1.0, %v603_v15 }
  0x22   : > { %v607_v18 = vpop.eup %606 }
  0x23   : > { %v289_v24 = vadd.f32 %v288_v23, %v287_v22 }
  0x25   : > { %v290_v25 = vrot.slane %v289_v24, 2 }
  0x27   : > { %v291_v26 = vadd.f32 %v290_v25, %v289_v24  ;;  %v393_v24 = vadd.f32 1.0, %v605_v17  ;;  %v394_v25 = vadd.f32 1.0, %v607_v18 }
  0x29   : > { %v292_v27 = vrot.slane %v291_v26, 1 }
  0x2b   : > { %v293_v28 = vadd.f32 %v292_v27, %v291_v26 }
  0x2d   : > { %v295_v29 = vmul.f32 0.015625, %v293_v28 }
  0x2f   : > { %v712_v30 = vsub.f32 %v264_v0, %v295_v29  ;;  %v714_v31 = vsub.f32 %v265_v1, %v295_v29  ;;  %v716_v32 = vsub.f32 %v266_v2, %v295_v29  ;;  %v718_v33 = vsub.f32 %v267_v3, %v295_v29  ;;  %v365_v2 = vld [vmem:[%s736_s22 + $0x28] sm:$0xff] }
  0x30   : > { %v720_v34 = vsub.f32 %v268_v7, %v295_v29  ;;  %v722_v35 = vsub.f32 %v269_v10, %v295_v29  ;;  %v738_v40 = vsub.f32 %v270_v13, %v295_v29  ;;  %v745_v46 = vsub.f32 %v271_v16, %v295_v29  ;;  %v367_v7 = vld [vmem:[%s736_s22 + $0x38] sm:$0xff] }
  0x31   : > { %v304_v36 = vmul.f32 %v712_v30, %v712_v30  ;;  %v305_v37 = vmul.f32 %v714_v31, %v714_v31  ;;  %v306_v38 = vmul.f32 %v716_v32, %v716_v32  ;;  %v307_v39 = vmul.f32 %v718_v33, %v718_v33 }
  0x32   : > { %v308_v41 = vmul.f32 %v720_v34, %v720_v34  ;;  %v309_v47 = vmul.f32 %v722_v35, %v722_v35  ;;  %v310_v52 = vmul.f32 %v738_v40, %v738_v40  ;;  %v311_v58 = vmul.f32 %v745_v46, %v745_v46 }
  0x33   : > { %v312_v42 = vsel %vm272_vm0, %v304_v36, 0.0  ;;  %v313_v43 = vsel %vm272_vm0, %v305_v37, 0.0  ;;  %v315_v44 = vsel %vm272_vm0, %v306_v38, 0.0  ;;  %v317_v48 = vsel %vm272_vm0, %v307_v39, 0.0 }
  0x34   : > { %v314_v45 = vadd.f32 %v313_v43, %v312_v42  ;;  %v319_v53 = vsel %vm272_vm0, %v308_v41, 0.0  ;;  %v321_v59 = vsel %vm272_vm0, %v309_v47, 0.0  ;;  %v323_v0 = vsel %vm272_vm0, %v310_v52, 0.0 }
  0x35   : > { %v567_v1 = vmul.f32 -1.442695, %v363_v57  ;;  %v325_v6 = vsel %vm272_vm0, %v311_v58, 0.0  ;;  %v569_v9 = vmul.f32 -1.442695, %v365_v2 }
  0x36   : > { %v316_v50 = vadd.f32 %v315_v44, %v314_v45  ;;  %v570_v10 = vmul.f32 -1.442695, %v366_v5  ;;  %v571_v12 = vmul.f32 -1.442695, %v367_v7 }
  0x37   : > { %608 = vpow2.f32 %v567_v1 }
  0x38   : > { %v318_v55 = vadd.f32 %v317_v48, %v316_v50  ;;  %610 = vpow2.f32 %v568_v4  ;;  %v344_v50 = vld [vmem:[%s247_s25] sm:$0xff] }
  0x39   : > { %612 = vpow2.f32 %v569_v9 }
  0x3a   : > { %v320_v62 = vadd.f32 %v319_v53, %v318_v55  ;;  %614 = vpow2.f32 %v570_v10  ;;  %v346_v53 = vld [vmem:[%s247_s25 + $0x10] sm:$0xff]  ;;  %v348_v55 = vld [vmem:[%s247_s25 + $0x20] sm:$0xff] }
  0x3b   : > { %616 = vpow2.f32 %v571_v12 }
  0x3c   : > { %v322_v3 = vadd.f32 %v321_v59, %v320_v62  ;;  %618 = vrcp.f32 %v392_v21  ;;  %v350_v62 = vld [vmem:[%s247_s25 + $0x30] sm:$0xff] }
  0x3d   : > { %620 = vrcp.f32 %v393_v24 }
  0x3e   : > { %v324_v8 = vadd.f32 %v323_v0, %v322_v3  ;;  %622 = vrcp.f32 %v394_v25 }
  0x40   : > { %v326_v11 = vadd.f32 %v325_v6, %v324_v8 }
  0x41   : > { %v609_v20 = vpop.eup %608 }
  0x42   : > { %v327_v13 = vrot.slane %v326_v11, 4  ;;  %v611_v22 = vpop.eup %610  ;;  %v395_v28 = vadd.f32 1.0, %v609_v20 }
  0x43   : > { %v613_v26 = vpop.eup %612  ;;  %v396_v36 = vadd.f32 1.0, %v611_v22 }
  0x44   : > { %v328_v14 = vadd.f32 %v327_v13, %v326_v11  ;;  %v615_v29 = vpop.eup %614  ;;  %v397_v39 = vadd.f32 1.0, %v613_v26  ;;  %624 = vrcp.f32 %v395_v28 }
  0x45   : > { %v617_v37 = vpop.eup %616  ;;  %v398_v42 = vadd.f32 1.0, %v615_v29  ;;  %626 = vrcp.f32 %v396_v36 }
  0x46   : > { %v329_v16 = vrot.slane %v328_v14, 2  ;;  %v399_v43 = vadd.f32 1.0, %v617_v37  ;;  %v619_v44 = vpop.eup %618 }
  0x47   : > { %v621_v45 = vpop.eup %620 }
  0x48   : > { %v330_v19 = vadd.f32 %v329_v16, %v328_v14  ;;  %v623_v47 = vpop.eup %622 }
  0x4a   : > { %v331_v23 = vrot.slane %v330_v19, 1 }
  0x4c   : > { %v332_v27 = vadd.f32 %v331_v23, %v330_v19 }
  0x4e   : > { %v333_v38 = vmul.f32 0.015625, %v332_v27  ;;  %v625_v48 = vpop.eup %624 }
  0x4f   : > { %v627_v49 = vpop.eup %626 }
  0x50   : > { %v334_v41 = vadd.f32 1e-05, %v333_v38 }
  0x52   : > { %628 = vrsqrt.f32 %v334_v41 }
  0x53   : > { %630 = vrcp.f32 %v397_v39 }
  0x54   : > { %632 = vrcp.f32 %v398_v42 }
  0x55   : > { %634 = vrcp.f32 %v399_v43 }
  0x5c   : > { %v629_v52 = vpop.eup %628 }
  0x5d   : > { %v631_v56 = vpop.eup %630  ;;  %v336_v57 = vmul.f32 %v629_v52, %v712_v30  ;;  %v337_v58 = vmul.f32 %v629_v52, %v714_v31  ;;  %v338_v59 = vmul.f32 %v629_v52, %v716_v32  ;;  %v339_v60 = vmul.f32 %v629_v52, %v718_v33 }
  0x5e   : > { %v633_v0 = vpop.eup %632  ;;  %v340_v1 = vmul.f32 %v629_v52, %v720_v34  ;;  %v341_v2 = vmul.f32 %v629_v52, %v722_v35  ;;  %v342_v3 = vmul.f32 %v629_v52, %v738_v40  ;;  %v343_v4 = vmul.f32 %v629_v52, %v745_v46 }
  0x5f   : > { %v635_v30 = vpop.eup %634  ;;  %v352_v5 = vadd.f32 %v344_v50, %v336_v57  ;;  %v353_v31 = vadd.f32 %v345_v51, %v337_v58  ;;  %v354_v6 = vadd.f32 %v346_v53, %v338_v59  ;;  %v355_v7 = vadd.f32 %v347_v54, %v339_v60 }
  0x60   : > { %v356_v32 = vadd.f32 %v348_v55, %v340_v1  ;;  %v357_v33 = vadd.f32 %v349_v61, %v341_v2  ;;  %v358_v8 = vadd.f32 %v350_v62, %v342_v3  ;;  %v359_v9 = vadd.f32 %v351_v63, %v343_v4 }
  0x61   : > { %v416_v34 = vmul.f32 %v619_v44, %v352_v5  ;;  %v417_v10 = vmul.f32 %v621_v45, %v353_v31  ;;  %v418_v35 = vmul.f32 %v623_v47, %v354_v6  ;;  %v419_v11 = vmul.f32 %v625_v48, %v355_v7 }
  0x62   : > { %v420_v40 = vmul.f32 %v627_v49, %v356_v32  ;;  %v421_v12 = vmul.f32 %v631_v56, %v357_v33  ;;  %v422_v46 = vmul.f32 %v633_v0, %v358_v8  ;;  %v423_v13 = vmul.f32 %v635_v30, %v359_v9 }
  0x63   : > { %424 = vst.msk [vmem:[%s263_s28] sm:$0xff] %vm272_vm0, %v416_v34  ;;  %425 = vst.msk [vmem:[%s263_s28 + $0x8] sm:$0xff] %vm272_vm0, %v417_v10 }
  0x64   : > { %426 = vst.msk [vmem:[%s263_s28 + $0x10] sm:$0xff] %vm272_vm0, %v418_v35  ;;  %427 = vst.msk [vmem:[%s263_s28 + $0x18] sm:$0xff] %vm272_vm0, %v419_v11 }
  0x65   : > { %428 = vst.msk [vmem:[%s263_s28 + $0x20] sm:$0xff] %vm272_vm0, %v420_v40  ;;  %429 = vst.msk [vmem:[%s263_s28 + $0x28] sm:$0xff] %vm272_vm0, %v421_v12 }
  0x66   : > { %430 = vst.msk [vmem:[%s263_s28 + $0x30] sm:$0xff] %vm272_vm0, %v422_v46  ;;  %431 = vst.msk [vmem:[%s263_s28 + $0x38] sm:$0xff] %vm272_vm0, %v423_v13 }
  0x67 PF: > { %s13_s14 = sadd.s32 1, %s658_s14   ;;  %s803_s12 = smov %s654_s13 }
  0x68   : > { %p10_p5 = scmp.ge.s32.totalorder %s13_s14, 4   ;;  %s804_s13 = smov %s806_s15 }
  0x6a   :  { %12 = sbr.rel (!%p10_p5) target bundleno = 2 (0x2), region = 68 }

// kernel: edge_content_encoder.127
= control target key start
LH: loop header
LB: loop body
LE: loop exit
PB: predicated region body
PF: predicated region fallthrough
CT: control target
= control target key end

     0   :  { %v563_v0 = vmov 0.0   ;;  %vm564_vm0 = vmmov 0   ;;  %s741_s1 = inlined_call_operand.vmem [shape: bf16[128,128], index: 1, kind: input, shape index: {}]   ;;  %s742_s0 = inlined_call_operand.vmem [shape: bf16[176,128], index: 0, kind: input, shape index: {}]   ;;  %s743_s2 = inlined_call_operand.vmem [shape: f32[176,128], index: 2, kind: output, shape index: {}]  }
   0x1   :  { %466 = vmatprep.subr.bf16.mxu0 %v563_v0  ;;  %v544_v1 = vld [vmem:[%s741_s1] sm:$0xff]   ;;  %526 = vmatprep.subr.bf16.mxu1 %v563_v0  ;;  %v545_v2 = vld [vmem:[%s741_s1 + $0x8] sm:$0xff]   ;;  %v546_v3 = vld [vmem:[%s741_s1 + $0x10] sm:$0xff]  }
   0x2   :  { %482 = vmatprep.mubr.msk.bf16.mxu0 %vm564_vm0, %v563_v0  ;;  %506 = vmatprep.mubr.msk.bf16.mxu1 %vm564_vm0, %v563_v0  ;;  %v547_v4 = vld [vmem:[%s741_s1 + $0x18] sm:$0xff]   ;;  %v548_v5 = vld [vmem:[%s741_s1 + $0x20] sm:$0xff]   ;;  %v549_v6 = vld [vmem:[%s741_s1 + $0x28] sm:$0xff]  }
   0x3   :  { %467 = vmatpush3.bf16.msra.mxu0 %v544_v1  ;;  %534 = vmatpush3.bf16.msra.mxu1 %v544_v1  ;;  %v550_v7 = vld [vmem:[%s741_s1 + $0x30] sm:$0xff]   ;;  %v551_v8 = vld [vmem:[%s741_s1 + $0x38] sm:$0xff]   ;;  %v552_v9 = vld [vmem:[%s742_s0] sm:$0xff]  }
   0x4   :  { %468 = vmatprep.subr.bf16.mxu0 %v563_v0  ;;  %527 = vmatprep.subr.bf16.mxu1 %v563_v0  ;;  %v553_v10 = vld [vmem:[%s742_s0 + $0x30] sm:$0xff]   ;;  %v554_v11 = vld [vmem:[%s742_s0 + $0x8] sm:$0xff]   ;;  %v555_v12 = vld [vmem:[%s742_s0 + $0x38] sm:$0xff]  }
   0x5   :  { %v556_v13 = vld [vmem:[%s742_s0 + $0x10] sm:$0xff]   ;;  %v557_v14 = vld [vmem:[%s742_s0 + $0x40] sm:$0xff]   ;;  %v558_v15 = vld [vmem:[%s742_s0 + $0x18] sm:$0xff]  }
   0x6   :  { %v559_v16 = vld [vmem:[%s742_s0 + $0x48] sm:$0xff]   ;;  %v560_v17 = vld [vmem:[%s742_s0 + $0x20] sm:$0xff]   ;;  %v561_v18 = vld [vmem:[%s742_s0 + $0x50] sm:$0xff]  }
   0x7   :  { %469 = vmatpush3.bf16.msra.mxu0 %v545_v2  ;;  %535 = vmatpush3.bf16.msra.mxu1 %v545_v2  ;;  %v562_v19 = vld [vmem:[%s742_s0 + $0x28] sm:$0xff]  }
   0x8   :  { %470 = vmatprep.subr.bf16.mxu0 %v563_v0  ;;  %528 = vmatprep.subr.bf16.mxu1 %v563_v0 }
   0xb   :  { %471 = vmatpush3.bf16.msra.mxu0 %v546_v3  ;;  %536 = vmatpush3.bf16.msra.mxu1 %v546_v3 }
   0xc   :  { %472 = vmatprep.subr.bf16.mxu0 %v563_v0  ;;  %529 = vmatprep.subr.bf16.mxu1 %v563_v0 }
   0xf   :  { %473 = vmatpush3.bf16.msra.mxu0 %v547_v4  ;;  %537 = vmatpush3.bf16.msra.mxu1 %v547_v4 }
  0x10   :  { %474 = vmatprep.subr.bf16.mxu0 %v563_v0  ;;  %530 = vmatprep.subr.bf16.mxu1 %v563_v0 }
  0x13   :  { %475 = vmatpush3.bf16.msra.mxu0 %v548_v5  ;;  %538 = vmatpush3.bf16.msra.mxu1 %v548_v5 }
  0x14   :  { %476 = vmatprep.subr.bf16.mxu0 %v563_v0  ;;  %531 = vmatprep.subr.bf16.mxu1 %v563_v0 }
  0x17   :  { %477 = vmatpush3.bf16.msra.mxu0 %v549_v6  ;;  %539 = vmatpush3.bf16.msra.mxu1 %v549_v6 }
  0x18   :  { %478 = vmatprep.subr.bf16.mxu0 %v563_v0  ;;  %532 = vmatprep.subr.bf16.mxu1 %v563_v0 }
  0x1b   :  { %479 = vmatpush3.bf16.msra.mxu0 %v550_v7  ;;  %540 = vmatpush3.bf16.msra.mxu1 %v550_v7 }
  0x1c   :  { %480 = vmatprep.subr.bf16.mxu0 %v563_v0  ;;  %533 = vmatprep.subr.bf16.mxu1 %v563_v0 }
  0x1f   :  { %481 = vmatpush3.bf16.msra.mxu0 %v551_v8  ;;  %541 = vmatpush3.bf16.msra.mxu1 %v551_v8 }
  0x22   :  { %483 = vmatmul.mubr.bf16.vlgmr.msra.gmra.mrb[0].mxu0 %v552_v9  ;;  %507 = vmatmul.mubr.bf16.vlgmr.msra.gmra.mrb[0].mxu1 %v553_v10 }
  0x23   :  { %486 = vmatprep.mubr.msk.bf16.mxu0 %vm564_vm0, %v563_v0  ;;  %510 = vmatprep.mubr.msk.bf16.mxu1 %vm564_vm0, %v563_v0 }
  0x2a   :  { %487 = vmatmul.mubr.bf16.gmra.mrb[4].mxu0 %v554_v11  ;;  %511 = vmatmul.mubr.bf16.gmra.mrb[4].mxu1 %v555_v12 }
  0x2b   :  { %490 = vmatprep.mubr.msk.bf16.mxu0 %vm564_vm0, %v563_v0  ;;  %514 = vmatprep.mubr.msk.bf16.mxu1 %vm564_vm0, %v563_v0 }
  0x32   :  { %491 = vmatmul.mubr.bf16.gmra.mrb[8].mxu0 %v556_v13  ;;  %515 = vmatmul.mubr.bf16.gmra.mrb[8].mxu1 %v557_v14 }
  0x33   :  { %494 = vmatprep.mubr.msk.bf16.mxu0 %vm564_vm0, %v563_v0  ;;  %518 = vmatprep.mubr.msk.bf16.mxu1 %vm564_vm0, %v563_v0 }
  0x3a   :  { %495 = vmatmul.mubr.bf16.gmra.mrb[12].mxu0 %v558_v15  ;;  %519 = vmatmul.mubr.bf16.gmra.mrb[12].mxu1 %v559_v16 }
  0x3b   :  { %498 = vmatprep.mubr.msk.bf16.mxu0 %vm564_vm0, %v563_v0  ;;  %522 = vmatprep.mubr.msk.bf16.mxu1 %vm564_vm0, %v563_v0 }
  0x42   :  { %499 = vmatmul.mubr.bf16.gmra.mrb[16].mxu0 %v560_v17  ;;  %523 = vmatmul.mubr.bf16.gmra.mrb[16].mxu1 %v561_v18 }
  0x43   :  { %502 = vmatprep.mubr.msk.bf16.mxu0 %vm564_vm0, %v563_v0 }
  0x4a   :  { %503 = vmatmul.mubr.bf16.gmra.mrb[20].mxu0 %v562_v19 }
  0xf5   :  { %v246_v20 = vpop.f32.mrb[0].mxu0  ;;  %v294_v21 = vpop.f32.mrb[0].mxu1 }
  0xf6   :  { %402 = vst [vmem:[%s743_s2] sm:$0xff] %v246_v20  ;;  %v484_v22 = vpop.f32.mrb[1].mxu0  ;;  %414 = vst [vmem:[%s743_s2 + $0x60] sm:$0xff] %v294_v21  ;;  %v508_v23 = vpop.f32.mrb[1].mxu1 }
  0xf7   :  { %v249_v24 = vpop.f32.mrb[2].mxu0  ;;  %v297_v25 = vpop.f32.mrb[2].mxu1 }
  0xf8   :  { %403 = vst [vmem:[%s743_s2 + $0x8] sm:$0xff] %v249_v24  ;;  %v485_v26 = vpop.f32.mrb[3].mxu0  ;;  %415 = vst [vmem:[%s743_s2 + $0x68] sm:$0xff] %v297_v25  ;;  %v509_v27 = vpop.f32.mrb[3].mxu1 }
  0xfd   :  { %v254_v28 = vpop.f32.mrb[4].mxu0  ;;  %v302_v29 = vpop.f32.mrb[4].mxu1 }
  0xfe   :  { %404 = vst [vmem:[%s743_s2 + $0x10] sm:$0xff] %v254_v28  ;;  %v488_v30 = vpop.f32.mrb[5].mxu0  ;;  %416 = vst [vmem:[%s743_s2 + $0x70] sm:$0xff] %v302_v29  ;;  %v512_v31 = vpop.f32.mrb[5].mxu1 }
  0xff   :  { %v257_v32 = vpop.f32.mrb[6].mxu0  ;;  %v305_v33 = vpop.f32.mrb[6].mxu1 }
 0x100   :  { %405 = vst [vmem:[%s743_s2 + $0x18] sm:$0xff] %v257_v32  ;;  %v489_v34 = vpop.f32.mrb[7].mxu0  ;;  %417 = vst [vmem:[%s743_s2 + $0x78] sm:$0xff] %v305_v33  ;;  %v513_v35 = vpop.f32.mrb[7].mxu1 }
 0x105   :  { %v262_v36 = vpop.f32.mrb[8].mxu0  ;;  %v310_v37 = vpop.f32.mrb[8].mxu1 }
 0x106   :  { %406 = vst [vmem:[%s743_s2 + $0x20] sm:$0xff] %v262_v36  ;;  %v492_v38 = vpop.f32.mrb[9].mxu0  ;;  %418 = vst [vmem:[%s743_s2 + $0x80] sm:$0xff] %v310_v37  ;;  %v516_v39 = vpop.f32.mrb[9].mxu1 }
 0x107   :  { %v265_v40 = vpop.f32.mrb[10].mxu0  ;;  %v313_v41 = vpop.f32.mrb[10].mxu1 }
 0x108   :  { %407 = vst [vmem:[%s743_s2 + $0x28] sm:$0xff] %v265_v40  ;;  %v493_v42 = vpop.f32.mrb[11].mxu0  ;;  %419 = vst [vmem:[%s743_s2 + $0x88] sm:$0xff] %v313_v41  ;;  %v517_v43 = vpop.f32.mrb[11].mxu1 }
 0x10d   :  { %v270_v44 = vpop.f32.mrb[12].mxu0  ;;  %v318_v45 = vpop.f32.mrb[12].mxu1 }
 0x10e   :  { %408 = vst [vmem:[%s743_s2 + $0x30] sm:$0xff] %v270_v44  ;;  %v496_v46 = vpop.f32.mrb[13].mxu0  ;;  %420 = vst [vmem:[%s743_s2 + $0x90] sm:$0xff] %v318_v45  ;;  %v520_v47 = vpop.f32.mrb[13].mxu1 }
 0x10f   :  { %v273_v48 = vpop.f32.mrb[14].mxu0  ;;  %v321_v49 = vpop.f32.mrb[14].mxu1 }
 0x110   :  { %409 = vst [vmem:[%s743_s2 + $0x38] sm:$0xff] %v273_v48  ;;  %v497_v50 = vpop.f32.mrb[15].mxu0  ;;  %421 = vst [vmem:[%s743_s2 + $0x98] sm:$0xff] %v321_v49  ;;  %v521_v51 = vpop.f32.mrb[15].mxu1 }
 0x115   :  { %v278_v52 = vpop.f32.mrb[16].mxu0  ;;  %v326_v53 = vpop.f32.mrb[16].mxu1 }
 0x116   :  { %410 = vst [vmem:[%s743_s2 + $0x40] sm:$0xff] %v278_v52  ;;  %v500_v54 = vpop.f32.mrb[17].mxu0  ;;  %422 = vst [vmem:[%s743_s2 + $0xa0] sm:$0xff] %v326_v53  ;;  %v524_v55 = vpop.f32.mrb[17].mxu1 }
 0x117   :  { %v281_v56 = vpop.f32.mrb[18].mxu0  ;;  %v329_v57 = vpop.f32.mrb[18].mxu1 }
 0x118   :  { %411 = vst [vmem:[%s743_s2 + $0x48] sm:$0xff] %v281_v56  ;;  %v501_v58 = vpop.f32.mrb[19].mxu0  ;;  %423 = vst [vmem:[%s743_s2 + $0xa8] sm:$0xff] %v329_v57  ;;  %v525_v59 = vpop.f32.mrb[19].mxu1 }
 0x11d   :  { %v286_v60 = vpop.f32.mrb[20].mxu0 }
 0x11e   :  { %412 = vst [vmem:[%s743_s2 + $0x50] sm:$0xff] %v286_v60  ;;  %v504_v61 = vpop.f32.mrb[21].mxu0 }
 0x11f   :  { %v289_v62 = vpop.f32.mrb[22].mxu0 }
 0x120   :  { %413 = vst [vmem:[%s743_s2 + $0x58] sm:$0xff] %v289_v62  ;;  %v505_v63 = vpop.f32.mrb[23].mxu0 }

// kernel: edge_content_encoder.132
= control target key start
LH: loop header
LB: loop body
LE: loop exit
PB: predicated region body
PF: predicated region fallthrough
CT: control target
= control target key end

     0   :  { %s756_s9 = smov 0   ;;  %s758_s10 = smov 0   ;;  %s1351_s0 = inlined_call_operand.vmem [shape: f32[2,256,8], index: 0, kind: input, shape index: {}]   ;;  %s1352_s1 = inlined_call_operand.vmem [shape: f32[2,256,8], index: 1, kind: input, shape index: {}]   ;;  %s1353_s2 = inlined_call_operand.vmem [shape: f32[2,256,8], index: 2, kind: output, shape index: {}]  }
   0x1   :  { %s760_s11 = smov 0  }
   0x2 LB: > { %s24_s12 = sadd.s32 1, %s735_s10  ;;  %p679_p0 = scmp.ge.s32.totalorder %s739_s11, 1  ;;  %s739_s11 = sphi %s760_s11, %s12_s11   ;;  %s735_s10 = sphi %s758_s10, %s1355_s10   ;;  %s731_s9 = sphi %s756_s9, %s1354_s9  }
   0x3   : > { %p26_p1 = scmp.ge.s32.totalorder %s24_s12, 2  ;;  %p146_p2 = scmp.lt.s32.totalorder %s739_s11, 3 }
   0x5   : > { %s1357_s12 = smov (%p26_p1, %s24_s12), 0  ;;  %p147_p3 = pnand %p679_p0, %p146_p2 }
   0x6   : > { %p182_p4 = scmp.lt.s32.totalorder (!%p147_p3), %s731_s9, 1  ;;  %vm238_vm0 = vcmask (!%p147_p3), 64512  }
   0x7   : > { %150 = sbr.rel (%p147_p3) target bundleno = 211 (0xd3), region = 28 }
   0xe   : > { %s1359_s9 = smov (!%p182_p4, %s731_s9), 1 }
   0xf   : > { %s774_s13 = sshll.u32 %s1359_s9, 8 }
  0x10   : > { %s780_s16 = scalar_lea.vmem %s1351_s0, %s774_s13  ;;  %s1172_s19 = scalar_lea.vmem %s1352_s1, %s774_s13 }
  0x11   : > { %v783_v0 = vld [vmem:[%s780_s16] sm:$0xff]  ;;  %v786_v1 = vld [vmem:[%s780_s16 + $0x8] sm:$0xff]  ;;  %v789_v2 = vld [vmem:[%s780_s16 + $0x10] sm:$0xff]  ;;  %s1196_s22 = scalar_lea.vmem %s1353_s2, %s774_s13 }
  0x12   : > { %v792_v3 = vld [vmem:[%s780_s16 + $0x18] sm:$0xff]  ;;  %v239_v4 = vsel %vm238_vm0, %v783_v0, 0.0  ;;  %v240_v5 = vsel %vm238_vm0, %v786_v1, 0.0  ;;  %v242_v6 = vsel %vm238_vm0, %v789_v2, 0.0  ;;  %v801_v7 = vld [vmem:[%s780_s16 + $0x20] sm:$0xff]  ;;  %v806_v10 = vld [vmem:[%s780_s16 + $0x28] sm:$0xff] }
  0x13   : > { %v241_v8 = vadd.f32 %v240_v5, %v239_v4  ;;  %v244_v9 = vsel %vm238_vm0, %v792_v3, 0.0  ;;  %v246_v12 = vsel %vm238_vm0, %v801_v7, 0.0  ;;  %v811_v13 = vld [vmem:[%s780_s16 + $0x30] sm:$0xff]  ;;  %v248_v15 = vsel %vm238_vm0, %v806_v10, 0.0  ;;  %v816_v16 = vld [vmem:[%s780_s16 + $0x38] sm:$0xff]  ;;  %v821_v19 = vld [vmem:[%s780_s16 + $0x40] sm:$0xff] }
  0x14   : > { %v250_v18 = vsel %vm238_vm0, %v811_v13, 0.0  ;;  %v252_v21 = vsel %vm238_vm0, %v816_v16, 0.0  ;;  %v826_v22 = vld [vmem:[%s780_s16 + $0x48] sm:$0xff]  ;;  %v254_v24 = vsel %vm238_vm0, %v821_v19, 0.0  ;;  %v831_v25 = vld [vmem:[%s780_s16 + $0x50] sm:$0xff]  ;;  %v836_v28 = vld [vmem:[%s780_s16 + $0x58] sm:$0xff] }
  0x15   : > { %v243_v11 = vadd.f32 %v242_v6, %v241_v8  ;;  %v256_v27 = vsel %vm238_vm0, %v826_v22, 0.0  ;;  %v258_v30 = vsel %vm238_vm0, %v831_v25, 0.0  ;;  %v841_v31 = vld [vmem:[%s780_s16 + $0x60] sm:$0xff]  ;;  %v260_v33 = vsel %vm238_vm0, %v836_v28, 0.0  ;;  %v846_v34 = vld [vmem:[%s780_s16 + $0x68] sm:$0xff]  ;;  %v851_v37 = vld [vmem:[%s780_s16 + $0x70] sm:$0xff] }
  0x16   : > { %v262_v36 = vsel %vm238_vm0, %v841_v31, 0.0  ;;  %v264_v39 = vsel %vm238_vm0, %v846_v34, 0.0  ;;  %v856_v40 = vld [vmem:[%s780_s16 + $0x78] sm:$0xff]  ;;  %v266_v42 = vsel %vm238_vm0, %v851_v37, 0.0  ;;  %v861_v43 = vld [vmem:[%s780_s16 + $0x80] sm:$0xff]  ;;  %v866_v46 = vld [vmem:[%s780_s16 + $0x88] sm:$0xff] }
  0x17   : > { %v245_v14 = vadd.f32 %v244_v9, %v243_v11  ;;  %v268_v45 = vsel %vm238_vm0, %v856_v40, 0.0  ;;  %v270_v48 = vsel %vm238_vm0, %v861_v43, 0.0  ;;  %v871_v49 = vld [vmem:[%s780_s16 + $0x90] sm:$0xff]  ;;  %v272_v51 = vsel %vm238_vm0, %v866_v46, 0.0  ;;  %v876_v52 = vld [vmem:[%s780_s16 + $0x98] sm:$0xff]  ;;  %v881_v55 = vld [vmem:[%s780_s16 + $0xa0] sm:$0xff] }
  0x18   : > { %v274_v54 = vsel %vm238_vm0, %v871_v49, 0.0  ;;  %v276_v57 = vsel %vm238_vm0, %v876_v52, 0.0  ;;  %v886_v58 = vld [vmem:[%s780_s16 + $0xa8] sm:$0xff]  ;;  %v278_v60 = vsel %vm238_vm0, %v881_v55, 0.0  ;;  %v891_v61 = vld [vmem:[%s780_s16 + $0xb0] sm:$0xff]  ;;  %v896_v4 = vld [vmem:[%s780_s16 + $0xb8] sm:$0xff] }
  0x19   : > { %v247_v17 = vadd.f32 %v246_v12, %v245_v14  ;;  %v280_v63 = vsel %vm238_vm0, %v886_v58, 0.0  ;;  %v282_v6 = vsel %vm238_vm0, %v891_v61, 0.0  ;;  %v901_v8 = vld [vmem:[%s780_s16 + $0xc0] sm:$0xff]  ;;  %v284_v11 = vsel %vm238_vm0, %v896_v4, 0.0  ;;  %v906_v12 = vld [vmem:[%s780_s16 + $0xc8] sm:$0xff] }
  0x1b   : > { %v249_v20 = vadd.f32 %v248_v15, %v247_v17  ;;  %v286_v15 = vsel %vm238_vm0, %v901_v8, 0.0  ;;  %v911_v17 = vld [vmem:[%s780_s16 + $0xd0] sm:$0xff] }
  0x1d   : > { %v251_v23 = vadd.f32 %v250_v18, %v249_v20  ;;  %v288_v20 = vsel %vm238_vm0, %v906_v12, 0.0 }
  0x1f   : > { %v253_v26 = vadd.f32 %v252_v21, %v251_v23  ;;  %v916_v21 = vld [vmem:[%s780_s16 + $0xd8] sm:$0xff] }
  0x21   : > { %v255_v29 = vadd.f32 %v254_v24, %v253_v26  ;;  %v290_v24 = vsel %vm238_vm0, %v911_v17, 0.0  ;;  %v921_v26 = vld [vmem:[%s780_s16 + $0xe0] sm:$0xff] }
  0x23   : > { %v257_v32 = vadd.f32 %v256_v27, %v255_v29  ;;  %v292_v29 = vsel %vm238_vm0, %v916_v21, 0.0 }
  0x25   : > { %v259_v35 = vadd.f32 %v258_v30, %v257_v32  ;;  %v926_v30 = vld [vmem:[%s780_s16 + $0xe8] sm:$0xff] }
  0x27   : > { %v261_v38 = vadd.f32 %v260_v33, %v259_v35  ;;  %v294_v33 = vsel %vm238_vm0, %v921_v26, 0.0  ;;  %v931_v35 = vld [vmem:[%s780_s16 + $0xf0] sm:$0xff] }
  0x29   : > { %v263_v41 = vadd.f32 %v262_v36, %v261_v38  ;;  %v296_v38 = vsel %vm238_vm0, %v926_v30, 0.0 }
  0x2b   : > { %v265_v44 = vadd.f32 %v264_v39, %v263_v41  ;;  %v936_v39 = vld [vmem:[%s780_s16 + $0xf8] sm:$0xff] }
  0x2d   : > { %v267_v47 = vadd.f32 %v266_v42, %v265_v44  ;;  %v298_v42 = vsel %vm238_vm0, %v931_v35, 0.0 }
  0x2f   : > { %v269_v50 = vadd.f32 %v268_v45, %v267_v47  ;;  %v300_v45 = vsel %vm238_vm0, %v936_v39, 0.0 }
  0x31   : > { %v271_v53 = vadd.f32 %v270_v48, %v269_v50 }
  0x33   : > { %v273_v56 = vadd.f32 %v272_v51, %v271_v53 }
  0x35   : > { %v275_v59 = vadd.f32 %v274_v54, %v273_v56 }
  0x37   : > { %v277_v62 = vadd.f32 %v276_v57, %v275_v59 }
  0x39   : > { %v279_v5 = vadd.f32 %v278_v60, %v277_v62 }
  0x3b   : > { %v281_v9 = vadd.f32 %v280_v63, %v279_v5 }
  0x3d   : > { %v283_v14 = vadd.f32 %v282_v6, %v281_v9 }
  0x3f   : > { %v285_v18 = vadd.f32 %v284_v11, %v283_v14 }
  0x41   : > { %v287_v23 = vadd.f32 %v286_v15, %v285_v18 }
  0x43   : > { %v289_v27 = vadd.f32 %v288_v20, %v287_v23 }
  0x45   : > { %v291_v32 = vadd.f32 %v290_v24, %v289_v27 }
  0x47   : > { %v293_v36 = vadd.f32 %v292_v29, %v291_v32 }
  0x49   : > { %v295_v41 = vadd.f32 %v294_v33, %v293_v36 }
  0x4b   : > { %v297_v44 = vadd.f32 %v296_v38, %v295_v41 }
  0x4d   : > { %v299_v47 = vadd.f32 %v298_v42, %v297_v44 }
  0x4f   : > { %v301_v48 = vadd.f32 %v300_v45, %v299_v47 }
  0x51   : > { %v302_v50 = vrot.slane %v301_v48, 4 }
  0x53   : > { %v303_v51 = vadd.f32 %v302_v50, %v301_v48 }
  0x55   : > { %v304_v53 = vrot.slane %v303_v51, 2 }
  0x57   : > { %v305_v54 = vadd.f32 %v304_v53, %v303_v51 }
  0x59   : > { %v306_v56 = vrot.slane %v305_v54, 1 }
  0x5b   : > { %v307_v57 = vadd.f32 %v306_v56, %v305_v54 }
  0x5d   : > { %v942_v59 = vmul.f32 0.00390625, %v307_v57 }
  0x5f   : > { %v946_v60 = vsub.f32 %v783_v0, %v942_v59  ;;  %v950_v62 = vsub.f32 %v786_v1, %v942_v59  ;;  %v954_v63 = vsub.f32 %v789_v2, %v942_v59  ;;  %v958_v5 = vsub.f32 %v792_v3, %v942_v59 }
  0x60   : > { %v962_v6 = vsub.f32 %v801_v7, %v942_v59  ;;  %v972_v2 = vsub.f32 %v806_v10, %v942_v59  ;;  %v978_v7 = vsub.f32 %v811_v13, %v942_v59  ;;  %v987_v10 = vsub.f32 %v816_v16, %v942_v59 }
  0x61   : > { %v342_v0 = vmul.f32 %v946_v60, %v946_v60  ;;  %v343_v9 = vmul.f32 %v950_v62, %v950_v62  ;;  %v344_v1 = vmul.f32 %v954_v63, %v954_v63  ;;  %v345_v3 = vmul.f32 %v958_v5, %v958_v5 }
  0x62   : > { %v346_v11 = vmul.f32 %v962_v6, %v962_v6  ;;  %v347_v23 = vmul.f32 %v972_v2, %v972_v2  ;;  %v994_v27 = vsub.f32 %v821_v19, %v942_v59  ;;  %v348_v29 = vmul.f32 %v978_v7, %v978_v7 }
  0x63   : > { %v374_v14 = vsel %vm238_vm0, %v342_v0, 0.0  ;;  %v375_v15 = vsel %vm238_vm0, %v343_v9, 0.0  ;;  %v377_v18 = vsel %vm238_vm0, %v344_v1, 0.0  ;;  %v379_v13 = vsel %vm238_vm0, %v345_v3, 0.0 }
  0x64   : > { %v376_v20 = vadd.f32 %v375_v15, %v374_v14  ;;  %v381_v32 = vsel %vm238_vm0, %v346_v11, 0.0  ;;  %v1001_v16 = vsub.f32 %v826_v22, %v942_v59  ;;  %v349_v36 = vmul.f32 %v987_v10, %v987_v10 }
  0x65   : > { %v383_v38 = vsel %vm238_vm0, %v347_v23, 0.0  ;;  %v1008_v19 = vsub.f32 %v831_v25, %v942_v59  ;;  %v350_v42 = vmul.f32 %v994_v27, %v994_v27  ;;  %v385_v44 = vsel %vm238_vm0, %v348_v29, 0.0 }
  0x66   : > { %v378_v24 = vadd.f32 %v377_v18, %v376_v20  ;;  %v1015_v22 = vsub.f32 %v836_v28, %v942_v59  ;;  %v351_v47 = vmul.f32 %v1001_v16, %v1001_v16  ;;  %v387_v48 = vsel %vm238_vm0, %v349_v36, 0.0 }
  0x67   : > { %v1022_v25 = vsub.f32 %v841_v31, %v942_v59  ;;  %v352_v51 = vmul.f32 %v1008_v19, %v1008_v19  ;;  %v389_v53 = vsel %vm238_vm0, %v350_v42, 0.0  ;;  %v1029_v28 = vsub.f32 %v846_v34, %v942_v59 }
  0x68   : > { %v380_v33 = vadd.f32 %v379_v13, %v378_v24  ;;  %v353_v56 = vmul.f32 %v1015_v22, %v1015_v22  ;;  %v391_v57 = vsel %vm238_vm0, %v351_v47, 0.0  ;;  %v1036_v31 = vsub.f32 %v851_v37, %v942_v59 }
  0x69   : > { %v354_v9 = vmul.f32 %v1022_v25, %v1022_v25  ;;  %v393_v1 = vsel %vm238_vm0, %v352_v51, 0.0  ;;  %v1043_v34 = vsub.f32 %v856_v40, %v942_v59  ;;  %v355_v11 = vmul.f32 %v1029_v28, %v1029_v28 }
  0x6a   : > { %v382_v41 = vadd.f32 %v381_v32, %v380_v33  ;;  %v395_v14 = vsel %vm238_vm0, %v353_v56, 0.0  ;;  %v1050_v37 = vsub.f32 %v861_v43, %v942_v59  ;;  %v356_v18 = vmul.f32 %v1036_v31, %v1036_v31 }
  0x6b   : > { %v397_v20 = vsel %vm238_vm0, %v354_v9, 0.0  ;;  %v1057_v40 = vsub.f32 %v866_v46, %v942_v59  ;;  %v357_v13 = vmul.f32 %v1043_v34, %v1043_v34  ;;  %v399_v24 = vsel %vm238_vm0, %v355_v11, 0.0 }
  0x6c   : > { %v384_v45 = vadd.f32 %v383_v38, %v382_v41  ;;  %v1064_v43 = vsub.f32 %v871_v49, %v942_v59  ;;  %v358_v32 = vmul.f32 %v1050_v37, %v1050_v37  ;;  %v401_v33 = vsel %vm238_vm0, %v356_v18, 0.0 }
  0x6d   : > { %v1071_v46 = vsub.f32 %v876_v52, %v942_v59  ;;  %v359_v38 = vmul.f32 %v1057_v40, %v1057_v40  ;;  %v403_v41 = vsel %vm238_vm0, %v357_v13, 0.0  ;;  %v1078_v49 = vsub.f32 %v881_v55, %v942_v59 }
  0x6e   : > { %v386_v50 = vadd.f32 %v385_v44, %v384_v45  ;;  %v360_v44 = vmul.f32 %v1064_v43, %v1064_v43  ;;  %v405_v45 = vsel %vm238_vm0, %v358_v32, 0.0  ;;  %v1085_v52 = vsub.f32 %v886_v58, %v942_v59 }
  0x6f   : > { %v1092_v55 = vsub.f32 %v891_v61, %v942_v59  ;;  %v1099_v58 = vsub.f32 %v896_v4, %v942_v59  ;;  %v1106_v61 = vsub.f32 %v901_v8, %v942_v59  ;;  %v1113_v4 = vsub.f32 %v906_v12, %v942_v59 }
  0x70   : > { %v388_v54 = vadd.f32 %v387_v48, %v386_v50  ;;  %v361_v48 = vmul.f32 %v1071_v46, %v1071_v46  ;;  %v407_v50 = vsel %vm238_vm0, %v359_v38, 0.0  ;;  %v1120_v8 = vsub.f32 %v911_v17, %v942_v59 }
  0x71   : > { %v1127_v12 = vsub.f32 %v916_v21, %v942_v59  ;;  %v1134_v17 = vsub.f32 %v921_v26, %v942_v59  ;;  %v1141_v21 = vsub.f32 %v926_v30, %v942_v59  ;;  %v1148_v26 = vsub.f32 %v931_v35, %v942_v59 }
  0x72   : > { %v390_v0 = vadd.f32 %v389_v53, %v388_v54  ;;  %v362_v53 = vmul.f32 %v1078_v49, %v1078_v49  ;;  %v409_v54 = vsel %vm238_vm0, %v360_v44, 0.0  ;;  %v1155_v30 = vsub.f32 %v936_v39, %v942_v59 }
  0x73   : > { %v372_v35 = vmul.f32 %v1148_v26, %v1148_v26 }
  0x74   : > { %v392_v3 = vadd.f32 %v391_v57, %v390_v0  ;;  %v363_v57 = vmul.f32 %v1085_v52, %v1085_v52  ;;  %v411_v0 = vsel %vm238_vm0, %v361_v48, 0.0 }
  0x75   : > { %v433_v59 = vsel %vm238_vm0, %v372_v35, 0.0 }
  0x76   : > { %v394_v15 = vadd.f32 %v393_v1, %v392_v3  ;;  %v364_v1 = vmul.f32 %v1092_v55, %v1092_v55  ;;  %v413_v3 = vsel %vm238_vm0, %v362_v53, 0.0 }
  0x78   : > { %v396_v23 = vadd.f32 %v395_v14, %v394_v15  ;;  %v365_v14 = vmul.f32 %v1099_v58, %v1099_v58  ;;  %v415_v15 = vsel %vm238_vm0, %v363_v57, 0.0  ;;  %v373_v57 = vmul.f32 %v1155_v30, %v1155_v30 }
  0x7a   : > { %v398_v29 = vadd.f32 %v397_v20, %v396_v23  ;;  %v366_v20 = vmul.f32 %v1106_v61, %v1106_v61  ;;  %v417_v23 = vsel %vm238_vm0, %v364_v1, 0.0  ;;  %v435_v1 = vsel %vm238_vm0, %v373_v57, 0.0 }
  0x7c   : > { %v400_v36 = vadd.f32 %v399_v24, %v398_v29  ;;  %v367_v24 = vmul.f32 %v1113_v4, %v1113_v4  ;;  %v419_v29 = vsel %vm238_vm0, %v365_v14, 0.0 }
  0x7e   : > { %v402_v42 = vadd.f32 %v401_v33, %v400_v36  ;;  %v368_v33 = vmul.f32 %v1120_v8, %v1120_v8  ;;  %v421_v36 = vsel %vm238_vm0, %v366_v20, 0.0 }
  0x80   : > { %v404_v47 = vadd.f32 %v403_v41, %v402_v42  ;;  %v369_v41 = vmul.f32 %v1127_v12, %v1127_v12  ;;  %v423_v42 = vsel %vm238_vm0, %v367_v24, 0.0 }
  0x82   : > { %v406_v51 = vadd.f32 %v405_v45, %v404_v47  ;;  %v370_v45 = vmul.f32 %v1134_v17, %v1134_v17  ;;  %v425_v47 = vsel %vm238_vm0, %v368_v33, 0.0  ;;  %v479_v33 = vld [vmem:[%s1172_s19 + $0x8] sm:$0xff] }
  0x84   : > { %v408_v56 = vadd.f32 %v407_v50, %v406_v51  ;;  %v371_v50 = vmul.f32 %v1141_v21, %v1141_v21  ;;  %v427_v51 = vsel %vm238_vm0, %v369_v41, 0.0  ;;  %v481_v41 = vld [vmem:[%s1172_s19 + $0x18] sm:$0xff] }
  0x86   : > { %v410_v9 = vadd.f32 %v409_v54, %v408_v56  ;;  %v429_v54 = vsel %vm238_vm0, %v370_v45, 0.0 }
  0x88   : > { %v412_v11 = vadd.f32 %v411_v0, %v410_v9  ;;  %v431_v0 = vsel %vm238_vm0, %v371_v50, 0.0  ;;  %v483_v50 = vld [vmem:[%s1172_s19 + $0x28] sm:$0xff] }
  0x8a   : > { %v414_v18 = vadd.f32 %v413_v3, %v412_v11 }
  0x8c   : > { %v416_v13 = vadd.f32 %v415_v15, %v414_v18 }
  0x8e   : > { %v418_v32 = vadd.f32 %v417_v23, %v416_v13 }
  0x90   : > { %v420_v38 = vadd.f32 %v419_v29, %v418_v32  ;;  %v478_v32 = vld [vmem:[%s1172_s19] sm:$0xff] }
  0x92   : > { %v422_v44 = vadd.f32 %v421_v36, %v420_v38  ;;  %v480_v38 = vld [vmem:[%s1172_s19 + $0x10] sm:$0xff] }
  0x94   : > { %v424_v48 = vadd.f32 %v423_v42, %v422_v44  ;;  %v482_v42 = vld [vmem:[%s1172_s19 + $0x20] sm:$0xff] }
  0x96   : > { %v426_v53 = vadd.f32 %v425_v47, %v424_v48 }
  0x98   : > { %v428_v56 = vadd.f32 %v427_v51, %v426_v53  ;;  %v484_v51 = vld [vmem:[%s1172_s19 + $0x30] sm:$0xff]  ;;  %v485_v53 = vld [vmem:[%s1172_s19 + $0x38] sm:$0xff] }
  0x9a   : > { %v430_v39 = vadd.f32 %v429_v54, %v428_v56 }
  0x9c   : > { %v432_v9 = vadd.f32 %v431_v0, %v430_v39  ;;  %v486_v0 = vld [vmem:[%s1172_s19 + $0x40] sm:$0xff] }
  0x9e   : > { %v434_v3 = vadd.f32 %v433_v59, %v432_v9  ;;  %v488_v9 = vld [vmem:[%s1172_s19 + $0x50] sm:$0xff] }
  0xa0   : > { %v436_v11 = vadd.f32 %v435_v1, %v434_v3  ;;  %v490_v1 = vld [vmem:[%s1172_s19 + $0x60] sm:$0xff] }
  0xa2   : > { %v437_v14 = vrot.slane %v436_v11, 4 }
  0xa4   : > { %v438_v15 = vadd.f32 %v437_v14, %v436_v11 }
  0xa6   : > { %v439_v18 = vrot.slane %v438_v15, 2 }
  0xa8   : > { %v440_v20 = vadd.f32 %v439_v18, %v438_v15  ;;  %v491_v18 = vld [vmem:[%s1172_s19 + $0x68] sm:$0xff] }
  0xaa   : > { %v441_v23 = vrot.slane %v440_v20, 1 }
  0xac   : > { %v442_v13 = vadd.f32 %v441_v23, %v440_v20  ;;  %v492_v20 = vld [vmem:[%s1172_s19 + $0x70] sm:$0xff]  ;;  %v493_v23 = vld [vmem:[%s1172_s19 + $0x78] sm:$0xff] }
  0xae   : > { %v443_v24 = vmul.f32 0.00390625, %v442_v13 }
  0xb0   : > { %v444_v29 = vadd.f32 1e-05, %v443_v24 }
  0xb2   : > { %715 = vrsqrt.f32 %v444_v29 }
  0xbc   : > { %v1176_v36 = vpop.eup %715 }
  0xbd   : > { %v446_v44 = vmul.f32 %v1176_v36, %v946_v60  ;;  %v447_v45 = vmul.f32 %v1176_v36, %v950_v62  ;;  %v448_v47 = vmul.f32 %v1176_v36, %v954_v63  ;;  %v449_v48 = vmul.f32 %v1176_v36, %v958_v5 }
  0xbe   : > { %v450_v60 = vmul.f32 %v1176_v36, %v962_v6  ;;  %v451_v62 = vmul.f32 %v1176_v36, %v972_v2  ;;  %v452_v63 = vmul.f32 %v1176_v36, %v978_v7  ;;  %v453_v5 = vmul.f32 %v1176_v36, %v987_v10  ;;  %v487_v6 = vld [vmem:[%s1172_s19 + $0x48] sm:$0xff]  ;;  %v489_v10 = vld [vmem:[%s1172_s19 + $0x58] sm:$0xff] }
  0xbf   : > { %v510_v35 = vadd.f32 %v478_v32, %v446_v44  ;;  %v511_v54 = vadd.f32 %v479_v33, %v447_v45  ;;  %v512_v56 = vadd.f32 %v480_v38, %v448_v47  ;;  %v513_v57 = vadd.f32 %v481_v41, %v449_v48  ;;  %v494_v33 = vld [vmem:[%s1172_s19 + $0x80] sm:$0xff] }
  0xc0   : > { %v514_v39 = vadd.f32 %v482_v42, %v450_v60  ;;  %v515_v2 = vadd.f32 %v483_v50, %v451_v62  ;;  %v516_v59 = vadd.f32 %v484_v51, %v452_v63  ;;  %v517_v7 = vadd.f32 %v485_v53, %v453_v5  ;;  %v496_v42 = vld [vmem:[%s1172_s19 + $0x90] sm:$0xff]  ;;  %v498_v44 = vld [vmem:[%s1172_s19 + $0xa0] sm:$0xff]  ;;  %v499_v51 = vld [vmem:[%s1172_s19 + $0xa8] sm:$0xff] }
  0xc1   : > { %542 = vst.msk [vmem:[%s1196_s22] sm:$0xff] %vm238_vm0, %v510_v35  ;;  %543 = vst.msk [vmem:[%s1196_s22 + $0x8] sm:$0xff] %vm238_vm0, %v511_v54  ;;  %v454_v3 = vmul.f32 %v1176_v36, %v994_v27  ;;  %v455_v11 = vmul.f32 %v1176_v36, %v1001_v16  ;;  %v456_v14 = vmul.f32 %v1176_v36, %v1008_v19  ;;  %v500_v53 = vld [vmem:[%s1172_s19 + $0xb0] sm:$0xff]  ;;  %v501_v60 = vld [vmem:[%s1172_s19 + $0xb8] sm:$0xff] }
  0xc2   : > { %544 = vst.msk [vmem:[%s1196_s22 + $0x10] sm:$0xff] %vm238_vm0, %v512_v56  ;;  %545 = vst.msk [vmem:[%s1196_s22 + $0x18] sm:$0xff] %vm238_vm0, %v513_v57  ;;  %v457_v15 = vmul.f32 %v1176_v36, %v1015_v22  ;;  %v458_v27 = vmul.f32 %v1176_v36, %v1022_v25  ;;  %v459_v16 = vmul.f32 %v1176_v36, %v1029_v28  ;;  %v495_v25 = vld [vmem:[%s1172_s19 + $0x88] sm:$0xff]  ;;  %v502_v54 = vld [vmem:[%s1172_s19 + $0xc0] sm:$0xff] }
  0xc3   : > { %546 = vst.msk [vmem:[%s1196_s22 + $0x20] sm:$0xff] %vm238_vm0, %v514_v39  ;;  %547 = vst.msk [vmem:[%s1196_s22 + $0x28] sm:$0xff] %vm238_vm0, %v515_v2  ;;  %v460_v19 = vmul.f32 %v1176_v36, %v1036_v31  ;;  %v461_v22 = vmul.f32 %v1176_v36, %v1043_v34  ;;  %v518_v13 = vadd.f32 %v486_v0, %v454_v3  ;;  %v497_v34 = vld [vmem:[%s1172_s19 + $0x98] sm:$0xff]  ;;  %v504_v0 = vld [vmem:[%s1172_s19 + $0xd0] sm:$0xff] }
  0xc4   : > { %548 = vst.msk [vmem:[%s1196_s22 + $0x30] sm:$0xff] %vm238_vm0, %v516_v59  ;;  %549 = vst.msk [vmem:[%s1196_s22 + $0x38] sm:$0xff] %vm238_vm0, %v517_v7  ;;  %v519_v24 = vadd.f32 %v487_v6, %v455_v11  ;;  %v520_v29 = vadd.f32 %v488_v9, %v456_v14  ;;  %v521_v32 = vadd.f32 %v489_v10, %v457_v15  ;;  %v506_v6 = vld [vmem:[%s1172_s19 + $0xe0] sm:$0xff]  ;;  %v507_v9 = vld [vmem:[%s1172_s19 + $0xe8] sm:$0xff] }
  0xc5   : > { %v522_v38 = vadd.f32 %v490_v1, %v458_v27  ;;  %v523_v28 = vadd.f32 %v491_v18, %v459_v16  ;;  %v524_v41 = vadd.f32 %v492_v20, %v460_v19  ;;  %v525_v31 = vadd.f32 %v493_v23, %v461_v22  ;;  %550 = vst.msk [vmem:[%s1196_s22 + $0x40] sm:$0xff] %vm238_vm0, %v518_v13  ;;  %v508_v10 = vld [vmem:[%s1172_s19 + $0xf0] sm:$0xff]  ;;  %v509_v1 = vld [vmem:[%s1172_s19 + $0xf8] sm:$0xff] }
  0xc6   : > { %551 = vst.msk [vmem:[%s1196_s22 + $0x48] sm:$0xff] %vm238_vm0, %v519_v24  ;;  %552 = vst.msk [vmem:[%s1196_s22 + $0x50] sm:$0xff] %vm238_vm0, %v520_v29  ;;  %v462_v45 = vmul.f32 %v1176_v36, %v1050_v37  ;;  %v463_v47 = vmul.f32 %v1176_v36, %v1057_v40  ;;  %v464_v48 = vmul.f32 %v1176_v36, %v1064_v43 }
  0xc7   : > { %553 = vst.msk [vmem:[%s1196_s22 + $0x58] sm:$0xff] %vm238_vm0, %v521_v32  ;;  %v465_v50 = vmul.f32 %v1176_v36, %v1071_v46  ;;  %554 = vst.msk [vmem:[%s1196_s22 + $0x60] sm:$0xff] %vm238_vm0, %v522_v38  ;;  %v466_v37 = vmul.f32 %v1176_v36, %v1078_v49  ;;  %v467_v40 = vmul.f32 %v1176_v36, %v1085_v52  ;;  %v503_v49 = vld [vmem:[%s1172_s19 + $0xc8] sm:$0xff] }
  0xc8   : > { %555 = vst.msk [vmem:[%s1196_s22 + $0x68] sm:$0xff] %vm238_vm0, %v523_v28  ;;  %556 = vst.msk [vmem:[%s1196_s22 + $0x70] sm:$0xff] %vm238_vm0, %v524_v41  ;;  %v468_v43 = vmul.f32 %v1176_v36, %v1092_v55  ;;  %v469_v46 = vmul.f32 %v1176_v36, %v1099_v58  ;;  %v526_v62 = vadd.f32 %v494_v33, %v462_v45  ;;  %v505_v58 = vld [vmem:[%s1172_s19 + $0xd8] sm:$0xff] }
  0xc9   : > { %557 = vst.msk [vmem:[%s1196_s22 + $0x78] sm:$0xff] %vm238_vm0, %v525_v31  ;;  %v527_v63 = vadd.f32 %v495_v25, %v463_v47  ;;  %v528_v5 = vadd.f32 %v496_v42, %v464_v48  ;;  %v529_v35 = vadd.f32 %v497_v34, %v465_v50  ;;  %v530_v56 = vadd.f32 %v498_v44, %v466_v37 }
  0xca   : > { %v531_v52 = vadd.f32 %v499_v51, %v467_v40  ;;  %v532_v57 = vadd.f32 %v500_v53, %v468_v43  ;;  %v533_v55 = vadd.f32 %v501_v60, %v469_v46  ;;  %558 = vst.msk [vmem:[%s1196_s22 + $0x80] sm:$0xff] %vm238_vm0, %v526_v62  ;;  %v470_v39 = vmul.f32 %v1176_v36, %v1106_v61 }
  0xcb   : > { %559 = vst.msk [vmem:[%s1196_s22 + $0x88] sm:$0xff] %vm238_vm0, %v527_v63  ;;  %560 = vst.msk [vmem:[%s1196_s22 + $0x90] sm:$0xff] %vm238_vm0, %v528_v5  ;;  %v471_v2 = vmul.f32 %v1176_v36, %v1113_v4  ;;  %v472_v59 = vmul.f32 %v1176_v36, %v1120_v8  ;;  %v473_v7 = vmul.f32 %v1176_v36, %v1127_v12 }
  0xcc   : > { %561 = vst.msk [vmem:[%s1196_s22 + $0x98] sm:$0xff] %vm238_vm0, %v529_v35  ;;  %562 = vst.msk [vmem:[%s1196_s22 + $0xa0] sm:$0xff] %vm238_vm0, %v530_v56  ;;  %v474_v61 = vmul.f32 %v1176_v36, %v1134_v17  ;;  %v475_v4 = vmul.f32 %v1176_v36, %v1141_v21  ;;  %v476_v8 = vmul.f32 %v1176_v36, %v1148_v26 }
  0xcd   : > { %563 = vst.msk [vmem:[%s1196_s22 + $0xa8] sm:$0xff] %vm238_vm0, %v531_v52  ;;  %564 = vst.msk [vmem:[%s1196_s22 + $0xb0] sm:$0xff] %vm238_vm0, %v532_v57  ;;  %v477_v12 = vmul.f32 %v1176_v36, %v1155_v30  ;;  %v534_v3 = vadd.f32 %v502_v54, %v470_v39  ;;  %v535_v11 = vadd.f32 %v503_v49, %v471_v2 }
  0xce   : > { %565 = vst.msk [vmem:[%s1196_s22 + $0xb8] sm:$0xff] %vm238_vm0, %v533_v55  ;;  %v536_v14 = vadd.f32 %v504_v0, %v472_v59  ;;  %v537_v15 = vadd.f32 %v505_v58, %v473_v7  ;;  %v538_v18 = vadd.f32 %v506_v6, %v474_v61  ;;  %v539_v20 = vadd.f32 %v507_v9, %v475_v4 }
  0xcf   : > { %v540_v17 = vadd.f32 %v508_v10, %v476_v8  ;;  %v541_v23 = vadd.f32 %v509_v1, %v477_v12  ;;  %566 = vst.msk [vmem:[%s1196_s22 + $0xc0] sm:$0xff] %vm238_vm0, %v534_v3  ;;  %567 = vst.msk [vmem:[%s1196_s22 + $0xc8] sm:$0xff] %vm238_vm0, %v535_v11 }
  0xd0   : > { %568 = vst.msk [vmem:[%s1196_s22 + $0xd0] sm:$0xff] %vm238_vm0, %v536_v14  ;;  %569 = vst.msk [vmem:[%s1196_s22 + $0xd8] sm:$0xff] %vm238_vm0, %v537_v15 }
  0xd1   : > { %570 = vst.msk [vmem:[%s1196_s22 + $0xe0] sm:$0xff] %vm238_vm0, %v538_v18  ;;  %571 = vst.msk [vmem:[%s1196_s22 + $0xe8] sm:$0xff] %vm238_vm0, %v539_v20 }
  0xd2   : > { %572 = vst.msk [vmem:[%s1196_s22 + $0xf0] sm:$0xff] %vm238_vm0, %v540_v17  ;;  %573 = vst.msk [vmem:[%s1196_s22 + $0xf8] sm:$0xff] %vm238_vm0, %v541_v23 }
  0xd3 PF: > { %s12_s11 = sadd.s32 1, %s739_s11   ;;  %s1354_s9 = smov %s735_s10 }
  0xd4   : > { %p9_p5 = scmp.ge.s32.totalorder %s12_s11, 4   ;;  %s1355_s10 = smov %s1357_s12 }
  0xd6   :  { %11 = sbr.rel (!%p9_p5) target bundleno = 2 (0x2), region = 61 }

// kernel: edge_content_encoder.149
= control target key start
LH: loop header
LB: loop body
LE: loop exit
PB: predicated region body
PF: predicated region fallthrough
CT: control target
= control target key end

     0   :  { %s844_s9 = smov 0   ;;  %s1003_s0 = inlined_call_operand.vmem [shape: f32[2,256,8], index: 0, kind: input, shape index: {}]   ;;  %s1004_s1 = inlined_call_operand.vmem [shape: f32[8,1], index: 1, kind: input, shape index: {}]   ;;  %s1005_s2 = inlined_call_operand.vmem [shape: f32[2,256,1], index: 2, kind: output, shape index: {}]  }
   0x1 LB: > { %s619_s10 = sadd.s32 4294967295, %s827_s9   ;;  %p623_p0 = scmp.ge.s32.totalorder %s827_s9, 1  ;;  %s827_s9 = sphi %s844_s9, %s12_s9  }
   0x2   : > { %p112_p1 = scmp.lt.s32.totalorder %s827_s9, 3 }
   0x4   : > { %p113_p2 = pnand %p623_p0, %p112_p1 }
   0x5   : > { %v176_v0 = vld [vmem:[%s1004_s1] sm:$0xff] (!%p113_p2)  ;;  %p134_p3 = scmp.lt.s32.totalorder (!%p113_p2), %s619_s10, 1  ;;  %vm177_vm0 = vcmask (!%p113_p2), 64512   ;;  %vm531_vm1 = vcmask (!%p113_p2), 7168  }
   0x6   : > { %116 = sbr.rel (%p113_p2) target bundleno = 274 (0x112), region = 28  ;;  %697 = vmatprep.subr.mxu0 (!%p113_p2), %v176_v0  ;;  %747 = vmatprep.subr.mxu1 (!%p113_p2), %v176_v0 }
   0x7   : > { %698 = vmatpush3.msra.mxu0 (!%p113_p2), %v176_v0  ;;  %748 = vmatpush3.msra.mxu1 (!%p113_p2), %v176_v0 }
   0xd   : > { %s1007_s10 = smov (!%p134_p3, %s619_s10), 1 }
   0xe   : > { %s662_s13 = sshll.u32 %s1007_s10, 8 }
   0xf   : > { %s863_s16 = scalar_lea.vmem %s1003_s0, %s662_s13  ;;  %s934_s19 = scalar_lea.vmem %s1005_s2, %s662_s13 }
  0x10   : > { %v144_v1 = vld [vmem:[%s863_s16] sm:$0xff]  ;;  %v145_v3 = vld [vmem:[%s863_s16 + $0x8] sm:$0xff]  ;;  %v146_v5 = vld [vmem:[%s863_s16 + $0x10] sm:$0xff] }
  0x11   : > { %v160_v2 = vld [vmem:[%s863_s16 + $0x80] sm:$0xff]  ;;  %699 = vmatprep.mubr.msk.f32.mxu0 %vm177_vm0, %v144_v1  ;;  %v161_v4 = vld [vmem:[%s863_s16 + $0x88] sm:$0xff]  ;;  %v162_v6 = vld [vmem:[%s863_s16 + $0x90] sm:$0xff] }
  0x12   : > { %723 = vmatprep.mubr.msk.f32.mxu1 %vm177_vm0, %v160_v2  ;;  %700 = vmatmul.mubr.msk.f32.vlgmr.msra.gmra.mrb[0].mxu0 %vm177_vm0, %v145_v3  ;;  %v147_v7 = vld [vmem:[%s863_s16 + $0x18] sm:$0xff]  ;;  %v148_v9 = vld [vmem:[%s863_s16 + $0x20] sm:$0xff]  ;;  %v149_v11 = vld [vmem:[%s863_s16 + $0x28] sm:$0xff] }
  0x13   : > { %724 = vmatmul.mubr.msk.f32.vlgmr.msra.gmra.mrb[0].mxu1 %vm177_vm0, %v161_v4  ;;  %702 = vmatprep.mubr.msk.f32.mxu0 %vm177_vm0, %v146_v5  ;;  %v163_v8 = vld [vmem:[%s863_s16 + $0x98] sm:$0xff]  ;;  %v164_v10 = vld [vmem:[%s863_s16 + $0xa0] sm:$0xff]  ;;  %v165_v12 = vld [vmem:[%s863_s16 + $0xa8] sm:$0xff] }
  0x14   : > { %726 = vmatprep.mubr.msk.f32.mxu1 %vm177_vm0, %v162_v6  ;;  %v150_v13 = vld [vmem:[%s863_s16 + $0x30] sm:$0xff]  ;;  %v151_v15 = vld [vmem:[%s863_s16 + $0x38] sm:$0xff]  ;;  %v152_v17 = vld [vmem:[%s863_s16 + $0x40] sm:$0xff] }
  0x15   : > { %v166_v14 = vld [vmem:[%s863_s16 + $0xb0] sm:$0xff]  ;;  %v167_v16 = vld [vmem:[%s863_s16 + $0xb8] sm:$0xff]  ;;  %v168_v18 = vld [vmem:[%s863_s16 + $0xc0] sm:$0xff] }
  0x16   : > { %703 = vmatmul.mubr.msk.f32.gmra.mrb[2].mxu0 %vm177_vm0, %v147_v7  ;;  %v153_v19 = vld [vmem:[%s863_s16 + $0x48] sm:$0xff]  ;;  %v154_v21 = vld [vmem:[%s863_s16 + $0x50] sm:$0xff]  ;;  %v155_v23 = vld [vmem:[%s863_s16 + $0x58] sm:$0xff] }
  0x17   : > { %727 = vmatmul.mubr.msk.f32.gmra.mrb[2].mxu1 %vm177_vm0, %v163_v8  ;;  %705 = vmatprep.mubr.msk.f32.mxu0 %vm177_vm0, %v148_v9  ;;  %v169_v20 = vld [vmem:[%s863_s16 + $0xc8] sm:$0xff]  ;;  %v170_v22 = vld [vmem:[%s863_s16 + $0xd0] sm:$0xff]  ;;  %v171_v24 = vld [vmem:[%s863_s16 + $0xd8] sm:$0xff] }
  0x18   : > { %729 = vmatprep.mubr.msk.f32.mxu1 %vm177_vm0, %v164_v10  ;;  %v156_v25 = vld [vmem:[%s863_s16 + $0x60] sm:$0xff]  ;;  %v157_v27 = vld [vmem:[%s863_s16 + $0x68] sm:$0xff]  ;;  %v158_v29 = vld [vmem:[%s863_s16 + $0x70] sm:$0xff] }
  0x19   : > { %v172_v26 = vld [vmem:[%s863_s16 + $0xe0] sm:$0xff]  ;;  %v173_v28 = vld [vmem:[%s863_s16 + $0xe8] sm:$0xff]  ;;  %v174_v30 = vld [vmem:[%s863_s16 + $0xf0] sm:$0xff] }
  0x1a   : > { %706 = vmatmul.mubr.msk.f32.gmra.mrb[4].mxu0 %vm177_vm0, %v149_v11  ;;  %v159_v31 = vld [vmem:[%s863_s16 + $0x78] sm:$0xff] }
  0x1b   : > { %730 = vmatmul.mubr.msk.f32.gmra.mrb[4].mxu1 %vm177_vm0, %v165_v12  ;;  %708 = vmatprep.mubr.msk.f32.mxu0 %vm177_vm0, %v150_v13  ;;  %v175_v32 = vld [vmem:[%s863_s16 + $0xf8] sm:$0xff] }
  0x1c   : > { %732 = vmatprep.mubr.msk.f32.mxu1 %vm177_vm0, %v166_v14 }
  0x1e   : > { %709 = vmatmul.mubr.msk.f32.gmra.mrb[6].mxu0 %vm177_vm0, %v151_v15 }
  0x1f   : > { %733 = vmatmul.mubr.msk.f32.gmra.mrb[6].mxu1 %vm177_vm0, %v167_v16  ;;  %711 = vmatprep.mubr.msk.f32.mxu0 %vm177_vm0, %v152_v17 }
  0x20   : > { %735 = vmatprep.mubr.msk.f32.mxu1 %vm177_vm0, %v168_v18 }
  0x22   : > { %712 = vmatmul.mubr.msk.f32.gmra.mrb[8].mxu0 %vm177_vm0, %v153_v19 }
  0x23   : > { %736 = vmatmul.mubr.msk.f32.gmra.mrb[8].mxu1 %vm177_vm0, %v169_v20  ;;  %714 = vmatprep.mubr.msk.f32.mxu0 %vm177_vm0, %v154_v21 }
  0x24   : > { %738 = vmatprep.mubr.msk.f32.mxu1 %vm177_vm0, %v170_v22 }
  0x26   : > { %715 = vmatmul.mubr.msk.f32.gmra.mrb[10].mxu0 %vm177_vm0, %v155_v23 }
  0x27   : > { %739 = vmatmul.mubr.msk.f32.gmra.mrb[10].mxu1 %vm177_vm0, %v171_v24  ;;  %717 = vmatprep.mubr.msk.f32.mxu0 %vm177_vm0, %v156_v25 }
  0x28   : > { %741 = vmatprep.mubr.msk.f32.mxu1 %vm177_vm0, %v172_v26 }
  0x2a   : > { %718 = vmatmul.mubr.msk.f32.gmra.mrb[12].mxu0 %vm177_vm0, %v157_v27 }
  0x2b   : > { %742 = vmatmul.mubr.msk.f32.gmra.mrb[12].mxu1 %vm177_vm0, %v173_v28  ;;  %720 = vmatprep.mubr.msk.f32.mxu0 %vm177_vm0, %v158_v29 }
  0x2c   : > { %744 = vmatprep.mubr.msk.f32.mxu1 %vm177_vm0, %v174_v30 }
  0x2e   : > { %721 = vmatmul.mubr.msk.f32.gmra.mrb[14].mxu0 %vm177_vm0, %v159_v31 }
  0x2f   : > { %745 = vmatmul.mubr.msk.f32.gmra.mrb[14].mxu1 %vm177_vm0, %v175_v32 }
  0xe5   : > { %v701_v33 = vpop.f32.mrb[0].mxu0 }
  0xe6   : > { %v725_v34 = vpop.f32.mrb[0].mxu1  ;;  %757 = vtanh.f32 %v701_v33  ;;  %v340_v35 = vpop.f32.mrb[1].mxu0 }
  0xe7   : > { %v420_v36 = vpop.f32.mrb[1].mxu1  ;;  %759 = vtanh.f32 %v725_v34 }
  0xe8   : > { %761 = vtanh.f32 %v340_v35 }
  0xe9   : > { %763 = vtanh.f32 %v420_v36  ;;  %v704_v37 = vpop.f32.mrb[2].mxu0 }
  0xea   : > { %v728_v38 = vpop.f32.mrb[2].mxu1  ;;  %765 = vtanh.f32 %v704_v37  ;;  %v350_v39 = vpop.f32.mrb[3].mxu0 }
  0xeb   : > { %v430_v40 = vpop.f32.mrb[3].mxu1  ;;  %767 = vtanh.f32 %v728_v38 }
  0xec   : > { %769 = vtanh.f32 %v350_v39 }
  0xed   : > { %771 = vtanh.f32 %v430_v40  ;;  %v707_v41 = vpop.f32.mrb[4].mxu0 }
  0xee   : > { %v731_v42 = vpop.f32.mrb[4].mxu1  ;;  %773 = vtanh.f32 %v707_v41  ;;  %v360_v43 = vpop.f32.mrb[5].mxu0 }
  0xef   : > { %v440_v44 = vpop.f32.mrb[5].mxu1  ;;  %775 = vtanh.f32 %v731_v42 }
  0xf0   : > { %v758_v45 = vpop.eup %757  ;;  %777 = vtanh.f32 %v360_v43 }
  0xf1   : > { %v760_v46 = vpop.eup %759  ;;  %533 = vst.msk [vmem:[%s934_s19 + $0x8] sm:$0xff] %vm531_vm1, %v758_v45  ;;  %779 = vtanh.f32 %v440_v44  ;;  %v710_v47 = vpop.f32.mrb[6].mxu0 }
  0xf2   : > { %v734_v48 = vpop.f32.mrb[6].mxu1  ;;  %v762_v49 = vpop.eup %761  ;;  %549 = vst.msk [vmem:[%s934_s19 + $0x88] sm:$0xff] %vm531_vm1, %v760_v46  ;;  %781 = vtanh.f32 %v710_v47 }
  0xf3   : > { %v370_v50 = vpop.f32.mrb[7].mxu0  ;;  %v450_v51 = vpop.f32.mrb[7].mxu1  ;;  %532 = vst.msk [vmem:[%s934_s19] sm:$0xff] %vm531_vm1, %v762_v49  ;;  %783 = vtanh.f32 %v734_v48 }
  0xf4   : > { %v764_v52 = vpop.eup %763  ;;  %785 = vtanh.f32 %v370_v50 }
  0xf5   : > { %v766_v53 = vpop.eup %765  ;;  %548 = vst.msk [vmem:[%s934_s19 + $0x80] sm:$0xff] %vm531_vm1, %v764_v52  ;;  %787 = vtanh.f32 %v450_v51  ;;  %v713_v55 = vpop.f32.mrb[8].mxu0 }
  0xf6   : > { %v768_v54 = vpop.eup %767  ;;  %535 = vst.msk [vmem:[%s934_s19 + $0x18] sm:$0xff] %vm531_vm1, %v766_v53  ;;  %v737_v56 = vpop.f32.mrb[8].mxu1  ;;  %789 = vtanh.f32 %v713_v55 }
  0xf7   : > { %v770_v57 = vpop.eup %769  ;;  %551 = vst.msk [vmem:[%s934_s19 + $0x98] sm:$0xff] %vm531_vm1, %v768_v54  ;;  %v380_v58 = vpop.f32.mrb[9].mxu0  ;;  %791 = vtanh.f32 %v737_v56 }
  0xf8   : > { %v460_v59 = vpop.f32.mrb[9].mxu1  ;;  %v772_v60 = vpop.eup %771  ;;  %534 = vst.msk [vmem:[%s934_s19 + $0x10] sm:$0xff] %vm531_vm1, %v770_v57  ;;  %793 = vtanh.f32 %v380_v58 }
  0xf9   : > { %v774_v61 = vpop.eup %773  ;;  %550 = vst.msk [vmem:[%s934_s19 + $0x90] sm:$0xff] %vm531_vm1, %v772_v60  ;;  %795 = vtanh.f32 %v460_v59  ;;  %v716_v63 = vpop.f32.mrb[10].mxu0 }
  0xfa   : > { %v776_v62 = vpop.eup %775  ;;  %537 = vst.msk [vmem:[%s934_s19 + $0x28] sm:$0xff] %vm531_vm1, %v774_v61  ;;  %v740_v0 = vpop.f32.mrb[10].mxu1  ;;  %797 = vtanh.f32 %v716_v63 }
  0xfb   : > { %v778_v1 = vpop.eup %777  ;;  %553 = vst.msk [vmem:[%s934_s19 + $0xa8] sm:$0xff] %vm531_vm1, %v776_v62  ;;  %v390_v2 = vpop.f32.mrb[11].mxu0  ;;  %799 = vtanh.f32 %v740_v0 }
  0xfc   : > { %v470_v3 = vpop.f32.mrb[11].mxu1  ;;  %v780_v4 = vpop.eup %779  ;;  %536 = vst.msk [vmem:[%s934_s19 + $0x20] sm:$0xff] %vm531_vm1, %v778_v1  ;;  %801 = vtanh.f32 %v390_v2 }
  0xfd   : > { %v782_v5 = vpop.eup %781  ;;  %552 = vst.msk [vmem:[%s934_s19 + $0xa0] sm:$0xff] %vm531_vm1, %v780_v4  ;;  %803 = vtanh.f32 %v470_v3  ;;  %v719_v7 = vpop.f32.mrb[12].mxu0 }
  0xfe   : > { %v784_v6 = vpop.eup %783  ;;  %539 = vst.msk [vmem:[%s934_s19 + $0x38] sm:$0xff] %vm531_vm1, %v782_v5  ;;  %v743_v8 = vpop.f32.mrb[12].mxu1  ;;  %805 = vtanh.f32 %v719_v7 }
  0xff   : > { %v786_v9 = vpop.eup %785  ;;  %555 = vst.msk [vmem:[%s934_s19 + $0xb8] sm:$0xff] %vm531_vm1, %v784_v6  ;;  %v400_v10 = vpop.f32.mrb[13].mxu0  ;;  %807 = vtanh.f32 %v743_v8 }
 0x100   : > { %v480_v11 = vpop.f32.mrb[13].mxu1  ;;  %v788_v12 = vpop.eup %787  ;;  %538 = vst.msk [vmem:[%s934_s19 + $0x30] sm:$0xff] %vm531_vm1, %v786_v9  ;;  %809 = vtanh.f32 %v400_v10 }
 0x101   : > { %v790_v13 = vpop.eup %789  ;;  %554 = vst.msk [vmem:[%s934_s19 + $0xb0] sm:$0xff] %vm531_vm1, %v788_v12  ;;  %811 = vtanh.f32 %v480_v11  ;;  %v722_v15 = vpop.f32.mrb[14].mxu0 }
 0x102   : > { %v792_v14 = vpop.eup %791  ;;  %541 = vst.msk [vmem:[%s934_s19 + $0x48] sm:$0xff] %vm531_vm1, %v790_v13  ;;  %v746_v16 = vpop.f32.mrb[14].mxu1  ;;  %813 = vtanh.f32 %v722_v15 }
 0x103   : > { %v794_v17 = vpop.eup %793  ;;  %557 = vst.msk [vmem:[%s934_s19 + $0xc8] sm:$0xff] %vm531_vm1, %v792_v14  ;;  %v410_v18 = vpop.f32.mrb[15].mxu0  ;;  %815 = vtanh.f32 %v746_v16 }
 0x104   : > { %v490_v19 = vpop.f32.mrb[15].mxu1  ;;  %v796_v20 = vpop.eup %795  ;;  %540 = vst.msk [vmem:[%s934_s19 + $0x40] sm:$0xff] %vm531_vm1, %v794_v17  ;;  %817 = vtanh.f32 %v410_v18 }
 0x105   : > { %v798_v21 = vpop.eup %797  ;;  %556 = vst.msk [vmem:[%s934_s19 + $0xc0] sm:$0xff] %vm531_vm1, %v796_v20  ;;  %819 = vtanh.f32 %v490_v19 }
 0x106   : > { %v800_v22 = vpop.eup %799  ;;  %543 = vst.msk [vmem:[%s934_s19 + $0x58] sm:$0xff] %vm531_vm1, %v798_v21 }
 0x107   : > { %v802_v23 = vpop.eup %801  ;;  %559 = vst.msk [vmem:[%s934_s19 + $0xd8] sm:$0xff] %vm531_vm1, %v800_v22 }
 0x108   : > { %v804_v24 = vpop.eup %803  ;;  %542 = vst.msk [vmem:[%s934_s19 + $0x50] sm:$0xff] %vm531_vm1, %v802_v23 }
 0x109   : > { %v806_v25 = vpop.eup %805  ;;  %558 = vst.msk [vmem:[%s934_s19 + $0xd0] sm:$0xff] %vm531_vm1, %v804_v24 }
 0x10a   : > { %v808_v26 = vpop.eup %807  ;;  %545 = vst.msk [vmem:[%s934_s19 + $0x68] sm:$0xff] %vm531_vm1, %v806_v25 }
 0x10b   : > { %v810_v27 = vpop.eup %809  ;;  %561 = vst.msk [vmem:[%s934_s19 + $0xe8] sm:$0xff] %vm531_vm1, %v808_v26 }
 0x10c   : > { %v812_v28 = vpop.eup %811  ;;  %544 = vst.msk [vmem:[%s934_s19 + $0x60] sm:$0xff] %vm531_vm1, %v810_v27 }
 0x10d   : > { %v814_v29 = vpop.eup %813  ;;  %560 = vst.msk [vmem:[%s934_s19 + $0xe0] sm:$0xff] %vm531_vm1, %v812_v28 }
 0x10e   : > { %v816_v30 = vpop.eup %815  ;;  %547 = vst.msk [vmem:[%s934_s19 + $0x78] sm:$0xff] %vm531_vm1, %v814_v29 }
 0x10f   : > { %v818_v31 = vpop.eup %817  ;;  %563 = vst.msk [vmem:[%s934_s19 + $0xf8] sm:$0xff] %vm531_vm1, %v816_v30 }
 0x110   : > { %v820_v32 = vpop.eup %819  ;;  %546 = vst.msk [vmem:[%s934_s19 + $0x70] sm:$0xff] %vm531_vm1, %v818_v31 }
 0x111   : > { %562 = vst.msk [vmem:[%s934_s19 + $0xf0] sm:$0xff] %vm531_vm1, %v820_v32 }
 0x112 PF: > { %s12_s9 = sadd.s32 1, %s827_s9  }
 0x113   : > { %p9_p4 = scmp.ge.s32.totalorder %s12_s9, 4  }
 0x115   :  { %11 = sbr.rel (!%p9_p4) target bundleno = 1 (0x1), region = 58 }

</bundles_post_ra>
